<compile_context>
chip_gen: v7x
topology: tpu7x:2x2x1
jax: 0.10.0
libtpu: 0.0.40
codegen_flags: <defaults>
</compile_context>

<pallas_src>
import numpy as np
import jax
import jax.numpy as jnp
from jax.experimental import pallas as pl
from jax.experimental.pallas import tpu as pltpu


# --------------------------------- kernel ------------------------------------

def make_patch_embed_kernel(use_norm, eps=1e-5):
    """One grid step: (1, C, TL) slab -> transpose -> optional LayerNorm -> (1, TL, C)."""

    def kernel(x_ref, g_ref, b_ref, o_ref):
        xt = x_ref[0]            # (C, TL)  channels-major slab straight from NCHW layout
        x = xt.T                 # (TL, C)  on-chip transpose (XLU)
        if use_norm:
            mu = jnp.mean(x, axis=-1, keepdims=True)
            var = jnp.mean((x - mu) ** 2, axis=-1, keepdims=True)
            x = (x - mu) * jax.lax.rsqrt(var + jnp.float32(eps))
            x = x * g_ref[0] + b_ref[0]          # (TL, C) * (C,) + (C,)
        o_ref[0] = x.astype(o_ref.dtype)

    return kernel


# --------------------------------- wrapper -----------------------------------

def _pick_token_tile(L, cap=2048):
    """Largest multiple-of-128 divisor of L that is <= cap; else the full L."""
    best = None
    t = 128
    while t <= min(L, cap):
        if L % t == 0:
            best = t
        t += 128
    return best if best is not None else L


def patch_embed_pallas(x, gamma=None, beta=None, eps=1e-5):
    """x: (B, C, H, W) float32.  gamma/beta: optional (C,) LayerNorm params.

    Returns (B, H*W, C), matching PatchEmbed.forward.
    """
    B, C, H, W = x.shape
    L = H * W
    x2 = x.reshape(B, C, L)               # free, contiguous view of NCHW

    TL = _pick_token_tile(L)
    grid = (B, L // TL)

    use_norm = gamma is not None
    if use_norm:
        g = gamma.reshape(1, C).astype(x.dtype)
        b = beta.reshape(1, C).astype(x.dtype)
    else:
        # Unused by the kernel (use_norm=False), passed only to keep one signature.
        g = jnp.ones((1, C), x.dtype)
        b = jnp.zeros((1, C), x.dtype)

    kernel = make_patch_embed_kernel(use_norm, eps)

    out = pl.pallas_call(
        kernel,
        out_shape=jax.ShapeDtypeStruct((B, L, C), x.dtype),
        grid=grid,
        in_specs=[
            pl.BlockSpec((1, C, TL), lambda bi, ti: (bi, 0, ti)),   # x slab
            pl.BlockSpec((1, C), lambda bi, ti: (0, 0)),            # gamma (resident)
            pl.BlockSpec((1, C), lambda bi, ti: (0, 0)),            # beta  (resident)
        ],
        out_specs=pl.BlockSpec((1, TL, C), lambda bi, ti: (bi, ti, 0)),
        compiler_params=pltpu.CompilerParams(
            dimension_semantics=("parallel", "parallel")),
    )(x2, g, b)
    return out


# ------------------------------ pure-JAX reference ----------------------------

def patch_embed_reference(x, gamma=None, beta=None, eps=1e-5):
    B, C, H, W = x.shape
    xf = x.reshape(B, C, H * W).transpose(0, 2, 1)       # flatten(2).transpose(1,2)
    if gamma is not None:
        mu = jnp.mean(xf, axis=-1, keepdims=True)
        var = jnp.mean((xf - mu) ** 2, axis=-1, keepdims=True)
        xf = (xf - mu) / jnp.sqrt(var + eps) * gamma + beta
    return xf


# ----------------------------------- main -------------------------------------

if __name__ == "__main__":
    # PatchEmbed in this model receives an already-embedded feature map
    # (B, embed_dim, H, W); embed_dim=96 is the module default.
    B, C, H, W = 2, 96, 32, 32

    key = jax.random.PRNGKey(0)
    kx, kg, kb = jax.random.split(key, 3)
    x = jax.random.normal(kx, (B, C, H, W), jnp.float32)
    gamma = (1.0 + 0.1 * jax.random.normal(kg, (C,))).astype(jnp.float32)
    beta = (0.1 * jax.random.normal(kb, (C,))).astype(jnp.float32)

    # norm_layer = nn.LayerNorm path
    out = patch_embed_pallas(x, gamma, beta)
    out = jax.block_until_ready(out)
    ref = patch_embed_reference(x, gamma, beta)
    ref = jax.block_until_ready(ref)
    assert out.shape == (B, H * W, C)
    np.testing.assert_allclose(np.asarray(out), np.asarray(ref), rtol=1e-4, atol=1e-5)

    # norm_layer = None path (module default): pure flatten + transpose
    out2 = jax.block_until_ready(patch_embed_pallas(x))
    ref2 = jax.block_until_ready(patch_embed_reference(x))
    np.testing.assert_allclose(np.asarray(out2), np.asarray(ref2), rtol=1e-6, atol=1e-6)

    print("KERNEL_OK")
</pallas_src>

<mosaic_0001>
module attributes {stable_mosaic.version = 11 : i64} {
  func.func @kernel(%arg0: i32, %arg1: i32, %arg2: memref<1x96x1024xf32, #tpu.memory_space<vmem>>, %arg3: memref<1x96xf32, #tpu.memory_space<vmem>>, %arg4: memref<1x96xf32, #tpu.memory_space<vmem>>, %arg5: memref<1x1024x96xf32, #tpu.memory_space<vmem>>) attributes {dimension_semantics = [#tpu.dimension_semantics<parallel>, #tpu.dimension_semantics<parallel>], iteration_bounds = array<i64: 2, 1>, scalar_prefetch = 0 : i64, scratch_operands = 0 : i64, tpu.core_type = #tpu.core_type<tc>, window_params = [{transform_indices = @transform_0, window_bounds = array<i64: 1, 96, 1024>}, {pipeline_mode = #tpu.pipeline_mode<synchronous>, transform_indices = @transform_1, window_bounds = array<i64: 1, 96>}, {pipeline_mode = #tpu.pipeline_mode<synchronous>, transform_indices = @transform_2, window_bounds = array<i64: 1, 96>}, {transform_indices = @transform_3, window_bounds = array<i64: 1, 1024, 96>}]} {
    %c0 = arith.constant 0 : index
    %c0_0 = arith.constant 0 : index
    %c0_1 = arith.constant 0 : index
    %0 = vector.load %arg2[%c0, %c0_0, %c0_1] : memref<1x96x1024xf32, #tpu.memory_space<vmem>>, vector<1x96x1024xf32>
    %1 = vector.shape_cast %0 : vector<1x96x1024xf32> to vector<96x1024xf32>
    %2 = tpu.transpose %1, [1, 0] : vector<96x1024xf32> -> vector<1024x96xf32>
    %cst = arith.constant dense<0.000000e+00> : vector<1024xf32>
    %3 = vector.multi_reduction <add>, %2, %cst [1] : vector<1024x96xf32> to vector<1024xf32>
    %4 = vector.shape_cast %3 : vector<1024xf32> to vector<1024x1xf32>
    %cst_2 = arith.constant 9.600000e+01 : f32
    %5 = vector.broadcast %cst_2 : f32 to vector<1024x1xf32>
    %6 = arith.divf %4, %5 : vector<1024x1xf32>
    %7 = vector.broadcast %6 : vector<1024x1xf32> to vector<1024x96xf32>
    %8 = arith.subf %2, %7 : vector<1024x96xf32>
    %9 = arith.mulf %8, %8 : vector<1024x96xf32>
    %cst_3 = arith.constant dense<0.000000e+00> : vector<1024xf32>
    %10 = vector.multi_reduction <add>, %9, %cst_3 [1] : vector<1024x96xf32> to vector<1024xf32>
    %11 = vector.shape_cast %10 : vector<1024xf32> to vector<1024x1xf32>
    %cst_4 = arith.constant 9.600000e+01 : f32
    %12 = vector.broadcast %cst_4 : f32 to vector<1024x1xf32>
    %13 = arith.divf %11, %12 : vector<1024x1xf32>
    %14 = vector.broadcast %6 : vector<1024x1xf32> to vector<1024x96xf32>
    %15 = arith.subf %2, %14 : vector<1024x96xf32>
    %cst_5 = arith.constant 9.99999974E-6 : f32
    %16 = vector.broadcast %cst_5 : f32 to vector<1024x1xf32>
    %17 = arith.addf %13, %16 : vector<1024x1xf32>
    %18 = math.rsqrt %17 : vector<1024x1xf32>
    %19 = vector.broadcast %18 : vector<1024x1xf32> to vector<1024x96xf32>
    %20 = arith.mulf %15, %19 : vector<1024x96xf32>
    %c0_6 = arith.constant 0 : index
    %c0_7 = arith.constant 0 : index
    %21 = vector.load %arg3[%c0_6, %c0_7] : memref<1x96xf32, #tpu.memory_space<vmem>>, vector<1x96xf32>
    %22 = vector.shape_cast %21 : vector<1x96xf32> to vector<96xf32>
    %23 = vector.shape_cast %22 : vector<96xf32> to vector<1x96xf32>
    %24 = vector.broadcast %23 : vector<1x96xf32> to vector<1024x96xf32>
    %25 = arith.mulf %20, %24 : vector<1024x96xf32>
    %c0_8 = arith.constant 0 : index
    %c0_9 = arith.constant 0 : index
    %26 = vector.load %arg4[%c0_8, %c0_9] : memref<1x96xf32, #tpu.memory_space<vmem>>, vector<1x96xf32>
    %27 = vector.shape_cast %26 : vector<1x96xf32> to vector<96xf32>
    %28 = vector.shape_cast %27 : vector<96xf32> to vector<1x96xf32>
    %29 = vector.broadcast %28 : vector<1x96xf32> to vector<1024x96xf32>
    %30 = arith.addf %25, %29 : vector<1024x96xf32>
    %c0_10 = arith.constant 0 : index
    %c0_11 = arith.constant 0 : index
    %c0_12 = arith.constant 0 : index
    %31 = vector.load %arg5[%c0_10, %c0_11, %c0_12] : memref<1x1024x96xf32, #tpu.memory_space<vmem>>, vector<1x1024x96xf32>
    %32 = vector.shape_cast %31 : vector<1x1024x96xf32> to vector<1024x96xf32>
    %33 = vector.shape_cast %30 : vector<1024x96xf32> to vector<1x1024x96xf32>
    tpu.vector_store %arg5[%c0_10, %c0_11, %c0_12], %33 {strides = array<i32>} : memref<1x1024x96xf32, #tpu.memory_space<vmem>>, vector<1x1024x96xf32>,
    return
  }
  func.func @transform_0(%arg0: i32, %arg1: i32) -> (i32, i32, i32) {
    %c0_i32 = arith.constant 0 : i32
    %c0_i32_0 = arith.constant 0 : i32
    return %arg0, %c0_i32, %arg1 : i32, i32, i32
  }
  func.func @transform_1(%arg0: i32, %arg1: i32) -> (i32, i32) {
    %c0_i32 = arith.constant 0 : i32
    %c0_i32_0 = arith.constant 0 : i32
    %c0_i32_1 = arith.constant 0 : i32
    return %c0_i32, %c0_i32_0 : i32, i32
  }
  func.func @transform_2(%arg0: i32, %arg1: i32) -> (i32, i32) {
    %c0_i32 = arith.constant 0 : i32
    %c0_i32_0 = arith.constant 0 : i32
    %c0_i32_1 = arith.constant 0 : i32
    return %c0_i32, %c0_i32_0 : i32, i32
  }
  func.func @transform_3(%arg0: i32, %arg1: i32) -> (i32, i32, i32) {
    %c0_i32 = arith.constant 0 : i32
    %c0_i32_0 = arith.constant 0 : i32
    return %arg0, %arg1, %c0_i32 : i32, i32, i32
  }
}

</mosaic_0001>

<bundles_post_ra>
// kernel: tpu_custom_call.1
= control target key start
LH: loop header
LB: loop body
LE: loop exit
PB: predicated region body
PF: predicated region fallthrough
CT: control target
= control target key end

     0   :  { %8 = vsyncpa [#allocation3], 0  ;;  %s5885_s0 = inlined_call_operand.hbm [shape: f32[2,96,1024], index: 0, kind: input, shape index: {}]   ;;  %s5886_s1 = inlined_call_operand.vmem [shape: f32[1,96], index: 1, kind: input, shape index: {}]   ;;  %s5887_s2 = inlined_call_operand.vmem [shape: f32[1,96], index: 2, kind: input, shape index: {}]   ;;  %s5888_s3 = inlined_call_operand.vmem [shape: f32[2,1024,96], index: 3, kind: output, shape index: {}]  }
   0x1   :  { %10 = vsyncpa [#allocation3 + $0x1], 0  ;;  %s3169_s12 = smov 0   ;;  %s3171_s13 = smov 0  }
   0x2   :  { %s3173_s14 = smov 0   ;;  %s3175_s15 = smov 0  }
   0x3   :  { %s3177_s16 = smov 0   ;;  %s3179_s17 = smov 0  }
   0x4 LB: > { %s2730_s18 = sadd.s32 4294967295, %s3144_s17   ;;  %s28_s19 = sadd.s32 1, %s3140_s16  ;;  %s3144_s17 = sphi %s3179_s17, %s16_s17   ;;  %s3140_s16 = sphi %s3177_s16, %s6641_s16   ;;  %s3136_s15 = sphi %s3175_s15, %s6640_s15   ;;  %s3132_s14 = sphi %s3173_s14, %s6639_s14   ;;  %s3128_s13 = sphi %s3171_s13, %s6638_s13   ;;  %s3124_s12 = sphi %s3169_s12, %s6637_s12  }
   0x5   : > { %p30_p0 = scmp.ge.s32.totalorder %s28_s19, 2  ;;  %s37_s20 = sadd.s32 1, %s3132_s14 }
   0x6   : > { %p44_p1 = scmp.ne.s32.totalorder %s3132_s14, %s3128_s13  ;;  %p45_p2 = scmp.eq.s32.totalorder %s3144_s17, 0 }
   0x7   : > { %s6643_s19 = smov (%p30_p0, %s28_s19), 0  ;;  %p50_p4 = scmp.ne.s32.totalorder %s3128_s13, %s3124_s12 }
   0x8   : > { %p46_p3 = por %p45_p2, %p44_p1  ;;  %s32_s21 = ssub.s32 %s3140_s16, %s6643_s19 }
   0x9   : > { %p51_p5 = scmp.eq.s32.totalorder %s2730_s18, 0  ;;  %p35_p6 = scmp.eq.s32.totalorder %s32_s21, 0 }
   0xa   : > { %p2752_p8 = scmp.lt.s32.totalorder %s3144_s17, 2  ;;  %s150_s24 = sand.u32 1, %s3132_s14  }
   0xb   : > { %p3208_p7 = por %p51_p5, %p50_p4  ;;  %s2744_s25 = smul.u32 12288, %s3140_s16 }
   0xc   : > { %s3214_s23 = scalar_select %p35_p6, %s3132_s14, %s37_s20  }
   0xd   : > { %s2743_s26 = smul.u32 768, %s150_s24  ;;  %s3221_s29 = scalar_lea.hbm %s5885_s0, %s2744_s25 }
   0xe   : > { %p3223_p9 = pnand %p2752_p8, %p46_p3  ;;  %s3229_s6 = scalar_lea.sflag [#allocation3], %s150_s24 }
   0xf   : > { %s154_s4 = scalar_lea.vmem [#allocation2], %s2743_s26  ;;  %s3064_s7 = scalar_lea.hbm %s3221_s29, 12288 }
  0x10   : > { %s163_s5 = sshll.u32 %s154_s4, 4  ;;  %p3065_p10 = scmp.ne.s32.totalorder %s3221_s29, %s3064_s7  ;;  %s3227_s5 = int_to_ptr.vmem [resolvable:$true] %s163_s5 }
  0x11   : > { %p3066_p11 = pneg %p3223_p9  ;;  %s3069_s10 = scalar_lea.hbm %s5885_s0, 24576 }
  0x12   : > { %p3070_p0 = scmp.lt.u32.totalorder %s3221_s29, %s5885_s0  ;;  %p3071_p1 = scmp.lt.u32.totalorder %s3069_s10, %s3064_s7 }
  0x13   : > { %p3067_p12 = pnand %p3066_p11, %p3065_p10  ;;  %p3073_p3 = scmp.lt.u32.totalorder %s3064_s7, %s3221_s29 }
  0x14   : > { %p3072_p2 = por %p3071_p1, %p3070_p0 }
  0x15   : > { %p3068_p13 = pneg %p3067_p12 }
  0x16   : > { %p3074_p4 = por %p3073_p3, %p3072_p2 }
  0x18   : > { %p3075_p5 = pnand %p3074_p4, %p3068_p13 }
  0x1a   : > { %3078 = shalt.err (!%p3075_p5)
}
  0x1b   : > { %s3079_s18 = scalar_lea.vmem %s3227_s5, 12288  ;;  %s3146_s20 = smov [#allocation2]  }
  0x1c   : > { %p3080_p6 = scmp.ne.s32.totalorder %s3227_s5, %s3079_s18  ;;  %s3084_s21 = sshll.u32 %s3146_s20, 4  ;;  %s3085_s21 = int_to_ptr.vmem [resolvable:$false] %s3084_s21 }
  0x1d   : > { %s3086_s24 = scalar_lea.vmem %s3085_s21, 24576  ;;  %p3087_p12 = scmp.lt.s32.totalorder %s3227_s5, %s3085_s21 }
  0x1e   : > { %p3082_p8 = pnand %p3080_p6, %p3066_p11  ;;  %p3088_p0 = scmp.lt.s32.totalorder %s3086_s24, %s3079_s18 }
  0x20   : > { %p3083_p10 = pneg %p3082_p8  ;;  %p3089_p1 = por %p3088_p0, %p3087_p12 }
  0x22   : > { %p3090_p2 = pnand %p3089_p1, %p3083_p10 }
  0x24   : > { %3093 = shalt.err (!%p3090_p2)
}
  0x25   : > { %s3147_s25 = smov 1024   ;;  %s3148_s26 = smov 64  }
  0x26   : > { %2751 = dma.hbm_to_vmem [thread:$0]  (!%p3223_p9), %s3221_s29, 12288, %s3227_s5, %s3229_s6, %s3147_s25, %s3147_s25, %s3148_s26  }
  0x27   : > { %p2735_p11 = scmp.ge.s32.totalorder %s3144_s17, 1  ;;  %p171_p13 = scmp.lt.s32.totalorder %s3144_s17, 3 }
  0x29   : > { %p172_p3 = pnand %p2735_p11, %p171_p13 }
  0x2b   : > { %175 = sbr.rel (%p172_p3) target bundleno = 1015 (0x3f7), region = 32 }
  0x32   : > { %s177_s27 = sand.u32 1, %s3128_s13  }
  0x33   : > { %s2745_s28 = smul.u32 768, %s177_s27  ;;  %s178_s4 = scalar_lea.sflag [#allocation3], %s177_s27 }
  0x35   : > { %s3260_s7 = scalar_lea.vmem [#allocation2], %s2745_s28 }
  0x36   : > { %3119 = dma.done.wait (%p3208_p7), %s178_s4, 12288  }
  0x37   : > { %3121 = vsyncadd (%p3208_p7), %s178_s4, 4294955008  ;;  %v220_v0 = vld [vmem:[%s3260_s7 + $0x8] sm:$0xff]  ;;  %v219_v1 = vld [vmem:[%s3260_s7] sm:$0xff]  ;;  %vm571_vm0 = vcmask 785408   ;;  %p210_p7 = scmp.lt.s32.totalorder %s3136_s15, 1 }
  0x38   : > { %347 = vxpose.xlu1.b32.start [1/12] (short) %v220_v0, 128  ;;  %315 = vxpose.xlu0.b32.start [1/12] (short) %v219_v1, 128  ;;  %v228_v2 = vld [vmem:[%s3260_s7 + $0x48] sm:$0xff]  ;;  %v227_v3 = vld [vmem:[%s3260_s7 + $0x40] sm:$0xff]  ;;  %v222_v24 = vld [vmem:[%s3260_s7 + $0x18] sm:$0xff] }
  0x39   : > { %v236_v4 = vld [vmem:[%s3260_s7 + $0x88] sm:$0xff]  ;;  %v235_v5 = vld [vmem:[%s3260_s7 + $0x80] sm:$0xff]  ;;  %v221_v25 = vld [vmem:[%s3260_s7 + $0x10] sm:$0xff]  ;;  %s6645_s15 = smov (!%p210_p7, %s3136_s15), 1 }
  0x3a   : > { %v244_v6 = vld [vmem:[%s3260_s7 + $0xc8] sm:$0xff]  ;;  %v243_v7 = vld [vmem:[%s3260_s7 + $0xc0] sm:$0xff]  ;;  %v230_v26 = vld [vmem:[%s3260_s7 + $0x58] sm:$0xff]  ;;  %s2742_s30 = sshll.u32 %s6645_s15, 10 }
  0x3b   : > { %v252_v8 = vld [vmem:[%s3260_s7 + $0x108] sm:$0xff]  ;;  %v251_v9 = vld [vmem:[%s3260_s7 + $0x100] sm:$0xff]  ;;  %v229_v27 = vld [vmem:[%s3260_s7 + $0x50] sm:$0xff]  ;;  %s4971_s9 = scalar_lea.vmem %s5888_s3, %s2742_s30 }
  0x3c   : > { %348 = vxpose.xlu1.b32.cont [2/12] (short) %v228_v2, 128  ;;  %316 = vxpose.xlu0.b32.cont [2/12] (short) %v227_v3, 128  ;;  %v260_v10 = vld [vmem:[%s3260_s7 + $0x148] sm:$0xff]  ;;  %v259_v11 = vld [vmem:[%s3260_s7 + $0x140] sm:$0xff]  ;;  %v238_v28 = vld [vmem:[%s3260_s7 + $0x98] sm:$0xff] }
  0x3d   : > { %v268_v12 = vld [vmem:[%s3260_s7 + $0x188] sm:$0xff]  ;;  %v267_v13 = vld [vmem:[%s3260_s7 + $0x180] sm:$0xff]  ;;  %v237_v29 = vld [vmem:[%s3260_s7 + $0x90] sm:$0xff] }
  0x3e   : > { %v276_v14 = vld [vmem:[%s3260_s7 + $0x1c8] sm:$0xff]  ;;  %v275_v15 = vld [vmem:[%s3260_s7 + $0x1c0] sm:$0xff]  ;;  %v246_v30 = vld [vmem:[%s3260_s7 + $0xd8] sm:$0xff] }
  0x3f   : > { %v284_v16 = vld [vmem:[%s3260_s7 + $0x208] sm:$0xff]  ;;  %v283_v17 = vld [vmem:[%s3260_s7 + $0x200] sm:$0xff]  ;;  %v245_v31 = vld [vmem:[%s3260_s7 + $0xd0] sm:$0xff] }
  0x40   : > { %349 = vxpose.xlu1.b32.cont [3/12] (short) %v236_v4, 128  ;;  %317 = vxpose.xlu0.b32.cont [3/12] (short) %v235_v5, 128  ;;  %v292_v18 = vld [vmem:[%s3260_s7 + $0x248] sm:$0xff]  ;;  %v291_v19 = vld [vmem:[%s3260_s7 + $0x240] sm:$0xff]  ;;  %v254_v32 = vld [vmem:[%s3260_s7 + $0x118] sm:$0xff] }
  0x41   : > { %v300_v20 = vld [vmem:[%s3260_s7 + $0x288] sm:$0xff]  ;;  %v299_v21 = vld [vmem:[%s3260_s7 + $0x280] sm:$0xff]  ;;  %v253_v33 = vld [vmem:[%s3260_s7 + $0x110] sm:$0xff] }
  0x42   : > { %v308_v22 = vld [vmem:[%s3260_s7 + $0x2c8] sm:$0xff]  ;;  %v307_v23 = vld [vmem:[%s3260_s7 + $0x2c0] sm:$0xff]  ;;  %v262_v34 = vld [vmem:[%s3260_s7 + $0x158] sm:$0xff] }
  0x43   : > { %v261_v35 = vld [vmem:[%s3260_s7 + $0x150] sm:$0xff]  ;;  %v270_v36 = vld [vmem:[%s3260_s7 + $0x198] sm:$0xff]  ;;  %v224_v48 = vld [vmem:[%s3260_s7 + $0x28] sm:$0xff] }
  0x44   : > { %350 = vxpose.xlu1.b32.cont [4/12] (short) %v244_v6, 128  ;;  %318 = vxpose.xlu0.b32.cont [4/12] (short) %v243_v7, 128  ;;  %v269_v37 = vld [vmem:[%s3260_s7 + $0x190] sm:$0xff]  ;;  %v278_v38 = vld [vmem:[%s3260_s7 + $0x1d8] sm:$0xff]  ;;  %v223_v49 = vld [vmem:[%s3260_s7 + $0x20] sm:$0xff] }
  0x45   : > { %v277_v39 = vld [vmem:[%s3260_s7 + $0x1d0] sm:$0xff]  ;;  %v286_v40 = vld [vmem:[%s3260_s7 + $0x218] sm:$0xff]  ;;  %v232_v50 = vld [vmem:[%s3260_s7 + $0x68] sm:$0xff] }
  0x46   : > { %v285_v41 = vld [vmem:[%s3260_s7 + $0x210] sm:$0xff]  ;;  %v294_v42 = vld [vmem:[%s3260_s7 + $0x258] sm:$0xff]  ;;  %v231_v51 = vld [vmem:[%s3260_s7 + $0x60] sm:$0xff] }
  0x47   : > { %v293_v43 = vld [vmem:[%s3260_s7 + $0x250] sm:$0xff]  ;;  %v302_v44 = vld [vmem:[%s3260_s7 + $0x298] sm:$0xff]  ;;  %v240_v52 = vld [vmem:[%s3260_s7 + $0xa8] sm:$0xff] }
  0x48   : > { %351 = vxpose.xlu1.b32.cont [5/12] (short) %v252_v8, 128  ;;  %319 = vxpose.xlu0.b32.cont [5/12] (short) %v251_v9, 128  ;;  %v301_v45 = vld [vmem:[%s3260_s7 + $0x290] sm:$0xff]  ;;  %v310_v46 = vld [vmem:[%s3260_s7 + $0x2d8] sm:$0xff]  ;;  %v239_v53 = vld [vmem:[%s3260_s7 + $0xa0] sm:$0xff] }
  0x49   : > { %v309_v47 = vld [vmem:[%s3260_s7 + $0x2d0] sm:$0xff]  ;;  %v248_v56 = vld [vmem:[%s3260_s7 + $0xe8] sm:$0xff]  ;;  %v247_v57 = vld [vmem:[%s3260_s7 + $0xe0] sm:$0xff] }
  0x4a   : > { %v256_v60 = vld [vmem:[%s3260_s7 + $0x128] sm:$0xff]  ;;  %v255_v61 = vld [vmem:[%s3260_s7 + $0x120] sm:$0xff] }
  0x4b   : > { %v264_v0 = vld [vmem:[%s3260_s7 + $0x168] sm:$0xff]  ;;  %v263_v1 = vld [vmem:[%s3260_s7 + $0x160] sm:$0xff] }
  0x4c   : > { %352 = vxpose.xlu1.b32.cont [6/12] (short) %v260_v10, 128  ;;  %320 = vxpose.xlu0.b32.cont [6/12] (short) %v259_v11, 128  ;;  %v272_v4 = vld [vmem:[%s3260_s7 + $0x1a8] sm:$0xff]  ;;  %v271_v5 = vld [vmem:[%s3260_s7 + $0x1a0] sm:$0xff] }
  0x4d   : > { %v280_v8 = vld [vmem:[%s3260_s7 + $0x1e8] sm:$0xff]  ;;  %v279_v9 = vld [vmem:[%s3260_s7 + $0x1e0] sm:$0xff] }
  0x50   : > { %353 = vxpose.xlu1.b32.cont [7/12] (short) %v268_v12, 128  ;;  %321 = vxpose.xlu0.b32.cont [7/12] (short) %v267_v13, 128  ;;  %v288_v12 = vld [vmem:[%s3260_s7 + $0x228] sm:$0xff]  ;;  %v287_v13 = vld [vmem:[%s3260_s7 + $0x220] sm:$0xff] }
  0x54   : > { %354 = vxpose.xlu1.b32.cont [8/12] (short) %v276_v14, 128  ;;  %322 = vxpose.xlu0.b32.cont [8/12] (short) %v275_v15, 128 }
  0x58   : > { %355 = vxpose.xlu1.b32.cont [9/12] (short) %v284_v16, 128  ;;  %323 = vxpose.xlu0.b32.cont [9/12] (short) %v283_v17, 128  ;;  %v296_v16 = vld [vmem:[%s3260_s7 + $0x268] sm:$0xff]  ;;  %v295_v17 = vld [vmem:[%s3260_s7 + $0x260] sm:$0xff] }
  0x5c   : > { %356 = vxpose.xlu1.b32.cont [10/12] (short) %v292_v18, 128  ;;  %324 = vxpose.xlu0.b32.cont [10/12] (short) %v291_v19, 128 }
  0x60   : > { %357 = vxpose.xlu1.b32.cont [11/12] (short) %v300_v20, 128  ;;  %325 = vxpose.xlu0.b32.cont [11/12] (short) %v299_v21, 128  ;;  %v304_v20 = vld [vmem:[%s3260_s7 + $0x2a8] sm:$0xff]  ;;  %v303_v21 = vld [vmem:[%s3260_s7 + $0x2a0] sm:$0xff] }
  0x64   : > { %358 = vxpose.xlu1.b32.end [12/12] (short) %v308_v22, 128  ;;  %326 = vxpose.xlu0.b32.end [12/12] (short) %v307_v23, 128 }
  0x75   : > { %411 = vxpose.xlu1.b32.start [1/12] (short) %v222_v24, 128  ;;  %379 = vxpose.xlu0.b32.start [1/12] (short) %v221_v25, 128  ;;  %v312_v24 = vld [vmem:[%s3260_s7 + $0x2e8] sm:$0xff]  ;;  %v311_v25 = vld [vmem:[%s3260_s7 + $0x2e0] sm:$0xff] }
  0x79   : > { %412 = vxpose.xlu1.b32.cont [2/12] (short) %v230_v26, 128  ;;  %380 = vxpose.xlu0.b32.cont [2/12] (short) %v229_v27, 128 }
  0x7d   : > { %413 = vxpose.xlu1.b32.cont [3/12] (short) %v238_v28, 128  ;;  %381 = vxpose.xlu0.b32.cont [3/12] (short) %v237_v29, 128 }
  0x81   : > { %414 = vxpose.xlu1.b32.cont [4/12] (short) %v246_v30, 128  ;;  %382 = vxpose.xlu0.b32.cont [4/12] (short) %v245_v31, 128 }
  0x85   : > { %415 = vxpose.xlu1.b32.cont [5/12] (short) %v254_v32, 128  ;;  %383 = vxpose.xlu0.b32.cont [5/12] (short) %v253_v33, 128 }
  0x89   : > { %416 = vxpose.xlu1.b32.cont [6/12] (short) %v262_v34, 128  ;;  %384 = vxpose.xlu0.b32.cont [6/12] (short) %v261_v35, 128 }
  0x8d   : > { %417 = vxpose.xlu1.b32.cont [7/12] (short) %v270_v36, 128  ;;  %385 = vxpose.xlu0.b32.cont [7/12] (short) %v269_v37, 128  ;;  %v226_v36 = vld [vmem:[%s3260_s7 + $0x38] sm:$0xff]  ;;  %v225_v37 = vld [vmem:[%s3260_s7 + $0x30] sm:$0xff] }
  0x91   : > { %418 = vxpose.xlu1.b32.cont [8/12] (short) %v278_v38, 128  ;;  %386 = vxpose.xlu0.b32.cont [8/12] (short) %v277_v39, 128 }
  0x95   : > { %419 = vxpose.xlu1.b32.cont [9/12] (short) %v286_v40, 128  ;;  %387 = vxpose.xlu0.b32.cont [9/12] (short) %v285_v41, 128  ;;  %v234_v40 = vld [vmem:[%s3260_s7 + $0x78] sm:$0xff]  ;;  %v233_v41 = vld [vmem:[%s3260_s7 + $0x70] sm:$0xff] }
  0x99   : > { %420 = vxpose.xlu1.b32.cont [10/12] (short) %v294_v42, 128  ;;  %388 = vxpose.xlu0.b32.cont [10/12] (short) %v293_v43, 128 }
  0x9d   : > { %421 = vxpose.xlu1.b32.cont [11/12] (short) %v302_v44, 128  ;;  %389 = vxpose.xlu0.b32.cont [11/12] (short) %v301_v45, 128  ;;  %v242_v44 = vld [vmem:[%s3260_s7 + $0xb8] sm:$0xff]  ;;  %v241_v45 = vld [vmem:[%s3260_s7 + $0xb0] sm:$0xff] }
  0xa1   : > { %422 = vxpose.xlu1.b32.end [12/12] (short) %v310_v46, 128  ;;  %390 = vxpose.xlu0.b32.end [12/12] (short) %v309_v47, 128 }
  0xb2   : > { %475 = vxpose.xlu1.b32.start [1/12] (short) %v224_v48, 128  ;;  %443 = vxpose.xlu0.b32.start [1/12] (short) %v223_v49, 128  ;;  %v250_v48 = vld [vmem:[%s3260_s7 + $0xf8] sm:$0xff]  ;;  %v249_v49 = vld [vmem:[%s3260_s7 + $0xf0] sm:$0xff] }
  0xb6   : > { %476 = vxpose.xlu1.b32.cont [2/12] (short) %v232_v50, 128  ;;  %444 = vxpose.xlu0.b32.cont [2/12] (short) %v231_v51, 128 }
  0xb8   : > { %v3320_v54 = vpop.trf.xlu1  ;;  %v3322_v55 = vpop.trf.xlu0 }
  0xb9   : > { %6122 = vst [vmem:[#allocation5_spill] sm:$0xff] %v3320_v54 }
  0xba   : > { %477 = vxpose.xlu1.b32.cont [3/12] (short) %v240_v52, 128  ;;  %445 = vxpose.xlu0.b32.cont [3/12] (short) %v239_v53, 128  ;;  %v258_v52 = vld [vmem:[%s3260_s7 + $0x138] sm:$0xff]  ;;  %v257_v53 = vld [vmem:[%s3260_s7 + $0x130] sm:$0xff] }
  0xbc   : > { %v3326_v58 = vpop.trf.xlu1  ;;  %v3328_v59 = vpop.trf.xlu0 }
  0xbd   : > { %6123 = vst [vmem:[#allocation6_spill] sm:$0xff] %v3326_v58  ;;  %6124 = vst [vmem:[#allocation7_spill] sm:$0xff] %v3328_v59 }
  0xbe   : > { %478 = vxpose.xlu1.b32.cont [4/12] (short) %v248_v56, 128  ;;  %446 = vxpose.xlu0.b32.cont [4/12] (short) %v247_v57, 128 }
  0xc0   : > { %v3332_v62 = vpop.trf.xlu1  ;;  %v3334_v63 = vpop.trf.xlu0 }
  0xc1   : > { %6125 = vst [vmem:[#allocation8_spill] sm:$0xff] %v3332_v62  ;;  %6126 = vst [vmem:[#allocation9_spill] sm:$0xff] %v3334_v63 }
  0xc2   : > { %479 = vxpose.xlu1.b32.cont [5/12] (short) %v256_v60, 128  ;;  %447 = vxpose.xlu0.b32.cont [5/12] (short) %v255_v61, 128  ;;  %v266_v60 = vld [vmem:[%s3260_s7 + $0x178] sm:$0xff]  ;;  %v265_v61 = vld [vmem:[%s3260_s7 + $0x170] sm:$0xff] }
  0xc4   : > { %v3338_v2 = vpop.trf.xlu1  ;;  %v3340_v3 = vpop.trf.xlu0 }
  0xc5   : > { %6127 = vst [vmem:[#allocation10_spill] sm:$0xff] %v3338_v2  ;;  %6128 = vst [vmem:[#allocation11_spill] sm:$0xff] %v3340_v3 }
  0xc6   : > { %480 = vxpose.xlu1.b32.cont [6/12] (short) %v264_v0, 128  ;;  %448 = vxpose.xlu0.b32.cont [6/12] (short) %v263_v1, 128 }
  0xc8   : > { %v3344_v6 = vpop.trf.xlu1  ;;  %v3346_v7 = vpop.trf.xlu0 }
  0xc9   : > { %6129 = vst [vmem:[#allocation12_spill] sm:$0xff] %v3344_v6  ;;  %6130 = vst [vmem:[#allocation13_spill] sm:$0xff] %v3346_v7 }
  0xca   : > { %481 = vxpose.xlu1.b32.cont [7/12] (short) %v272_v4, 128  ;;  %449 = vxpose.xlu0.b32.cont [7/12] (short) %v271_v5, 128  ;;  %v274_v4 = vld [vmem:[%s3260_s7 + $0x1b8] sm:$0xff]  ;;  %v273_v5 = vld [vmem:[%s3260_s7 + $0x1b0] sm:$0xff] }
  0xcc   : > { %v3350_v10 = vpop.trf.xlu1  ;;  %v3352_v11 = vpop.trf.xlu0 }
  0xcd   : > { %6131 = vst [vmem:[#allocation14_spill] sm:$0xff] %v3350_v10  ;;  %6132 = vst [vmem:[#allocation15_spill] sm:$0xff] %v3352_v11 }
  0xce   : > { %482 = vxpose.xlu1.b32.cont [8/12] (short) %v280_v8, 128  ;;  %450 = vxpose.xlu0.b32.cont [8/12] (short) %v279_v9, 128 }
  0xd0   : > { %v3356_v14 = vpop.trf.xlu1  ;;  %v3358_v15 = vpop.trf.xlu0 }
  0xd1   : > { %6133 = vst [vmem:[#allocation16_spill] sm:$0xff] %v3356_v14  ;;  %6134 = vst [vmem:[#allocation17_spill] sm:$0xff] %v3358_v15 }
  0xd2   : > { %483 = vxpose.xlu1.b32.cont [9/12] (short) %v288_v12, 128  ;;  %451 = vxpose.xlu0.b32.cont [9/12] (short) %v287_v13, 128  ;;  %v282_v12 = vld [vmem:[%s3260_s7 + $0x1f8] sm:$0xff]  ;;  %v281_v13 = vld [vmem:[%s3260_s7 + $0x1f0] sm:$0xff] }
  0xd4   : > { %v3362_v18 = vpop.trf.xlu1  ;;  %v3364_v19 = vpop.trf.xlu0 }
  0xd5   : > { %6135 = vst [vmem:[#allocation18_spill] sm:$0xff] %v3362_v18 }
  0xd6   : > { %484 = vxpose.xlu1.b32.cont [10/12] (short) %v296_v16, 128  ;;  %452 = vxpose.xlu0.b32.cont [10/12] (short) %v295_v17, 128 }
  0xd8   : > { %v3368_v22 = vpop.trf.xlu1  ;;  %v3370_v23 = vpop.trf.xlu0 }
  0xd9   : > { %6136 = vst [vmem:[#allocation19_spill] sm:$0xff] %v3368_v22  ;;  %6137 = vst [vmem:[#allocation20_spill] sm:$0xff] %v3370_v23 }
  0xda   : > { %485 = vxpose.xlu1.b32.cont [11/12] (short) %v304_v20, 128  ;;  %453 = vxpose.xlu0.b32.cont [11/12] (short) %v303_v21, 128  ;;  %v290_v20 = vld [vmem:[%s3260_s7 + $0x238] sm:$0xff]  ;;  %v289_v21 = vld [vmem:[%s3260_s7 + $0x230] sm:$0xff] }
  0xdc   : > { %v3374_v26 = vpop.trf.xlu1  ;;  %v3376_v27 = vpop.trf.xlu0 }
  0xdd   : > { %6138 = vst [vmem:[#allocation21_spill] sm:$0xff] %v3374_v26  ;;  %6139 = vst [vmem:[#allocation22_spill] sm:$0xff] %v3376_v27 }
  0xde   : > { %486 = vxpose.xlu1.b32.end [12/12] (short) %v312_v24, 128  ;;  %454 = vxpose.xlu0.b32.end [12/12] (short) %v311_v25, 128 }
  0xe0   : > { %v3378_v28 = vpop.trf.xlu1  ;;  %v3380_v29 = vpop.trf.xlu0 }
  0xe1   : > { %6140 = vst [vmem:[#allocation23_spill] sm:$0xff] %v3378_v28  ;;  %6141 = vst [vmem:[#allocation24_spill] sm:$0xff] %v3380_v29 }
  0xe4   : > { %v3382_v30 = vpop.trf.xlu1  ;;  %v3384_v31 = vpop.trf.xlu0 }
  0xe5   : > { %6142 = vst [vmem:[#allocation25_spill] sm:$0xff] %v3382_v30  ;;  %6143 = vst [vmem:[#allocation26_spill] sm:$0xff] %v3384_v31 }
  0xe8   : > { %v3386_v32 = vpop.trf.xlu1  ;;  %v3388_v33 = vpop.trf.xlu0 }
  0xe9   : > { %6144 = vst [vmem:[#allocation27_spill] sm:$0xff] %v3386_v32  ;;  %6145 = vst [vmem:[#allocation28_spill] sm:$0xff] %v3388_v33 }
  0xec   : > { %v3390_v34 = vpop.trf.xlu1  ;;  %v3392_v35 = vpop.trf.xlu0 }
  0xed   : > { %6146 = vst [vmem:[#allocation29_spill] sm:$0xff] %v3390_v34  ;;  %6147 = vst [vmem:[#allocation30_spill] sm:$0xff] %v3392_v35 }
  0xf0   : > { %v3396_v38 = vpop.trf.xlu1  ;;  %539 = vxpose.xlu1.b32.start [1/12] (short) %v226_v36, 128  ;;  %v3398_v39 = vpop.trf.xlu0  ;;  %507 = vxpose.xlu0.b32.start [1/12] (short) %v225_v37, 128  ;;  %v298_v36 = vld [vmem:[%s3260_s7 + $0x278] sm:$0xff]  ;;  %v297_v37 = vld [vmem:[%s3260_s7 + $0x270] sm:$0xff] }
  0xf1   : > { %6148 = vst [vmem:[#allocation31_spill] sm:$0xff] %v3396_v38  ;;  %6149 = vst [vmem:[#allocation32_spill] sm:$0xff] %v3398_v39 }
  0xf4   : > { %540 = vxpose.xlu1.b32.cont [2/12] (short) %v234_v40, 128  ;;  %508 = vxpose.xlu0.b32.cont [2/12] (short) %v233_v41, 128  ;;  %v3402_v42 = vpop.trf.xlu1  ;;  %v3404_v43 = vpop.trf.xlu0 }
  0xf5   : > { %6150 = vst [vmem:[#allocation33_spill] sm:$0xff] %v3402_v42  ;;  %6151 = vst [vmem:[#allocation34_spill] sm:$0xff] %v3404_v43 }
  0xf8   : > { %541 = vxpose.xlu1.b32.cont [3/12] (short) %v242_v44, 128  ;;  %509 = vxpose.xlu0.b32.cont [3/12] (short) %v241_v45, 128  ;;  %v3408_v46 = vpop.trf.xlu1  ;;  %v3410_v47 = vpop.trf.xlu0  ;;  %v306_v44 = vld [vmem:[%s3260_s7 + $0x2b8] sm:$0xff]  ;;  %v305_v45 = vld [vmem:[%s3260_s7 + $0x2b0] sm:$0xff] }
  0xf9   : > { %6152 = vst [vmem:[#allocation35_spill] sm:$0xff] %v3408_v46  ;;  %6153 = vst [vmem:[#allocation36_spill] sm:$0xff] %v3410_v47 }
  0xfc   : > { %542 = vxpose.xlu1.b32.cont [4/12] (short) %v250_v48, 128  ;;  %510 = vxpose.xlu0.b32.cont [4/12] (short) %v249_v49, 128  ;;  %v3414_v50 = vpop.trf.xlu1  ;;  %v3416_v51 = vpop.trf.xlu0 }
  0xfd   : > { %6154 = vst [vmem:[#allocation37_spill] sm:$0xff] %v3414_v50  ;;  %6155 = vst [vmem:[#allocation38_spill] sm:$0xff] %v3416_v51 }
 0x100   : > { %543 = vxpose.xlu1.b32.cont [5/12] (short) %v258_v52, 128  ;;  %511 = vxpose.xlu0.b32.cont [5/12] (short) %v257_v53, 128  ;;  %v3420_v56 = vpop.trf.xlu1  ;;  %v3422_v57 = vpop.trf.xlu0  ;;  %v314_v52 = vld [vmem:[%s3260_s7 + $0x2f8] sm:$0xff]  ;;  %v313_v53 = vld [vmem:[%s3260_s7 + $0x2f0] sm:$0xff] }
 0x101   : > { %6156 = vst [vmem:[#allocation39_spill] sm:$0xff] %v3420_v56  ;;  %6157 = vst [vmem:[#allocation40_spill] sm:$0xff] %v3422_v57 }
 0x104   : > { %544 = vxpose.xlu1.b32.cont [6/12] (short) %v266_v60, 128  ;;  %512 = vxpose.xlu0.b32.cont [6/12] (short) %v265_v61, 128  ;;  %v3426_v0 = vpop.trf.xlu1  ;;  %v3428_v1 = vpop.trf.xlu0 }
 0x105   : > { %6158 = vst [vmem:[#allocation41_spill] sm:$0xff] %v3426_v0  ;;  %6159 = vst [vmem:[#allocation42_spill] sm:$0xff] %v3428_v1 }
 0x108   : > { %545 = vxpose.xlu1.b32.cont [7/12] (short) %v274_v4, 128  ;;  %513 = vxpose.xlu0.b32.cont [7/12] (short) %v273_v5, 128  ;;  %v3432_v8 = vpop.trf.xlu1  ;;  %v3434_v9 = vpop.trf.xlu0 }
 0x109   : > { %6160 = vst [vmem:[#allocation43_spill] sm:$0xff] %v3432_v8  ;;  %6161 = vst [vmem:[#allocation44_spill] sm:$0xff] %v3434_v9 }
 0x10c   : > { %546 = vxpose.xlu1.b32.cont [8/12] (short) %v282_v12, 128  ;;  %514 = vxpose.xlu0.b32.cont [8/12] (short) %v281_v13, 128  ;;  %v3438_v16 = vpop.trf.xlu1  ;;  %v3440_v17 = vpop.trf.xlu0 }
 0x10d   : > { %6162 = vst [vmem:[#allocation45_spill] sm:$0xff] %v3438_v16  ;;  %6163 = vst [vmem:[#allocation46_spill] sm:$0xff] %v3440_v17 }
 0x110   : > { %547 = vxpose.xlu1.b32.cont [9/12] (short) %v290_v20, 128  ;;  %515 = vxpose.xlu0.b32.cont [9/12] (short) %v289_v21, 128  ;;  %v3444_v24 = vpop.trf.xlu1  ;;  %v3446_v25 = vpop.trf.xlu0 }
 0x111   : > { %6164 = vst [vmem:[#allocation47_spill] sm:$0xff] %v3444_v24  ;;  %6165 = vst [vmem:[#allocation48_spill] sm:$0xff] %v3446_v25 }
 0x114   : > { %548 = vxpose.xlu1.b32.cont [10/12] (short) %v298_v36, 128  ;;  %516 = vxpose.xlu0.b32.cont [10/12] (short) %v297_v37, 128  ;;  %v3450_v40 = vpop.trf.xlu1  ;;  %v3452_v41 = vpop.trf.xlu0 }
 0x115   : > { %6166 = vst [vmem:[#allocation49_spill] sm:$0xff] %v3450_v40  ;;  %6167 = vst [vmem:[#allocation50_spill] sm:$0xff] %v3452_v41 }
 0x118   : > { %549 = vxpose.xlu1.b32.cont [11/12] (short) %v306_v44, 128  ;;  %517 = vxpose.xlu0.b32.cont [11/12] (short) %v305_v45, 128  ;;  %v3456_v48 = vpop.trf.xlu1  ;;  %v3458_v49 = vpop.trf.xlu0 }
 0x119   : > { %6168 = vst [vmem:[#allocation51_spill] sm:$0xff] %v3456_v48  ;;  %6169 = vst [vmem:[#allocation52_spill] sm:$0xff] %v3458_v49 }
 0x11c   : > { %550 = vxpose.xlu1.b32.end [12/12] (short) %v314_v52, 128  ;;  %518 = vxpose.xlu0.b32.end [12/12] (short) %v313_v53, 128  ;;  %v3462_v60 = vpop.trf.xlu1  ;;  %v3464_v61 = vpop.trf.xlu0 }
 0x11d   : > { %6170 = vst [vmem:[#allocation53_spill] sm:$0xff] %v3462_v60  ;;  %6171 = vst [vmem:[#allocation54_spill] sm:$0xff] %v3464_v61 }
 0x120   : > { %v3466_v4 = vpop.trf.xlu1  ;;  %v3468_v5 = vpop.trf.xlu0 }
 0x121   : > { %6172 = vst [vmem:[#allocation55_spill] sm:$0xff] %v3466_v4  ;;  %6173 = vst [vmem:[#allocation56_spill] sm:$0xff] %v3468_v5 }
 0x124   : > { %v3470_v12 = vpop.trf.xlu1  ;;  %v3472_v13 = vpop.trf.xlu0 }
 0x125   : > { %6174 = vst [vmem:[#allocation57_spill] sm:$0xff] %v3470_v12  ;;  %6175 = vst [vmem:[#allocation58_spill] sm:$0xff] %v3472_v13 }
 0x128   : > { %v3474_v20 = vpop.trf.xlu1  ;;  %v3476_v21 = vpop.trf.xlu0 }
 0x129   : > { %6176 = vst [vmem:[#allocation59_spill] sm:$0xff] %v3474_v20  ;;  %6177 = vst [vmem:[#allocation60_spill] sm:$0xff] %v3476_v21 }
 0x12c   : > { %v3478_v36 = vpop.trf.xlu1  ;;  %v3480_v37 = vpop.trf.xlu0 }
 0x12d   : > { %6178 = vst [vmem:[#allocation61_spill] sm:$0xff] %v3478_v36  ;;  %6179 = vst [vmem:[#allocation62_spill] sm:$0xff] %v3480_v37 }
 0x130   : > { %v3482_v44 = vpop.trf.xlu1  ;;  %v3484_v45 = vpop.trf.xlu0 }
 0x131   : > { %6180 = vst [vmem:[#allocation63_spill] sm:$0xff] %v3482_v44  ;;  %6181 = vst [vmem:[#allocation64_spill] sm:$0xff] %v3484_v45 }
 0x134   : > { %v3486_v52 = vpop.trf.xlu1  ;;  %v3488_v53 = vpop.trf.xlu0 }
 0x135   : > { %6182 = vst [vmem:[#allocation65_spill] sm:$0xff] %v3486_v52  ;;  %6183 = vst [vmem:[#allocation66_spill] sm:$0xff] %v3488_v53 }
 0x138   : > { %v3490_v4 = vpop.trf.xlu1  ;;  %v3492_v12 = vpop.trf.xlu0 }
 0x139   : > { %6184 = vst [vmem:[#allocation67_spill] sm:$0xff] %v3490_v4  ;;  %6185 = vst [vmem:[#allocation68_spill] sm:$0xff] %v3492_v12 }
 0x13c   : > { %v3494_v60 = vpop.trf.xlu1  ;;  %v3496_v20 = vpop.trf.xlu0 }
 0x13d   : > { %6186 = vst [vmem:[#allocation69_spill] sm:$0xff] %v3494_v60  ;;  %6187 = vst [vmem:[#allocation70_spill] sm:$0xff] %v3496_v20 }
 0x140   : > { %v3498_v48 = vpop.trf.xlu1  ;;  %v3500_v36 = vpop.trf.xlu0 }
 0x141   : > { %6188 = vst [vmem:[#allocation71_spill] sm:$0xff] %v3498_v48  ;;  %6189 = vst [vmem:[#allocation72_spill] sm:$0xff] %v3500_v36  ;;  %v575_v48 = vsel %vm571_vm0, %v3328_v59, 0.0  ;;  %v581_v59 = vsel %vm571_vm0, %v3340_v3, 0.0 }
 0x144   : > { %v3502_v40 = vpop.trf.xlu1  ;;  %v3504_v44 = vpop.trf.xlu0 }
 0x145   : > { %6190 = vst [vmem:[#allocation73_spill] sm:$0xff] %v3502_v40  ;;  %6191 = vst [vmem:[#allocation74_spill] sm:$0xff] %v3504_v44 }
 0x148   : > { %v3506_v24 = vpop.trf.xlu1  ;;  %v3508_v52 = vpop.trf.xlu0 }
 0x149   : > { %6192 = vst [vmem:[#allocation75_spill] sm:$0xff] %v3506_v24  ;;  %6193 = vst [vmem:[#allocation76_spill] sm:$0xff] %v3508_v52  ;;  %v578_v24 = vsel %vm571_vm0, %v3334_v63, 0.0  ;;  %v590_v63 = vsel %vm571_vm0, %v3358_v15, 0.0  ;;  %v602_v15 = vsel %vm571_vm0, %v3380_v29, 0.0  ;;  %v614_v29 = vsel %vm571_vm0, %v3398_v39, 0.0 }
 0x14c   : > { %v3510_v16 = vpop.trf.xlu1  ;;  %v3512_v4 = vpop.trf.xlu0 }
 0x14d   : > { %6194 = vst [vmem:[#allocation77_spill] sm:$0xff] %v3510_v16  ;;  %6195 = vst [vmem:[#allocation78_spill] sm:$0xff] %v3512_v4  ;;  %v572_v16 = vsel %vm571_vm0, %v3322_v55, 0.0 }
 0x150   : > { %v3514_v12 = vpop.trf.xlu1  ;;  %v3516_v60 = vpop.trf.xlu0 }
 0x151   : > { %6196 = vst [vmem:[#allocation79_spill] sm:$0xff] %v3514_v12  ;;  %6197 = vst [vmem:[#allocation80_spill] sm:$0xff] %v3516_v60 }
 0x153   : > { %576 = vadd.xlane.f32.xlu1 %v575_v48  ;;  %v584_v48 = vsel %vm571_vm0, %v3346_v7, 0.0  ;;  %v596_v7 = vsel %vm571_vm0, %v3370_v23, 0.0  ;;  %v608_v23 = vsel %vm571_vm0, %v3388_v33, 0.0 }
 0x154   : > { %v3520_v40 = vpop.trf.xlu1  ;;  %v3522_v44 = vpop.trf.xlu0 }
 0x155   : > { %6198 = vst [vmem:[#allocation81_spill] sm:$0xff] %v3520_v40  ;;  %6199 = vst [vmem:[#allocation82_spill] sm:$0xff] %v3522_v44 }
 0x157   : > { %579 = vadd.xlane.f32.xlu1 %v578_v24  ;;  %v587_v24 = vsel %vm571_vm0, %v3352_v11, 0.0 }
 0x158   : > { %v3528_v4 = vpop.trf.xlu1  ;;  %v3530_v12 = vpop.trf.xlu0 }
 0x159   : > { %6200 = vst [vmem:[#allocation83_spill] sm:$0xff] %v3528_v4  ;;  %6201 = vst [vmem:[#allocation84_spill] sm:$0xff] %v3530_v12  ;;  %573 = vadd.xlane.f32.xlu0 %v572_v16 }
 0x15b   : > { %582 = vadd.xlane.f32.xlu1 %v581_v59  ;;  %v593_v59 = vsel %vm571_vm0, %v3364_v19, 0.0 }
 0x15c   : > { %v3536_v40 = vpop.trf.xlu1  ;;  %v3538_v44 = vpop.trf.xlu0 }
 0x15d   : > { %6202 = vst [vmem:[#allocation85_spill] sm:$0xff] %v3536_v40  ;;  %6203 = vst [vmem:[#allocation86_spill] sm:$0xff] %v3538_v44  ;;  %585 = vadd.xlane.f32.xlu0 %v584_v48 }
 0x15f   : > { %588 = vadd.xlane.f32.xlu1 %v587_v24  ;;  %v599_v24 = vsel %vm571_vm0, %v3376_v27, 0.0 }
 0x160   : > { %v3544_v16 = vpop.trf.xlu1  ;;  %v3548_v3 = vpop.trf.xlu0 }
 0x161   : > { %6204 = vst [vmem:[#allocation87_spill] sm:$0xff] %v3544_v16  ;;  %591 = vadd.xlane.f32.xlu0 %v590_v63  ;;  %6205 = vst [vmem:[#allocation88_spill] sm:$0xff] %v3548_v3 }
 0x163   : > { %594 = vadd.xlane.f32.xlu1 %v593_v59  ;;  %v605_v59 = vsel %vm571_vm0, %v3384_v31, 0.0 }
 0x164   : > { %v3552_v48 = vpop.trf.xlu1  ;;  %v3560_v11 = vpop.trf.xlu0 }
 0x165   : > { %6206 = vst [vmem:[#allocation89_spill] sm:$0xff] %v3552_v48  ;;  %597 = vadd.xlane.f32.xlu0 %v596_v7  ;;  %6208 = vst [vmem:[#allocation91_spill] sm:$0xff] %v3560_v11  ;;  %v611_v7 = vsel %vm571_vm0, %v3392_v35, 0.0  ;;  %v623_v35 = vsel %vm571_vm0, %v3326_v58, 0.0 }
 0x167   : > { %600 = vadd.xlane.f32.xlu1 %v599_v24 }
 0x168   : > { %v3558_v63 = vpop.trf.xlu1  ;;  %v3570_v27 = vpop.trf.xlu0 }
 0x169   : > { %6207 = vst [vmem:[#allocation90_spill] sm:$0xff] %v3558_v63  ;;  %603 = vadd.xlane.f32.xlu0 %v602_v15  ;;  %6210 = vst [vmem:[#allocation93_spill] sm:$0xff] %v3570_v27  ;;  %v617_v15 = vsel %vm571_vm0, %v3404_v43, 0.0 }
 0x16b   : > { %606 = vadd.xlane.f32.xlu1 %v605_v59  ;;  %v620_v59 = vsel %vm571_vm0, %v3320_v54, 0.0  ;;  %v632_v54 = vsel %vm571_vm0, %v3344_v6, 0.0 }
 0x16c   : > { %v3568_v24 = vpop.trf.xlu1  ;;  %v3580_v33 = vpop.trf.xlu0 }
 0x16d   : > { %609 = vadd.xlane.f32.xlu0 %v608_v23  ;;  %6209 = vst [vmem:[#allocation92_spill] sm:$0xff] %v3568_v24  ;;  %6212 = vst [vmem:[#allocation95_spill] sm:$0xff] %v3580_v33 }
 0x16f   : > { %612 = vadd.xlane.f32.xlu1 %v611_v7  ;;  %v626_v7 = vsel %vm571_vm0, %v3332_v62, 0.0 }
 0x170   : > { %v3578_v23 = vpop.trf.xlu1  ;;  %v3590_v43 = vpop.trf.xlu0 }
 0x171   : > { %615 = vadd.xlane.f32.xlu0 %v614_v29  ;;  %6211 = vst [vmem:[#allocation94_spill] sm:$0xff] %v3578_v23  ;;  %v629_v29 = vsel %vm571_vm0, %v3338_v2, 0.0  ;;  %6214 = vst [vmem:[#allocation97_spill] sm:$0xff] %v3590_v43  ;;  %v641_v2 = vsel %vm571_vm0, %v3362_v18, 0.0 }
 0x173   : > { %618 = vadd.xlane.f32.xlu1 %v617_v15 }
 0x174   : > { %v3588_v15 = vpop.trf.xlu1  ;;  %v3600_v62 = vpop.trf.xlu0 }
 0x175   : > { %621 = vadd.xlane.f32.xlu0 %v620_v59  ;;  %6213 = vst [vmem:[#allocation96_spill] sm:$0xff] %v3588_v15  ;;  %v635_v59 = vsel %vm571_vm0, %v3350_v10, 0.0  ;;  %6216 = vst [vmem:[#allocation99_spill] sm:$0xff] %v3600_v62 }
 0x177   : > { %624 = vadd.xlane.f32.xlu1 %v623_v35  ;;  %v638_v35 = vsel %vm571_vm0, %v3356_v14, 0.0  ;;  %v650_v14 = vsel %vm571_vm0, %v3378_v28, 0.0 }
 0x178   : > { %v3610_v10 = vpop.trf.xlu0 }
 0x179   : > { %627 = vadd.xlane.f32.xlu0 %v626_v7  ;;  %v3598_v7 = vpop.trf.xlu1  ;;  %6218 = vst [vmem:[#allocation101_spill] sm:$0xff] %v3610_v10 }
 0x17a   : > { %6215 = vst [vmem:[#allocation98_spill] sm:$0xff] %v3598_v7 }
 0x17b   : > { %630 = vadd.xlane.f32.xlu1 %v629_v29  ;;  %v644_v29 = vsel %vm571_vm0, %v3368_v22, 0.0 }
 0x17c   : > { %v3620_v22 = vpop.trf.xlu0 }
 0x17d   : > { %633 = vadd.xlane.f32.xlu0 %v632_v54  ;;  %v647_v54 = vsel %vm571_vm0, %v3374_v26, 0.0  ;;  %6220 = vst [vmem:[#allocation103_spill] sm:$0xff] %v3620_v22  ;;  %v659_v26 = vsel %vm571_vm0, %v3390_v34, 0.0 }
 0x17f   : > { %636 = vadd.xlane.f32.xlu1 %v635_v59  ;;  %v3608_v59 = vpop.trf.xlu1 }
 0x180   : > { %6217 = vst [vmem:[#allocation100_spill] sm:$0xff] %v3608_v59 }
 0x181   : > { %639 = vadd.xlane.f32.xlu0 %v638_v35  ;;  %v653_v35 = vsel %vm571_vm0, %v3382_v30, 0.0  ;;  %v3630_v30 = vpop.trf.xlu0 }
 0x182   : > { %6222 = vst [vmem:[#allocation105_spill] sm:$0xff] %v3630_v30 }
 0x183   : > { %642 = vadd.xlane.f32.xlu1 %v641_v2  ;;  %v656_v2 = vsel %vm571_vm0, %v3386_v32, 0.0  ;;  %v668_v32 = vsel %vm571_vm0, %v3410_v47, 0.0 }
 0x185   : > { %645 = vadd.xlane.f32.xlu0 %v644_v29  ;;  %v3618_v29 = vpop.trf.xlu1 }
 0x186   : > { %6219 = vst [vmem:[#allocation102_spill] sm:$0xff] %v3618_v29 }
 0x187   : > { %648 = vadd.xlane.f32.xlu1 %v647_v54  ;;  %v662_v54 = vsel %vm571_vm0, %v3396_v38, 0.0  ;;  %v3640_v38 = vpop.trf.xlu0 }
 0x188   : > { %6224 = vst [vmem:[#allocation107_spill] sm:$0xff] %v3640_v38 }
 0x189   : > { %651 = vadd.xlane.f32.xlu0 %v650_v14  ;;  %v665_v14 = vsel %vm571_vm0, %v3402_v42, 0.0  ;;  %v677_v42 = vsel %vm571_vm0, %v3428_v1, 0.0 }
 0x18b   : > { %654 = vadd.xlane.f32.xlu1 %v653_v35  ;;  %v3628_v35 = vpop.trf.xlu1 }
 0x18c   : > { %6221 = vst [vmem:[#allocation104_spill] sm:$0xff] %v3628_v35 }
 0x18d   : > { %657 = vadd.xlane.f32.xlu0 %v656_v2  ;;  %v671_v2 = vsel %vm571_vm0, %v3416_v51, 0.0  ;;  %v3650_v51 = vpop.trf.xlu0 }
 0x18e   : > { %6226 = vst [vmem:[#allocation109_spill] sm:$0xff] %v3650_v51 }
 0x18f   : > { %660 = vadd.xlane.f32.xlu1 %v659_v26  ;;  %v674_v26 = vsel %vm571_vm0, %v3422_v57, 0.0  ;;  %v686_v57 = vsel %vm571_vm0, %v3446_v25, 0.0 }
 0x191   : > { %663 = vadd.xlane.f32.xlu0 %v662_v54  ;;  %v3638_v54 = vpop.trf.xlu1 }
 0x192   : > { %6223 = vst [vmem:[#allocation106_spill] sm:$0xff] %v3638_v54 }
 0x193   : > { %666 = vadd.xlane.f32.xlu1 %v665_v14  ;;  %v680_v14 = vsel %vm571_vm0, %v3434_v9, 0.0  ;;  %v3660_v9 = vpop.trf.xlu0 }
 0x194   : > { %6228 = vst [vmem:[#allocation111_spill] sm:$0xff] %v3660_v9 }
 0x195   : > { %669 = vadd.xlane.f32.xlu0 %v668_v32  ;;  %v683_v32 = vsel %vm571_vm0, %v3440_v17, 0.0  ;;  %v695_v17 = vsel %vm571_vm0, %v3464_v61, 0.0 }
 0x197   : > { %672 = vadd.xlane.f32.xlu1 %v671_v2  ;;  %v3648_v2 = vpop.trf.xlu1 }
 0x198   : > { %6225 = vst [vmem:[#allocation108_spill] sm:$0xff] %v3648_v2 }
 0x199   : > { %675 = vadd.xlane.f32.xlu0 %v674_v26  ;;  %v689_v26 = vsel %vm571_vm0, %v3452_v41, 0.0  ;;  %v3670_v41 = vpop.trf.xlu0 }
 0x19a   : > { %6230 = vst [vmem:[#allocation113_spill] sm:$0xff] %v3670_v41 }
 0x19b   : > { %678 = vadd.xlane.f32.xlu1 %v677_v42  ;;  %v692_v42 = vsel %vm571_vm0, %v3458_v49, 0.0  ;;  %v704_v49 = vsel %vm571_vm0, %v3476_v21, 0.0 }
 0x19d   : > { %681 = vadd.xlane.f32.xlu0 %v680_v14  ;;  %v3658_v14 = vpop.trf.xlu1 }
 0x19e   : > { %6227 = vst [vmem:[#allocation110_spill] sm:$0xff] %v3658_v14 }
 0x19f   : > { %684 = vadd.xlane.f32.xlu1 %v683_v32  ;;  %v698_v32 = vsel %vm571_vm0, %v3468_v5, 0.0  ;;  %v3680_v5 = vpop.trf.xlu0 }
 0x1a0   : > { %6232 = vst [vmem:[#allocation115_spill] sm:$0xff] %v3680_v5 }
 0x1a1   : > { %687 = vadd.xlane.f32.xlu0 %v686_v57  ;;  %v701_v57 = vsel %vm571_vm0, %v3472_v13, 0.0  ;;  %v713_v13 = vsel %vm571_vm0, %v3488_v53, 0.0 }
 0x1a3   : > { %690 = vadd.xlane.f32.xlu1 %v689_v26  ;;  %v3668_v26 = vpop.trf.xlu1 }
 0x1a4   : > { %6229 = vst [vmem:[#allocation112_spill] sm:$0xff] %v3668_v26 }
 0x1a5   : > { %693 = vadd.xlane.f32.xlu0 %v692_v42  ;;  %v707_v42 = vsel %vm571_vm0, %v3480_v37, 0.0  ;;  %v3690_v37 = vpop.trf.xlu0 }
 0x1a6   : > { %6234 = vst [vmem:[#allocation117_spill] sm:$0xff] %v3690_v37 }
 0x1a7   : > { %696 = vadd.xlane.f32.xlu1 %v695_v17  ;;  %v710_v17 = vsel %vm571_vm0, %v3484_v45, 0.0  ;;  %v722_v45 = vsel %vm571_vm0, %v3420_v56, 0.0 }
 0x1a9   : > { %699 = vadd.xlane.f32.xlu0 %v698_v32  ;;  %v3678_v32 = vpop.trf.xlu1 }
 0x1aa   : > { %6231 = vst [vmem:[#allocation114_spill] sm:$0xff] %v3678_v32 }
 0x1ab   : > { %702 = vadd.xlane.f32.xlu1 %v701_v57  ;;  %v716_v57 = vsel %vm571_vm0, %v3408_v46, 0.0  ;;  %v3700_v46 = vpop.trf.xlu0 }
 0x1ac   : > { %6236 = vst [vmem:[#allocation119_spill] sm:$0xff] %v3700_v46 }
 0x1ad   : > { %705 = vadd.xlane.f32.xlu0 %v704_v49  ;;  %v719_v49 = vsel %vm571_vm0, %v3414_v50, 0.0  ;;  %v6237_v50 = vld [vmem:[#allocation45_spill] sm:$0xff] }
 0x1ae   : > { %v731_v53 = vsel %vm571_vm0, %v6237_v50, 0.0 }
 0x1af   : > { %708 = vadd.xlane.f32.xlu1 %v707_v42  ;;  %v3688_v42 = vpop.trf.xlu1  ;;  %v3710_v21 = vpop.trf.xlu0 }
 0x1b0   : > { %6233 = vst [vmem:[#allocation116_spill] sm:$0xff] %v3688_v42  ;;  %6241 = vst [vmem:[#allocation121_spill] sm:$0xff] %v3710_v21 }
 0x1b1   : > { %711 = vadd.xlane.f32.xlu0 %v710_v17  ;;  %v725_v17 = vsel %vm571_vm0, %v3426_v0, 0.0 }
 0x1b3   : > { %714 = vadd.xlane.f32.xlu1 %v713_v13  ;;  %v728_v13 = vsel %vm571_vm0, %v3432_v8, 0.0  ;;  %v6242_v8 = vld [vmem:[#allocation51_spill] sm:$0xff]  ;;  %v3720_v25 = vpop.trf.xlu0 }
 0x1b4   : > { %v740_v61 = vsel %vm571_vm0, %v6242_v8, 0.0  ;;  %6246 = vst [vmem:[#allocation123_spill] sm:$0xff] %v3720_v25 }
 0x1b5   : > { %717 = vadd.xlane.f32.xlu0 %v716_v57  ;;  %v3698_v57 = vpop.trf.xlu1 }
 0x1b6   : > { %6235 = vst [vmem:[#allocation118_spill] sm:$0xff] %v3698_v57 }
 0x1b7   : > { %720 = vadd.xlane.f32.xlu1 %v719_v49  ;;  %v6238_v49 = vld [vmem:[#allocation47_spill] sm:$0xff]  ;;  %v3730_v47 = vpop.trf.xlu0 }
 0x1b8   : > { %v734_v56 = vsel %vm571_vm0, %v6238_v49, 0.0  ;;  %6251 = vst [vmem:[#allocation125_spill] sm:$0xff] %v3730_v47 }
 0x1b9   : > { %723 = vadd.xlane.f32.xlu0 %v722_v45  ;;  %v6239_v45 = vld [vmem:[#allocation49_spill] sm:$0xff] }
 0x1ba   : > { %v737_v0 = vsel %vm571_vm0, %v6239_v45, 0.0  ;;  %v6247_v45 = vld [vmem:[#allocation57_spill] sm:$0xff] }
 0x1bb   : > { %726 = vadd.xlane.f32.xlu1 %v725_v17  ;;  %v3708_v17 = vpop.trf.xlu1  ;;  %v749_v1 = vsel %vm571_vm0, %v6247_v45, 0.0  ;;  %v3740_v28 = vpop.trf.xlu0 }
 0x1bc   : > { %6240 = vst [vmem:[#allocation120_spill] sm:$0xff] %v3708_v17  ;;  %6256 = vst [vmem:[#allocation127_spill] sm:$0xff] %v3740_v28 }
 0x1bd   : > { %729 = vadd.xlane.f32.xlu0 %v728_v13  ;;  %v6243_v13 = vld [vmem:[#allocation53_spill] sm:$0xff] }
 0x1be   : > { %v743_v50 = vsel %vm571_vm0, %v6243_v13, 0.0 }
 0x1bf   : > { %732 = vadd.xlane.f32.xlu1 %v731_v53  ;;  %v6244_v53 = vld [vmem:[#allocation55_spill] sm:$0xff] }
 0x1c0   : > { %v746_v49 = vsel %vm571_vm0, %v6244_v53, 0.0  ;;  %v6252_v53 = vld [vmem:[#allocation63_spill] sm:$0xff] }
 0x1c1   : > { %735 = vadd.xlane.f32.xlu0 %v734_v56  ;;  %v3718_v56 = vpop.trf.xlu1  ;;  %v758_v34 = vsel %vm571_vm0, %v6252_v53, 0.0  ;;  %v3750_v53 = vpop.trf.xlu0 }
 0x1c2   : > { %6245 = vst [vmem:[#allocation122_spill] sm:$0xff] %v3718_v56  ;;  %6259 = vst [vmem:[#allocation129_spill] sm:$0xff] %v3750_v53 }
 0x1c3   : > { %738 = vadd.xlane.f32.xlu1 %v737_v0  ;;  %v6248_v0 = vld [vmem:[#allocation59_spill] sm:$0xff] }
 0x1c4   : > { %v752_v8 = vsel %vm571_vm0, %v6248_v0, 0.0 }
 0x1c5   : > { %741 = vadd.xlane.f32.xlu0 %v740_v61  ;;  %v6249_v61 = vld [vmem:[#allocation61_spill] sm:$0xff] }
 0x1c6   : > { %v755_v13 = vsel %vm571_vm0, %v6249_v61, 0.0  ;;  %v767_v61 = vsel %vm571_vm0, %v3496_v20, 0.0 }
 0x1c7   : > { %744 = vadd.xlane.f32.xlu1 %v743_v50  ;;  %v3728_v50 = vpop.trf.xlu1 }
 0x1c8   : > { %6250 = vst [vmem:[#allocation124_spill] sm:$0xff] %v3728_v50 }
 0x1c9   : > { %747 = vadd.xlane.f32.xlu0 %v746_v49  ;;  %v6253_v49 = vld [vmem:[#allocation65_spill] sm:$0xff] }
 0x1ca   : > { %v761_v45 = vsel %vm571_vm0, %v6253_v49, 0.0 }
 0x1cb   : > { %750 = vadd.xlane.f32.xlu1 %v749_v1  ;;  %v6254_v1 = vld [vmem:[#allocation68_spill] sm:$0xff] }
 0x1cc   : > { %v764_v0 = vsel %vm571_vm0, %v6254_v1, 0.0  ;;  %v776_v1 = vsel %vm571_vm0, %v3508_v52, 0.0 }
 0x1cd   : > { %753 = vadd.xlane.f32.xlu0 %v752_v8  ;;  %v3738_v8 = vpop.trf.xlu1 }
 0x1ce   : > { %6255 = vst [vmem:[#allocation126_spill] sm:$0xff] %v3738_v8 }
 0x1cf   : > { %756 = vadd.xlane.f32.xlu1 %v755_v13  ;;  %v770_v13 = vsel %vm571_vm0, %v3500_v36, 0.0  ;;  %v3760_v36 = vpop.trf.xlu0 }
 0x1d0   : > { %6261 = vst [vmem:[#allocation130_spill] sm:$0xff] %v3760_v36 }
 0x1d1   : > { %759 = vadd.xlane.f32.xlu0 %v758_v34  ;;  %v6257_v34 = vld [vmem:[#allocation74_spill] sm:$0xff] }
 0x1d2   : > { %v773_v49 = vsel %vm571_vm0, %v6257_v34, 0.0  ;;  %v6262_v34 = vld [vmem:[#allocation82_spill] sm:$0xff] }
 0x1d3   : > { %762 = vadd.xlane.f32.xlu1 %v761_v45  ;;  %v3748_v45 = vpop.trf.xlu1  ;;  %v785_v18 = vsel %vm571_vm0, %v6262_v34, 0.0 }
 0x1d4   : > { %6258 = vst [vmem:[#allocation128_spill] sm:$0xff] %v3748_v45 }
 0x1d5   : > { %765 = vadd.xlane.f32.xlu0 %v764_v0  ;;  %v6260_v0 = vld [vmem:[#allocation78_spill] sm:$0xff] }
 0x1d6   : > { %v779_v20 = vsel %vm571_vm0, %v6260_v0, 0.0 }
 0x1d7   : > { %768 = vadd.xlane.f32.xlu1 %v767_v61 }
 0x1d9   : > { %771 = vadd.xlane.f32.xlu0 %v770_v13  ;;  %v782_v13 = vsel %vm571_vm0, %v3516_v60, 0.0 }
 0x1db   : > { %774 = vadd.xlane.f32.xlu1 %v773_v49 }
 0x1dd   : > { %777 = vadd.xlane.f32.xlu0 %v776_v1  ;;  %v788_v1 = vsel %vm571_vm0, %v3530_v12, 0.0 }
 0x1df   : > { %780 = vadd.xlane.f32.xlu1 %v779_v20  ;;  %v791_v20 = vsel %vm571_vm0, %v3538_v44, 0.0 }
 0x1e0   : > { %v3756_v61 = vpop.xlane.xlu1 %576 }
 0x1e1   : > { %783 = vadd.xlane.f32.xlu0 %v782_v13  ;;  %v794_v13 = vsel %vm571_vm0, %v3548_v3, 0.0 }
 0x1e3   : > { %786 = vadd.xlane.f32.xlu1 %v785_v18  ;;  %v797_v18 = vsel %vm571_vm0, %v3560_v11, 0.0 }
 0x1e4   : > { %v3764_v49 = vpop.xlane.xlu1 %579 }
 0x1e5   : > { %789 = vadd.xlane.f32.xlu0 %v788_v1  ;;  %v800_v1 = vsel %vm571_vm0, %v3570_v27, 0.0 }
 0x1e6   : > { %v3768_v0 = vpop.xlane.xlu0 %573 }
 0x1e7   : > { %792 = vadd.xlane.f32.xlu1 %v791_v20  ;;  %v803_v20 = vsel %vm571_vm0, %v3580_v33, 0.0 }
 0x1e8   : > { %v3772_v60 = vpop.xlane.xlu1 %582 }
 0x1e9   : > { %795 = vadd.xlane.f32.xlu0 %v794_v13  ;;  %v806_v13 = vsel %vm571_vm0, %v3590_v43, 0.0 }
 0x1ea   : > { %v3776_v34 = vpop.xlane.xlu0 %585 }
 0x1eb   : > { %798 = vadd.xlane.f32.xlu1 %v797_v18  ;;  %v809_v18 = vsel %vm571_vm0, %v3600_v62, 0.0 }
 0x1ec   : > { %v3780_v12 = vpop.xlane.xlu1 %588 }
 0x1ed   : > { %801 = vadd.xlane.f32.xlu0 %v800_v1  ;;  %v6263_v1 = vld [vmem:[#allocation67_spill] sm:$0xff] }
 0x1ee   : > { %v3784_v44 = vpop.xlane.xlu0 %591  ;;  %v812_v52 = vsel %vm571_vm0, %v6263_v1, 0.0 }
 0x1ef   : > { %804 = vadd.xlane.f32.xlu1 %v803_v20  ;;  %v6264_v20 = vld [vmem:[#allocation69_spill] sm:$0xff] }
 0x1f0   : > { %v3788_v3 = vpop.xlane.xlu1 %594  ;;  %v815_v6 = vsel %vm571_vm0, %v6264_v20, 0.0 }
 0x1f1   : > { %807 = vadd.xlane.f32.xlu0 %v806_v13  ;;  %v6266_v13 = vld [vmem:[#allocation71_spill] sm:$0xff] }
 0x1f2   : > { %v3792_v11 = vpop.xlane.xlu0 %597  ;;  %v818_v58 = vsel %vm571_vm0, %v6266_v13, 0.0 }
 0x1f3   : > { %810 = vadd.xlane.f32.xlu1 %v809_v18  ;;  %v6268_v18 = vld [vmem:[#allocation73_spill] sm:$0xff] }
 0x1f4   : > { %v3796_v27 = vpop.xlane.xlu1 %600  ;;  %v821_v39 = vsel %vm571_vm0, %v6268_v18, 0.0 }
 0x1f5   : > { %813 = vadd.xlane.f32.xlu0 %v812_v52  ;;  %v6270_v52 = vld [vmem:[#allocation75_spill] sm:$0xff] }
 0x1f6   : > { %v3800_v33 = vpop.xlane.xlu0 %603  ;;  %v824_v31 = vsel %vm571_vm0, %v6270_v52, 0.0 }
 0x1f7   : > { %816 = vadd.xlane.f32.xlu1 %v815_v6  ;;  %v6271_v6 = vld [vmem:[#allocation77_spill] sm:$0xff] }
 0x1f8   : > { %v3804_v43 = vpop.xlane.xlu1 %606 }
 0x1f9   : > { %6265 = vst [vmem:[#allocation131_spill] sm:$0xff] %v3804_v43  ;;  %819 = vadd.xlane.f32.xlu0 %v818_v58  ;;  %v827_v43 = vsel %vm571_vm0, %v6271_v6, 0.0  ;;  %v6272_v58 = vld [vmem:[#allocation79_spill] sm:$0xff] }
 0x1fa   : > { %v3808_v62 = vpop.xlane.xlu0 %609 }
 0x1fb   : > { %6267 = vst [vmem:[#allocation132_spill] sm:$0xff] %v3808_v62  ;;  %822 = vadd.xlane.f32.xlu1 %v821_v39  ;;  %v830_v62 = vsel %vm571_vm0, %v6272_v58, 0.0  ;;  %v6273_v39 = vld [vmem:[#allocation81_spill] sm:$0xff] }
 0x1fc   : > { %v3812_v1 = vpop.xlane.xlu1 %612 }
 0x1fd   : > { %6269 = vst [vmem:[#allocation133_spill] sm:$0xff] %v3812_v1  ;;  %825 = vadd.xlane.f32.xlu0 %v824_v31  ;;  %v833_v1 = vsel %vm571_vm0, %v6273_v39, 0.0  ;;  %v836_v31 = vsel %vm571_vm0, %v3528_v4, 0.0 }
 0x1fe   : > { %v3816_v20 = vpop.xlane.xlu0 %615 }
 0x1ff   : > { %828 = vadd.xlane.f32.xlu1 %v827_v43  ;;  %v839_v43 = vsel %vm571_vm0, %v3536_v40, 0.0 }
 0x200   : > { %v3820_v13 = vpop.xlane.xlu1 %618 }
 0x201   : > { %831 = vadd.xlane.f32.xlu0 %v830_v62  ;;  %v842_v62 = vsel %vm571_vm0, %v3544_v16, 0.0 }
 0x202   : > { %v3824_v18 = vpop.xlane.xlu0 %621 }
 0x203   : > { %834 = vadd.xlane.f32.xlu1 %v833_v1  ;;  %v845_v1 = vsel %vm571_vm0, %v3552_v48, 0.0 }
 0x204   : > { %v3828_v52 = vpop.xlane.xlu1 %624 }
 0x205   : > { %837 = vadd.xlane.f32.xlu0 %v836_v31  ;;  %v848_v31 = vsel %vm571_vm0, %v3558_v63, 0.0 }
 0x206   : > { %v3832_v6 = vpop.xlane.xlu0 %627 }
 0x207   : > { %840 = vadd.xlane.f32.xlu1 %v839_v43  ;;  %v851_v43 = vsel %vm571_vm0, %v3568_v24, 0.0 }
 0x208   : > { %v3836_v58 = vpop.xlane.xlu1 %630 }
 0x209   : > { %843 = vadd.xlane.f32.xlu0 %v842_v62  ;;  %v854_v62 = vsel %vm571_vm0, %v3578_v23, 0.0 }
 0x20a   : > { %v3840_v39 = vpop.xlane.xlu0 %633 }
 0x20b   : > { %846 = vadd.xlane.f32.xlu1 %v845_v1  ;;  %v857_v1 = vsel %vm571_vm0, %v3588_v15, 0.0 }
 0x20c   : > { %v3844_v4 = vpop.xlane.xlu1 %636 }
 0x20d   : > { %849 = vadd.xlane.f32.xlu0 %v848_v31  ;;  %v860_v31 = vsel %vm571_vm0, %v3610_v10, 0.0 }
 0x20e   : > { %v3848_v40 = vpop.xlane.xlu0 %639 }
 0x20f   : > { %852 = vadd.xlane.f32.xlu1 %v851_v43  ;;  %v863_v43 = vsel %vm571_vm0, %v3620_v22, 0.0 }
 0x210   : > { %v3852_v16 = vpop.xlane.xlu1 %642 }
 0x211   : > { %855 = vadd.xlane.f32.xlu0 %v854_v62  ;;  %v866_v62 = vsel %vm571_vm0, %v3630_v30, 0.0 }
 0x212   : > { %v3856_v48 = vpop.xlane.xlu0 %645 }
 0x213   : > { %858 = vadd.xlane.f32.xlu1 %v857_v1  ;;  %v869_v1 = vsel %vm571_vm0, %v3640_v38, 0.0 }
 0x214   : > { %v3860_v63 = vpop.xlane.xlu1 %648 }
 0x215   : > { %861 = vadd.xlane.f32.xlu0 %v860_v31  ;;  %v872_v31 = vsel %vm571_vm0, %v3650_v51, 0.0 }
 0x216   : > { %v3864_v24 = vpop.xlane.xlu0 %651 }
 0x217   : > { %864 = vadd.xlane.f32.xlu1 %v863_v43  ;;  %v875_v43 = vsel %vm571_vm0, %v3660_v9, 0.0 }
 0x218   : > { %v3868_v23 = vpop.xlane.xlu1 %654 }
 0x219   : > { %867 = vadd.xlane.f32.xlu0 %v866_v62  ;;  %v878_v62 = vsel %vm571_vm0, %v3670_v41, 0.0 }
 0x21a   : > { %v3872_v15 = vpop.xlane.xlu0 %657 }
 0x21b   : > { %870 = vadd.xlane.f32.xlu1 %v869_v1  ;;  %v881_v1 = vsel %vm571_vm0, %v3680_v5, 0.0 }
 0x21c   : > { %v3876_v10 = vpop.xlane.xlu1 %660 }
 0x21d   : > { %873 = vadd.xlane.f32.xlu0 %v872_v31  ;;  %v884_v31 = vsel %vm571_vm0, %v3690_v37, 0.0 }
 0x21e   : > { %v3880_v22 = vpop.xlane.xlu0 %663 }
 0x21f   : > { %876 = vadd.xlane.f32.xlu1 %v875_v43  ;;  %v887_v43 = vsel %vm571_vm0, %v3700_v46, 0.0 }
 0x220   : > { %v3884_v30 = vpop.xlane.xlu1 %666 }
 0x221   : > { %879 = vadd.xlane.f32.xlu0 %v878_v62  ;;  %v890_v62 = vsel %vm571_vm0, %v3710_v21, 0.0 }
 0x222   : > { %v3888_v38 = vpop.xlane.xlu0 %669 }
 0x223   : > { %882 = vadd.xlane.f32.xlu1 %v881_v1  ;;  %v893_v1 = vsel %vm571_vm0, %v3720_v25, 0.0 }
 0x224   : > { %v3892_v51 = vpop.xlane.xlu1 %672 }
 0x225   : > { %885 = vadd.xlane.f32.xlu0 %v884_v31  ;;  %v896_v31 = vsel %vm571_vm0, %v3730_v47, 0.0 }
 0x226   : > { %v3896_v9 = vpop.xlane.xlu0 %675 }
 0x227   : > { %888 = vadd.xlane.f32.xlu1 %v887_v43  ;;  %v899_v43 = vsel %vm571_vm0, %v3740_v28, 0.0 }
 0x228   : > { %v3900_v41 = vpop.xlane.xlu1 %678 }
 0x229   : > { %891 = vadd.xlane.f32.xlu0 %v890_v62  ;;  %v902_v62 = vsel %vm571_vm0, %v3750_v53, 0.0 }
 0x22a   : > { %v3904_v5 = vpop.xlane.xlu0 %681 }
 0x22b   : > { %894 = vadd.xlane.f32.xlu1 %v893_v1  ;;  %v905_v1 = vsel %vm571_vm0, %v3760_v36, 0.0 }
 0x22c   : > { %v3908_v37 = vpop.xlane.xlu1 %684 }
 0x22d   : > { %897 = vadd.xlane.f32.xlu0 %v896_v31  ;;  %v908_v31 = vsel %vm571_vm0, %v3598_v7, 0.0 }
 0x22e   : > { %v3912_v46 = vpop.xlane.xlu0 %687 }
 0x22f   : > { %900 = vadd.xlane.f32.xlu1 %v899_v43  ;;  %v911_v43 = vsel %vm571_vm0, %v3608_v59, 0.0 }
 0x230   : > { %v3916_v21 = vpop.xlane.xlu1 %690 }
 0x231   : > { %903 = vadd.xlane.f32.xlu0 %v902_v62  ;;  %v914_v62 = vsel %vm571_vm0, %v3618_v29, 0.0 }
 0x232   : > { %v3920_v25 = vpop.xlane.xlu0 %693 }
 0x233   : > { %906 = vadd.xlane.f32.xlu1 %v905_v1  ;;  %v917_v1 = vsel %vm571_vm0, %v3628_v35, 0.0 }
 0x234   : > { %v3924_v47 = vpop.xlane.xlu1 %696 }
 0x235   : > { %909 = vadd.xlane.f32.xlu0 %v908_v31  ;;  %v920_v31 = vsel %vm571_vm0, %v3638_v54, 0.0 }
 0x236   : > { %v3928_v28 = vpop.xlane.xlu0 %699 }
 0x237   : > { %912 = vadd.xlane.f32.xlu1 %v911_v43  ;;  %v923_v43 = vsel %vm571_vm0, %v3648_v2, 0.0 }
 0x238   : > { %v3932_v53 = vpop.xlane.xlu1 %702 }
 0x239   : > { %915 = vadd.xlane.f32.xlu0 %v914_v62  ;;  %v926_v62 = vsel %vm571_vm0, %v3658_v14, 0.0 }
 0x23a   : > { %v3936_v36 = vpop.xlane.xlu0 %705 }
 0x23b   : > { %918 = vadd.xlane.f32.xlu1 %v917_v1  ;;  %v929_v1 = vsel %vm571_vm0, %v3668_v26, 0.0  ;;  %v938_v26 = vsel %vm571_vm0, %v3698_v57, 0.0 }
 0x23c   : > { %v3940_v7 = vpop.xlane.xlu1 %708 }
 0x23d   : > { %921 = vadd.xlane.f32.xlu0 %v920_v31  ;;  %v932_v31 = vsel %vm571_vm0, %v3678_v32, 0.0  ;;  %v959_v32 = vmul.f32 0.010416667, %v3764_v49  ;;  %v6279_v49 = vld [vmem:[#allocation9_spill] sm:$0xff] }
 0x23e   : > { %v3944_v59 = vpop.xlane.xlu0 %711 }
 0x23f   : > { %924 = vadd.xlane.f32.xlu1 %v923_v43  ;;  %v935_v43 = vsel %vm571_vm0, %v3688_v42, 0.0  ;;  %v944_v42 = vsel %vm571_vm0, %v3718_v56, 0.0  ;;  %v963_v56 = vmul.f32 0.010416667, %v3784_v44 }
 0x240   : > { %v3948_v29 = vpop.xlane.xlu1 %714 }
 0x241   : > { %927 = vadd.xlane.f32.xlu0 %v926_v62  ;;  %v957_v62 = vmul.f32 0.010416667, %v3768_v0 }
 0x242   : > { %v3952_v35 = vpop.xlane.xlu0 %717 }
 0x243   : > { %930 = vadd.xlane.f32.xlu1 %v929_v1  ;;  %v958_v1 = vmul.f32 0.010416667, %v3756_v61  ;;  %v960_v61 = vmul.f32 0.010416667, %v3772_v60  ;;  %v6281_v60 = vld [vmem:[#allocation11_spill] sm:$0xff] }
 0x244   : > { %v3956_v54 = vpop.xlane.xlu1 %720 }
 0x245   : > { %6274 = vst [vmem:[#allocation134_spill] sm:$0xff] %v3956_v54  ;;  %933 = vadd.xlane.f32.xlu0 %v932_v31  ;;  %v941_v31 = vsel %vm571_vm0, %v3708_v17, 0.0 }
 0x246   : > { %v3960_v2 = vpop.xlane.xlu0 %723 }
 0x247   : > { %936 = vadd.xlane.f32.xlu1 %v935_v43  ;;  %v3976_v43 = vsub.f32 %v3322_v55, %v957_v62  ;;  %v3991_v55 = vsub.f32 %v6279_v49, %v959_v32  ;;  %v961_v62 = vmul.f32 0.010416667, %v3776_v34  ;;  %v953_v32 = vsel %vm571_vm0, %v3748_v45, 0.0  ;;  %v6283_v49 = vld [vmem:[#allocation13_spill] sm:$0xff] }
 0x248   : > { %v3965_v14 = vpop.xlane.xlu1 %726  ;;  %v964_v45 = vmul.f32 0.010416667, %v3788_v3 }
 0x249   : > { %939 = vadd.xlane.f32.xlu0 %v938_v26  ;;  %6276 = vst [vmem:[#allocation136_spill] sm:$0xff] %v3976_v43  ;;  %v6277_v26 = vld [vmem:[#allocation7_spill] sm:$0xff]  ;;  %6280 = vst [vmem:[#allocation9_spill] sm:$0xff] %v3991_v55 }
 0x24a   : > { %v3970_v54 = vpop.xlane.xlu0 %729  ;;  %v3983_v57 = vsub.f32 %v6277_v26, %v958_v1  ;;  %v1213_v1 = vmul.f32 %v3976_v43, %v3976_v43  ;;  %v4001_v26 = vsub.f32 %v6281_v60, %v960_v61  ;;  %v6285_v60 = vld [vmem:[#allocation15_spill] sm:$0xff] }
 0x24b   : > { %6275 = vst [vmem:[#allocation135_spill] sm:$0xff] %v3970_v54  ;;  %942 = vadd.xlane.f32.xlu1 %v941_v31  ;;  %v947_v31 = vsel %vm571_vm0, %v3728_v50, 0.0  ;;  %v962_v50 = vmul.f32 0.010416667, %v3780_v12  ;;  %v1215_v12 = vmul.f32 %v3991_v55, %v3991_v55 }
 0x24c   : > { %v3978_v0 = vpop.xlane.xlu1 %732  ;;  %6278 = vst [vmem:[#allocation7_spill] sm:$0xff] %v3983_v57  ;;  %6282 = vst [vmem:[#allocation11_spill] sm:$0xff] %v4001_v26  ;;  %v1214_v34 = vmul.f32 %v3983_v57, %v3983_v57  ;;  %v1341_v61 = vsel %vm571_vm0, %v1213_v1, 0.0  ;;  %v1216_v44 = vmul.f32 %v4001_v26, %v4001_v26  ;;  %v965_v1 = vmul.f32 0.010416667, %v3792_v11 }
 0x24d   : > { %945 = vadd.xlane.f32.xlu0 %v944_v42  ;;  %v950_v42 = vsel %vm571_vm0, %v3738_v8, 0.0  ;;  %v4011_v8 = vsub.f32 %v6283_v49, %v961_v62  ;;  %v4020_v43 = vsub.f32 %v6285_v60, %v962_v50  ;;  %v1347_v50 = vsel %vm571_vm0, %v1215_v12, 0.0 }
 0x24e   : > { %v3986_v54 = vpop.xlane.xlu0 %735  ;;  %v1344_v62 = vsel %vm571_vm0, %v1214_v34, 0.0  ;;  %v966_v34 = vmul.f32 0.010416667, %v3796_v27  ;;  %v967_v12 = vmul.f32 0.010416667, %v3800_v33 }
 0x24f   : > { %948 = vadd.xlane.f32.xlu1 %v947_v31  ;;  %6284 = vst [vmem:[#allocation13_spill] sm:$0xff] %v4011_v8  ;;  %6286 = vst [vmem:[#allocation15_spill] sm:$0xff] %v4020_v43  ;;  %v1217_v3 = vmul.f32 %v4011_v8, %v4011_v8  ;;  %v1218_v11 = vmul.f32 %v4020_v43, %v4020_v43 }
 0x250   : > { %v3994_v17 = vpop.xlane.xlu1 %738 }
 0x251   : > { %951 = vadd.xlane.f32.xlu0 %v950_v42 }
 0x252   : > { %v4004_v31 = vpop.xlane.xlu0 %741 }
 0x253   : > { %954 = vadd.xlane.f32.xlu1 %v953_v32  ;;  %v6287_v32 = vld [vmem:[#allocation17_spill] sm:$0xff] }
 0x254   : > { %v4014_v42 = vpop.xlane.xlu1 %744  ;;  %v4029_v49 = vsub.f32 %v6287_v32, %v963_v56  ;;  %v1350_v56 = vsel %vm571_vm0, %v1216_v44, 0.0  ;;  %v6295_v44 = vld [vmem:[#allocation131_spill] sm:$0xff] }
 0x255   : > { %1342 = vadd.xlane.f32.xlu0 %v1341_v61  ;;  %v4038_v61 = vsub.f32 %v3364_v19, %v964_v45  ;;  %v1353_v19 = vsel %vm571_vm0, %v1217_v3, 0.0  ;;  %v6293_v45 = vld [vmem:[#allocation22_spill] sm:$0xff]  ;;  %v968_v26 = vmul.f32 0.010416667, %v6295_v44  ;;  %v6299_v3 = vld [vmem:[#allocation132_spill] sm:$0xff] }
 0x256   : > { %v4023_v57 = vpop.xlane.xlu0 %747  ;;  %6288 = vst [vmem:[#allocation17_spill] sm:$0xff] %v4029_v49  ;;  %v1219_v27 = vmul.f32 %v4029_v49, %v4029_v49 }
 0x257   : > { %1345 = vadd.xlane.f32.xlu1 %v1344_v62  ;;  %6289 = vst [vmem:[#allocation137_spill] sm:$0xff] %v4038_v61  ;;  %v6290_v62 = vld [vmem:[#allocation20_spill] sm:$0xff]  ;;  %v1220_v33 = vmul.f32 %v4038_v61, %v4038_v61 }
 0x258   : > { %v4032_v55 = vpop.xlane.xlu1 %750  ;;  %v4047_v32 = vsub.f32 %v6290_v62, %v965_v1  ;;  %v1356_v1 = vsel %vm571_vm0, %v1218_v11, 0.0  ;;  %v6302_v11 = vld [vmem:[#allocation133_spill] sm:$0xff] }
 0x259   : > { %1348 = vadd.xlane.f32.xlu0 %v1347_v50  ;;  %v4056_v50 = vsub.f32 %v6293_v45, %v966_v34  ;;  %v1359_v34 = vsel %vm571_vm0, %v1219_v27, 0.0  ;;  %v6300_v45 = vld [vmem:[#allocation26_spill] sm:$0xff]  ;;  %v971_v27 = vmul.f32 0.010416667, %v3816_v20 }
 0x25a   : > { %v4041_v60 = vpop.xlane.xlu0 %753  ;;  %6291 = vst [vmem:[#allocation20_spill] sm:$0xff] %v4047_v32  ;;  %v4074_v44 = vsub.f32 %v6300_v45, %v968_v26  ;;  %v6305_v45 = vld [vmem:[#allocation30_spill] sm:$0xff] }
 0x25b   : > { %1351 = vadd.xlane.f32.xlu1 %v1350_v56  ;;  %6294 = vst [vmem:[#allocation22_spill] sm:$0xff] %v4056_v50  ;;  %v6297_v56 = vld [vmem:[#allocation24_spill] sm:$0xff] }
 0x25c   : > { %v4050_v8 = vpop.xlane.xlu1 %756  ;;  %v4065_v62 = vsub.f32 %v6297_v56, %v967_v12  ;;  %6301 = vst [vmem:[#allocation132_spill] sm:$0xff] %v4074_v44  ;;  %v1362_v12 = vsel %vm571_vm0, %v1220_v33, 0.0  ;;  %v6303_v56 = vld [vmem:[#allocation28_spill] sm:$0xff]  ;;  %v972_v33 = vmul.f32 0.010416667, %v3820_v13  ;;  %v1224_v20 = vmul.f32 %v4074_v44, %v4074_v44 }
 0x25d   : > { %6292 = vst [vmem:[#allocation138_spill] sm:$0xff] %v4050_v8  ;;  %1354 = vadd.xlane.f32.xlu0 %v1353_v19  ;;  %v969_v8 = vmul.f32 0.010416667, %v6299_v3  ;;  %v1221_v19 = vmul.f32 %v4047_v32, %v4047_v32 }
 0x25e   : > { %v4059_v43 = vpop.xlane.xlu0 %759  ;;  %6298 = vst [vmem:[#allocation24_spill] sm:$0xff] %v4065_v62 }
 0x25f   : > { %6296 = vst [vmem:[#allocation131_spill] sm:$0xff] %v4059_v43  ;;  %1357 = vadd.xlane.f32.xlu1 %v1356_v1  ;;  %v970_v43 = vmul.f32 0.010416667, %v6302_v11  ;;  %v1222_v1 = vmul.f32 %v4056_v50, %v4056_v50  ;;  %v4083_v3 = vsub.f32 %v6303_v56, %v969_v8  ;;  %v1365_v26 = vsel %vm571_vm0, %v1221_v19, 0.0 }
 0x260   : > { %v4068_v49 = vpop.xlane.xlu1 %762  ;;  %v973_v19 = vmul.f32 0.010416667, %v3824_v18 }
 0x261   : > { %1360 = vadd.xlane.f32.xlu0 %v1359_v34  ;;  %6304 = vst [vmem:[#allocation26_spill] sm:$0xff] %v4083_v3  ;;  %v1223_v34 = vmul.f32 %v4065_v62, %v4065_v62  ;;  %v4092_v11 = vsub.f32 %v6305_v45, %v970_v43  ;;  %v1368_v8 = vsel %vm571_vm0, %v1222_v1, 0.0  ;;  %v1225_v13 = vmul.f32 %v4083_v3, %v4083_v3 }
 0x262   : > { %v4077_v61 = vpop.xlane.xlu0 %765  ;;  %v974_v1 = vmul.f32 0.010416667, %v3828_v52 }
 0x263   : > { %1363 = vadd.xlane.f32.xlu1 %v1362_v12  ;;  %6306 = vst [vmem:[#allocation133_spill] sm:$0xff] %v4092_v11  ;;  %v6307_v12 = vld [vmem:[#allocation32_spill] sm:$0xff]  ;;  %v1371_v43 = vsel %vm571_vm0, %v1223_v34, 0.0  ;;  %v1226_v18 = vmul.f32 %v4092_v11, %v4092_v11  ;;  %v975_v34 = vmul.f32 0.010416667, %v3832_v6 }
 0x264   : > { %v4086_v32 = vpop.xlane.xlu1 %768  ;;  %v4101_v56 = vsub.f32 %v6307_v12, %v971_v27  ;;  %v1374_v27 = vsel %vm571_vm0, %v1224_v20, 0.0  ;;  %v976_v20 = vmul.f32 0.010416667, %v3836_v58 }
 0x265   : > { %1366 = vadd.xlane.f32.xlu0 %v1365_v26  ;;  %v6309_v26 = vld [vmem:[#allocation34_spill] sm:$0xff] }
 0x266   : > { %v4095_v50 = vpop.xlane.xlu0 %771  ;;  %6308 = vst [vmem:[#allocation28_spill] sm:$0xff] %v4101_v56  ;;  %v4110_v45 = vsub.f32 %v6309_v26, %v972_v33  ;;  %v1377_v33 = vsel %vm571_vm0, %v1225_v13, 0.0  ;;  %v1227_v52 = vmul.f32 %v4101_v56, %v4101_v56  ;;  %v977_v13 = vmul.f32 0.010416667, %v3840_v39 }
 0x267   : > { %1369 = vadd.xlane.f32.xlu1 %v1368_v8  ;;  %v6311_v8 = vld [vmem:[#allocation5_spill] sm:$0xff] }
 0x268   : > { %v4104_v62 = vpop.xlane.xlu1 %774  ;;  %6310 = vst [vmem:[#allocation30_spill] sm:$0xff] %v4110_v45  ;;  %v4119_v12 = vsub.f32 %v6311_v8, %v973_v19  ;;  %v1380_v19 = vsel %vm571_vm0, %v1226_v18, 0.0  ;;  %v1228_v6 = vmul.f32 %v4110_v45, %v4110_v45  ;;  %v978_v18 = vmul.f32 0.010416667, %v3844_v4 }
 0x269   : > { %1372 = vadd.xlane.f32.xlu0 %v1371_v43  ;;  %v6313_v43 = vld [vmem:[#allocation6_spill] sm:$0xff] }
 0x26a   : > { %v4113_v44 = vpop.xlane.xlu0 %777  ;;  %6312 = vst [vmem:[#allocation32_spill] sm:$0xff] %v4119_v12  ;;  %v4128_v26 = vsub.f32 %v6313_v43, %v974_v1  ;;  %v1383_v1 = vsel %vm571_vm0, %v1227_v52, 0.0  ;;  %v1229_v58 = vmul.f32 %v4119_v12, %v4119_v12  ;;  %v979_v52 = vmul.f32 0.010416667, %v3848_v40 }
 0x26b   : > { %1375 = vadd.xlane.f32.xlu1 %v1374_v27  ;;  %v6315_v27 = vld [vmem:[#allocation8_spill] sm:$0xff] }
 0x26c   : > { %v4122_v3 = vpop.xlane.xlu1 %780  ;;  %6314 = vst [vmem:[#allocation34_spill] sm:$0xff] %v4128_v26  ;;  %v4137_v8 = vsub.f32 %v6315_v27, %v975_v34  ;;  %v1386_v34 = vsel %vm571_vm0, %v1228_v6, 0.0  ;;  %v1230_v39 = vmul.f32 %v4128_v26, %v4128_v26  ;;  %v980_v6 = vmul.f32 0.010416667, %v3852_v16 }
 0x26d   : > { %1378 = vadd.xlane.f32.xlu0 %v1377_v33  ;;  %v6317_v33 = vld [vmem:[#allocation10_spill] sm:$0xff] }
 0x26e   : > { %v4131_v11 = vpop.xlane.xlu0 %783  ;;  %6316 = vst [vmem:[#allocation5_spill] sm:$0xff] %v4137_v8  ;;  %v4146_v43 = vsub.f32 %v6317_v33, %v976_v20  ;;  %v1389_v20 = vsel %vm571_vm0, %v1229_v58, 0.0  ;;  %v1231_v4 = vmul.f32 %v4137_v8, %v4137_v8  ;;  %v981_v58 = vmul.f32 0.010416667, %v3856_v48 }
 0x26f   : > { %1381 = vadd.xlane.f32.xlu1 %v1380_v19  ;;  %v6319_v19 = vld [vmem:[#allocation12_spill] sm:$0xff] }
 0x270   : > { %v4140_v56 = vpop.xlane.xlu1 %786  ;;  %6318 = vst [vmem:[#allocation6_spill] sm:$0xff] %v4146_v43  ;;  %v4155_v27 = vsub.f32 %v6319_v19, %v977_v13  ;;  %v1392_v13 = vsel %vm571_vm0, %v1230_v39, 0.0  ;;  %v1232_v40 = vmul.f32 %v4146_v43, %v4146_v43  ;;  %v982_v39 = vmul.f32 0.010416667, %v3860_v63 }
 0x271   : > { %1384 = vadd.xlane.f32.xlu0 %v1383_v1  ;;  %v6321_v1 = vld [vmem:[#allocation14_spill] sm:$0xff] }
 0x272   : > { %v4149_v45 = vpop.xlane.xlu0 %789  ;;  %6320 = vst [vmem:[#allocation8_spill] sm:$0xff] %v4155_v27  ;;  %v4164_v33 = vsub.f32 %v6321_v1, %v978_v18  ;;  %v1395_v18 = vsel %vm571_vm0, %v1231_v4, 0.0  ;;  %v1233_v16 = vmul.f32 %v4155_v27, %v4155_v27  ;;  %v983_v4 = vmul.f32 0.010416667, %v3864_v24 }
 0x273   : > { %1387 = vadd.xlane.f32.xlu1 %v1386_v34  ;;  %v6323_v34 = vld [vmem:[#allocation16_spill] sm:$0xff] }
 0x274   : > { %v4158_v12 = vpop.xlane.xlu1 %792  ;;  %6322 = vst [vmem:[#allocation10_spill] sm:$0xff] %v4164_v33  ;;  %v4173_v19 = vsub.f32 %v6323_v34, %v979_v52  ;;  %v1398_v52 = vsel %vm571_vm0, %v1232_v40, 0.0  ;;  %v1234_v48 = vmul.f32 %v4164_v33, %v4164_v33  ;;  %v984_v40 = vmul.f32 0.010416667, %v3868_v23 }
 0x275   : > { %1390 = vadd.xlane.f32.xlu0 %v1389_v20  ;;  %v6325_v20 = vld [vmem:[#allocation18_spill] sm:$0xff] }
 0x276   : > { %v4167_v26 = vpop.xlane.xlu0 %795  ;;  %6324 = vst [vmem:[#allocation12_spill] sm:$0xff] %v4173_v19  ;;  %v4182_v1 = vsub.f32 %v6325_v20, %v980_v6  ;;  %v1401_v6 = vsel %vm571_vm0, %v1233_v16, 0.0  ;;  %v1235_v63 = vmul.f32 %v4173_v19, %v4173_v19  ;;  %v985_v16 = vmul.f32 0.010416667, %v3872_v15 }
 0x277   : > { %1393 = vadd.xlane.f32.xlu1 %v1392_v13  ;;  %v6327_v13 = vld [vmem:[#allocation19_spill] sm:$0xff] }
 0x278   : > { %v4176_v8 = vpop.xlane.xlu1 %798  ;;  %6326 = vst [vmem:[#allocation14_spill] sm:$0xff] %v4182_v1  ;;  %v4191_v34 = vsub.f32 %v6327_v13, %v981_v58  ;;  %v1404_v58 = vsel %vm571_vm0, %v1234_v48, 0.0  ;;  %v1236_v24 = vmul.f32 %v4182_v1, %v4182_v1  ;;  %v986_v48 = vmul.f32 0.010416667, %v3876_v10 }
 0x279   : > { %1396 = vadd.xlane.f32.xlu0 %v1395_v18  ;;  %v6329_v18 = vld [vmem:[#allocation21_spill] sm:$0xff] }
 0x27a   : > { %v4185_v43 = vpop.xlane.xlu0 %801  ;;  %6328 = vst [vmem:[#allocation16_spill] sm:$0xff] %v4191_v34  ;;  %v4200_v20 = vsub.f32 %v6329_v18, %v982_v39  ;;  %v1407_v39 = vsel %vm571_vm0, %v1235_v63, 0.0  ;;  %v1237_v23 = vmul.f32 %v4191_v34, %v4191_v34  ;;  %v987_v63 = vmul.f32 0.010416667, %v3880_v22 }
 0x27b   : > { %1399 = vadd.xlane.f32.xlu1 %v1398_v52  ;;  %v6331_v52 = vld [vmem:[#allocation23_spill] sm:$0xff] }
 0x27c   : > { %v4194_v27 = vpop.xlane.xlu1 %804  ;;  %6330 = vst [vmem:[#allocation18_spill] sm:$0xff] %v4200_v20  ;;  %v4209_v13 = vsub.f32 %v6331_v52, %v983_v4  ;;  %v1410_v4 = vsel %vm571_vm0, %v1236_v24, 0.0  ;;  %v1238_v15 = vmul.f32 %v4200_v20, %v4200_v20  ;;  %v988_v24 = vmul.f32 0.010416667, %v3884_v30 }
 0x27d   : > { %1402 = vadd.xlane.f32.xlu0 %v1401_v6  ;;  %v6333_v6 = vld [vmem:[#allocation25_spill] sm:$0xff] }
 0x27e   : > { %v4203_v33 = vpop.xlane.xlu0 %807  ;;  %6332 = vst [vmem:[#allocation19_spill] sm:$0xff] %v4209_v13  ;;  %v4218_v18 = vsub.f32 %v6333_v6, %v984_v40  ;;  %v1413_v40 = vsel %vm571_vm0, %v1237_v23, 0.0  ;;  %v1239_v10 = vmul.f32 %v4209_v13, %v4209_v13  ;;  %v989_v23 = vmul.f32 0.010416667, %v3888_v38 }
 0x27f   : > { %1405 = vadd.xlane.f32.xlu1 %v1404_v58  ;;  %v6335_v58 = vld [vmem:[#allocation27_spill] sm:$0xff] }
 0x280   : > { %v4212_v19 = vpop.xlane.xlu1 %810  ;;  %6334 = vst [vmem:[#allocation21_spill] sm:$0xff] %v4218_v18  ;;  %v4227_v52 = vsub.f32 %v6335_v58, %v985_v16  ;;  %v1416_v16 = vsel %vm571_vm0, %v1238_v15, 0.0  ;;  %v1240_v22 = vmul.f32 %v4218_v18, %v4218_v18  ;;  %v990_v15 = vmul.f32 0.010416667, %v3892_v51 }
 0x281   : > { %1408 = vadd.xlane.f32.xlu0 %v1407_v39  ;;  %v6337_v39 = vld [vmem:[#allocation29_spill] sm:$0xff] }
 0x282   : > { %v4221_v1 = vpop.xlane.xlu0 %813  ;;  %6336 = vst [vmem:[#allocation23_spill] sm:$0xff] %v4227_v52  ;;  %v4236_v6 = vsub.f32 %v6337_v39, %v986_v48  ;;  %v1419_v48 = vsel %vm571_vm0, %v1239_v10, 0.0  ;;  %v1241_v30 = vmul.f32 %v4227_v52, %v4227_v52  ;;  %v991_v10 = vmul.f32 0.010416667, %v3896_v9 }
 0x283   : > { %1411 = vadd.xlane.f32.xlu1 %v1410_v4  ;;  %v6339_v4 = vld [vmem:[#allocation31_spill] sm:$0xff] }
 0x284   : > { %v4230_v34 = vpop.xlane.xlu1 %816  ;;  %6338 = vst [vmem:[#allocation25_spill] sm:$0xff] %v4236_v6  ;;  %v4245_v58 = vsub.f32 %v6339_v4, %v987_v63  ;;  %v1422_v63 = vsel %vm571_vm0, %v1240_v22, 0.0  ;;  %v1242_v38 = vmul.f32 %v4236_v6, %v4236_v6  ;;  %v992_v22 = vmul.f32 0.010416667, %v3900_v41 }
 0x285   : > { %1414 = vadd.xlane.f32.xlu0 %v1413_v40  ;;  %v6341_v40 = vld [vmem:[#allocation33_spill] sm:$0xff] }
 0x286   : > { %v4239_v20 = vpop.xlane.xlu0 %819  ;;  %6340 = vst [vmem:[#allocation27_spill] sm:$0xff] %v4245_v58  ;;  %v4254_v39 = vsub.f32 %v6341_v40, %v988_v24  ;;  %v1425_v24 = vsel %vm571_vm0, %v1241_v30, 0.0  ;;  %v1243_v51 = vmul.f32 %v4245_v58, %v4245_v58  ;;  %v993_v30 = vmul.f32 0.010416667, %v3904_v5 }
 0x287   : > { %1417 = vadd.xlane.f32.xlu1 %v1416_v16  ;;  %v6343_v16 = vld [vmem:[#allocation36_spill] sm:$0xff] }
 0x288   : > { %v4248_v13 = vpop.xlane.xlu1 %822  ;;  %6342 = vst [vmem:[#allocation29_spill] sm:$0xff] %v4254_v39  ;;  %v4263_v4 = vsub.f32 %v6343_v16, %v989_v23  ;;  %v1428_v23 = vsel %vm571_vm0, %v1242_v38, 0.0  ;;  %v1244_v9 = vmul.f32 %v4254_v39, %v4254_v39  ;;  %v994_v38 = vmul.f32 0.010416667, %v3908_v37 }
 0x289   : > { %1420 = vadd.xlane.f32.xlu0 %v1419_v48  ;;  %v6345_v48 = vld [vmem:[#allocation38_spill] sm:$0xff] }
 0x28a   : > { %v4257_v18 = vpop.xlane.xlu0 %825  ;;  %6344 = vst [vmem:[#allocation31_spill] sm:$0xff] %v4263_v4  ;;  %v4272_v40 = vsub.f32 %v6345_v48, %v990_v15  ;;  %v1431_v15 = vsel %vm571_vm0, %v1243_v51, 0.0  ;;  %v1245_v41 = vmul.f32 %v4263_v4, %v4263_v4  ;;  %v995_v51 = vmul.f32 0.010416667, %v3912_v46 }
 0x28b   : > { %1423 = vadd.xlane.f32.xlu1 %v1422_v63  ;;  %v6347_v63 = vld [vmem:[#allocation40_spill] sm:$0xff] }
 0x28c   : > { %v4266_v52 = vpop.xlane.xlu1 %828  ;;  %6346 = vst [vmem:[#allocation33_spill] sm:$0xff] %v4272_v40  ;;  %v4281_v16 = vsub.f32 %v6347_v63, %v991_v10  ;;  %v1434_v10 = vsel %vm571_vm0, %v1244_v9, 0.0  ;;  %v1246_v5 = vmul.f32 %v4272_v40, %v4272_v40  ;;  %v996_v9 = vmul.f32 0.010416667, %v3916_v21 }
 0x28d   : > { %1426 = vadd.xlane.f32.xlu0 %v1425_v24  ;;  %v6349_v24 = vld [vmem:[#allocation42_spill] sm:$0xff] }
 0x28e   : > { %v4275_v6 = vpop.xlane.xlu0 %831  ;;  %6348 = vst [vmem:[#allocation36_spill] sm:$0xff] %v4281_v16  ;;  %v4290_v48 = vsub.f32 %v6349_v24, %v992_v22  ;;  %v1437_v22 = vsel %vm571_vm0, %v1245_v41, 0.0  ;;  %v1247_v37 = vmul.f32 %v4281_v16, %v4281_v16  ;;  %v997_v41 = vmul.f32 0.010416667, %v3920_v25 }
 0x28f   : > { %1429 = vadd.xlane.f32.xlu1 %v1428_v23  ;;  %v6351_v23 = vld [vmem:[#allocation44_spill] sm:$0xff] }
 0x290   : > { %v4284_v58 = vpop.xlane.xlu1 %834  ;;  %6350 = vst [vmem:[#allocation38_spill] sm:$0xff] %v4290_v48  ;;  %v4299_v63 = vsub.f32 %v6351_v23, %v993_v30  ;;  %v1440_v30 = vsel %vm571_vm0, %v1246_v5, 0.0  ;;  %v1248_v46 = vmul.f32 %v4290_v48, %v4290_v48  ;;  %v998_v5 = vmul.f32 0.010416667, %v3924_v47 }
 0x291   : > { %1432 = vadd.xlane.f32.xlu0 %v1431_v15  ;;  %v6353_v15 = vld [vmem:[#allocation46_spill] sm:$0xff] }
 0x292   : > { %v4293_v39 = vpop.xlane.xlu0 %837  ;;  %6352 = vst [vmem:[#allocation40_spill] sm:$0xff] %v4299_v63  ;;  %v4308_v24 = vsub.f32 %v6353_v15, %v994_v38  ;;  %v1443_v38 = vsel %vm571_vm0, %v1247_v37, 0.0  ;;  %v1249_v21 = vmul.f32 %v4299_v63, %v4299_v63  ;;  %v999_v37 = vmul.f32 0.010416667, %v3928_v28 }
 0x293   : > { %1435 = vadd.xlane.f32.xlu1 %v1434_v10  ;;  %v6355_v10 = vld [vmem:[#allocation48_spill] sm:$0xff] }
 0x294   : > { %v4302_v4 = vpop.xlane.xlu1 %840  ;;  %6354 = vst [vmem:[#allocation42_spill] sm:$0xff] %v4308_v24  ;;  %v4317_v23 = vsub.f32 %v6355_v10, %v995_v51  ;;  %v1446_v51 = vsel %vm571_vm0, %v1248_v46, 0.0  ;;  %v1250_v25 = vmul.f32 %v4308_v24, %v4308_v24  ;;  %v1000_v46 = vmul.f32 0.010416667, %v3932_v53 }
 0x295   : > { %1438 = vadd.xlane.f32.xlu0 %v1437_v22  ;;  %v6357_v22 = vld [vmem:[#allocation50_spill] sm:$0xff] }
 0x296   : > { %v4311_v40 = vpop.xlane.xlu0 %843  ;;  %6356 = vst [vmem:[#allocation44_spill] sm:$0xff] %v4317_v23  ;;  %v4326_v15 = vsub.f32 %v6357_v22, %v996_v9  ;;  %v1449_v9 = vsel %vm571_vm0, %v1249_v21, 0.0  ;;  %v1251_v47 = vmul.f32 %v4317_v23, %v4317_v23  ;;  %v1001_v21 = vmul.f32 0.010416667, %v3936_v36 }
 0x297   : > { %1441 = vadd.xlane.f32.xlu1 %v1440_v30  ;;  %v6359_v30 = vld [vmem:[#allocation52_spill] sm:$0xff] }
 0x298   : > { %v4320_v16 = vpop.xlane.xlu1 %846  ;;  %6358 = vst [vmem:[#allocation46_spill] sm:$0xff] %v4326_v15  ;;  %v4335_v10 = vsub.f32 %v6359_v30, %v997_v41  ;;  %v1452_v41 = vsel %vm571_vm0, %v1250_v25, 0.0  ;;  %v1252_v28 = vmul.f32 %v4326_v15, %v4326_v15  ;;  %v1002_v25 = vmul.f32 0.010416667, %v3940_v7 }
 0x299   : > { %1444 = vadd.xlane.f32.xlu0 %v1443_v38  ;;  %v6361_v38 = vld [vmem:[#allocation54_spill] sm:$0xff] }
 0x29a   : > { %v4329_v48 = vpop.xlane.xlu0 %849  ;;  %6360 = vst [vmem:[#allocation48_spill] sm:$0xff] %v4335_v10  ;;  %v4344_v22 = vsub.f32 %v6361_v38, %v998_v5  ;;  %v1455_v5 = vsel %vm571_vm0, %v1251_v47, 0.0  ;;  %v1253_v53 = vmul.f32 %v4335_v10, %v4335_v10  ;;  %v1003_v47 = vmul.f32 0.010416667, %v3944_v59 }
 0x29b   : > { %1447 = vadd.xlane.f32.xlu1 %v1446_v51  ;;  %v6363_v51 = vld [vmem:[#allocation56_spill] sm:$0xff] }
 0x29c   : > { %v4338_v63 = vpop.xlane.xlu1 %852  ;;  %6362 = vst [vmem:[#allocation50_spill] sm:$0xff] %v4344_v22  ;;  %v4353_v30 = vsub.f32 %v6363_v51, %v999_v37  ;;  %v1458_v37 = vsel %vm571_vm0, %v1252_v28, 0.0  ;;  %v1254_v36 = vmul.f32 %v4344_v22, %v4344_v22  ;;  %v1004_v28 = vmul.f32 0.010416667, %v3948_v29 }
 0x29d   : > { %1450 = vadd.xlane.f32.xlu0 %v1449_v9  ;;  %v6365_v9 = vld [vmem:[#allocation58_spill] sm:$0xff] }
 0x29e   : > { %v4347_v24 = vpop.xlane.xlu0 %855  ;;  %6364 = vst [vmem:[#allocation52_spill] sm:$0xff] %v4353_v30  ;;  %v4362_v38 = vsub.f32 %v6365_v9, %v1000_v46  ;;  %v1461_v46 = vsel %vm571_vm0, %v1253_v53, 0.0  ;;  %v1255_v7 = vmul.f32 %v4353_v30, %v4353_v30  ;;  %v1005_v53 = vmul.f32 0.010416667, %v3952_v35 }
 0x29f   : > { %1453 = vadd.xlane.f32.xlu1 %v1452_v41  ;;  %v6367_v41 = vld [vmem:[#allocation60_spill] sm:$0xff] }
 0x2a0   : > { %v4356_v23 = vpop.xlane.xlu1 %858  ;;  %6366 = vst [vmem:[#allocation54_spill] sm:$0xff] %v4362_v38  ;;  %v4371_v51 = vsub.f32 %v6367_v41, %v1001_v21  ;;  %v1464_v21 = vsel %vm571_vm0, %v1254_v36, 0.0  ;;  %v1256_v59 = vmul.f32 %v4362_v38, %v4362_v38  ;;  %v6375_v36 = vld [vmem:[#allocation66_spill] sm:$0xff] }
 0x2a1   : > { %1456 = vadd.xlane.f32.xlu0 %v1455_v5  ;;  %v6369_v5 = vld [vmem:[#allocation62_spill] sm:$0xff] }
 0x2a2   : > { %v4365_v15 = vpop.xlane.xlu0 %861  ;;  %6368 = vst [vmem:[#allocation56_spill] sm:$0xff] %v4371_v51  ;;  %v4380_v9 = vsub.f32 %v6369_v5, %v1002_v25  ;;  %v1467_v25 = vsel %vm571_vm0, %v1255_v7, 0.0  ;;  %v1257_v29 = vmul.f32 %v4371_v51, %v4371_v51  ;;  %v1007_v7 = vmul.f32 0.010416667, %v3960_v2 }
 0x2a3   : > { %1459 = vadd.xlane.f32.xlu1 %v1458_v37  ;;  %v6372_v37 = vld [vmem:[#allocation64_spill] sm:$0xff] }
 0x2a4   : > { %v4374_v10 = vpop.xlane.xlu1 %864  ;;  %6370 = vst [vmem:[#allocation58_spill] sm:$0xff] %v4380_v9  ;;  %v4389_v41 = vsub.f32 %v6372_v37, %v1003_v47  ;;  %v1470_v47 = vsel %vm571_vm0, %v1256_v59, 0.0  ;;  %v1258_v35 = vmul.f32 %v4380_v9, %v4380_v9  ;;  %v1008_v59 = vmul.f32 0.010416667, %v3965_v14 }
 0x2a5   : > { %1462 = vadd.xlane.f32.xlu0 %v1461_v46  ;;  %v6374_v46 = vld [vmem:[#allocation134_spill] sm:$0xff] }
 0x2a6   : > { %v4383_v22 = vpop.xlane.xlu0 %867  ;;  %6373 = vst [vmem:[#allocation62_spill] sm:$0xff] %v4389_v41  ;;  %v1006_v5 = vmul.f32 0.010416667, %v6374_v46  ;;  %v6380_v46 = vld [vmem:[#allocation37_spill] sm:$0xff] }
 0x2a7   : > { %6371 = vst [vmem:[#allocation60_spill] sm:$0xff] %v4383_v22  ;;  %1465 = vadd.xlane.f32.xlu1 %v1464_v21  ;;  %v4399_v22 = vsub.f32 %v6375_v36, %v1004_v28  ;;  %v6377_v21 = vld [vmem:[#allocation35_spill] sm:$0xff]  ;;  %v1259_v28 = vmul.f32 %v4389_v41, %v4389_v41 }
 0x2a8   : > { %v4392_v30 = vpop.xlane.xlu1 %870  ;;  %v4407_v37 = vsub.f32 %v6377_v21, %v1005_v53  ;;  %v4416_v36 = vsub.f32 %v6380_v46, %v1006_v5  ;;  %v1476_v53 = vsel %vm571_vm0, %v1258_v35, 0.0 }
 0x2a9   : > { %1468 = vadd.xlane.f32.xlu0 %v1467_v25  ;;  %6376 = vst [vmem:[#allocation64_spill] sm:$0xff] %v4399_v22  ;;  %v1473_v25 = vsel %vm571_vm0, %v1257_v29, 0.0  ;;  %v1260_v2 = vmul.f32 %v4399_v22, %v4399_v22  ;;  %v6384_v29 = vld [vmem:[#allocation135_spill] sm:$0xff]  ;;  %v1479_v5 = vsel %vm571_vm0, %v1259_v28, 0.0  ;;  %v1011_v28 = vmul.f32 0.010416667, %v3986_v54 }
 0x2aa   : > { %v4401_v38 = vpop.xlane.xlu0 %873  ;;  %6378 = vst [vmem:[#allocation134_spill] sm:$0xff] %v4407_v37  ;;  %6381 = vst [vmem:[#allocation35_spill] sm:$0xff] %v4416_v36  ;;  %v1261_v14 = vmul.f32 %v4407_v37, %v4407_v37  ;;  %v1262_v35 = vmul.f32 %v4416_v36, %v4416_v36 }
 0x2ab   : > { %1471 = vadd.xlane.f32.xlu1 %v1470_v47  ;;  %v6382_v47 = vld [vmem:[#allocation39_spill] sm:$0xff] }
 0x2ac   : > { %v4410_v51 = vpop.xlane.xlu1 %876  ;;  %v4425_v21 = vsub.f32 %v6382_v47, %v1007_v7  ;;  %v1482_v47 = vsel %vm571_vm0, %v1260_v2, 0.0  ;;  %v1012_v2 = vmul.f32 0.010416667, %v3994_v17 }
 0x2ad   : > { %6379 = vst [vmem:[#allocation66_spill] sm:$0xff] %v4410_v51  ;;  %1474 = vadd.xlane.f32.xlu0 %v1473_v25  ;;  %v1009_v51 = vmul.f32 0.010416667, %v6384_v29  ;;  %v6385_v25 = vld [vmem:[#allocation41_spill] sm:$0xff]  ;;  %v6387_v29 = vld [vmem:[#allocation43_spill] sm:$0xff] }
 0x2ae   : > { %v4419_v9 = vpop.xlane.xlu0 %879  ;;  %6383 = vst [vmem:[#allocation37_spill] sm:$0xff] %v4425_v21  ;;  %v4436_v46 = vsub.f32 %v6385_v25, %v1008_v59  ;;  %v1263_v59 = vmul.f32 %v4425_v21, %v4425_v21  ;;  %v6390_v25 = vld [vmem:[#allocation45_spill] sm:$0xff] }
 0x2af   : > { %1477 = vadd.xlane.f32.xlu1 %v1476_v53  ;;  %v1010_v53 = vmul.f32 0.010416667, %v3978_v0  ;;  %v4443_v22 = vsub.f32 %v6387_v29, %v1009_v51  ;;  %v1488_v0 = vsel %vm571_vm0, %v1262_v35, 0.0  ;;  %v1013_v51 = vmul.f32 0.010416667, %v4004_v31  ;;  %v6393_v35 = vld [vmem:[#allocation47_spill] sm:$0xff] }
 0x2b0   : > { %v4428_v41 = vpop.xlane.xlu1 %882  ;;  %6386 = vst [vmem:[#allocation39_spill] sm:$0xff] %v4436_v46  ;;  %v1264_v54 = vmul.f32 %v4436_v46, %v4436_v46  ;;  %v1015_v29 = vmul.f32 0.010416667, %v4023_v57  ;;  %v4465_v21 = vsub.f32 %v6393_v35, %v1011_v28  ;;  %v1491_v17 = vsel %vm571_vm0, %v1263_v59, 0.0  ;;  %v6396_v46 = vld [vmem:[#allocation138_spill] sm:$0xff] }
 0x2b1   : > { %1480 = vadd.xlane.f32.xlu0 %v1479_v5  ;;  %6388 = vst [vmem:[#allocation135_spill] sm:$0xff] %v4443_v22  ;;  %v1485_v5 = vsel %vm571_vm0, %v1261_v14, 0.0  ;;  %v4453_v36 = vsub.f32 %v6390_v25, %v1010_v53  ;;  %v1014_v14 = vmul.f32 0.010416667, %v4014_v42  ;;  %v1265_v31 = vmul.f32 %v4443_v22, %v4443_v22  ;;  %v6397_v42 = vld [vmem:[#allocation49_spill] sm:$0xff] }
 0x2b2   : > { %v4439_v7 = vpop.xlane.xlu0 %885  ;;  %6394 = vst [vmem:[#allocation47_spill] sm:$0xff] %v4465_v21  ;;  %v1017_v25 = vmul.f32 0.010416667, %v4041_v60  ;;  %v4475_v57 = vsub.f32 %v6397_v42, %v1012_v2  ;;  %v1494_v35 = vsel %vm571_vm0, %v1264_v54, 0.0  ;;  %v6403_v60 = vld [vmem:[#allocation55_spill] sm:$0xff]  ;;  %v1267_v54 = vmul.f32 %v4465_v21, %v4465_v21 }
 0x2b3   : > { %1483 = vadd.xlane.f32.xlu1 %v1482_v47  ;;  %6391 = vst [vmem:[#allocation43_spill] sm:$0xff] %v4453_v36  ;;  %v1266_v59 = vmul.f32 %v4453_v36, %v4453_v36  ;;  %v6407_v42 = vld [vmem:[#allocation59_spill] sm:$0xff]  ;;  %v6409_v36 = vld [vmem:[#allocation61_spill] sm:$0xff] }
 0x2b4   : > { %v4446_v37 = vpop.xlane.xlu1 %888  ;;  %6398 = vst [vmem:[#allocation138_spill] sm:$0xff] %v4475_v57 }
 0x2b5   : > { %6389 = vst [vmem:[#allocation41_spill] sm:$0xff] %v4446_v37  ;;  %1486 = vadd.xlane.f32.xlu0 %v1485_v5  ;;  %v1016_v5 = vmul.f32 0.010416667, %v4032_v55  ;;  %v6399_v55 = vld [vmem:[#allocation51_spill] sm:$0xff]  ;;  %v4489_v37 = vsub.f32 %v6403_v60, %v1015_v29 }
 0x2b6   : > { %v4457_v47 = vpop.xlane.xlu0 %891  ;;  %v6411_v29 = vld [vmem:[#allocation131_spill] sm:$0xff] }
 0x2b7   : > { %6392 = vst [vmem:[#allocation45_spill] sm:$0xff] %v4457_v47  ;;  %1489 = vadd.xlane.f32.xlu1 %v1488_v0  ;;  %v1018_v47 = vmul.f32 0.010416667, %v6396_v46  ;;  %v4478_v0 = vsub.f32 %v6399_v55, %v1013_v51  ;;  %v6405_v46 = vld [vmem:[#allocation57_spill] sm:$0xff]  ;;  %v1497_v51 = vsel %vm571_vm0, %v1265_v31, 0.0  ;;  %v4500_v55 = vsub.f32 %v6407_v42, %v1017_v25 }
 0x2b8   : > { %v4467_v53 = vpop.xlane.xlu1 %894 }
 0x2b9   : > { %6395 = vst [vmem:[#allocation139_spill] sm:$0xff] %v4467_v53  ;;  %1492 = vadd.xlane.f32.xlu0 %v1491_v17  ;;  %6400 = vst [vmem:[#allocation49_spill] sm:$0xff] %v4478_v0  ;;  %v6401_v53 = vld [vmem:[#allocation53_spill] sm:$0xff]  ;;  %v4492_v17 = vsub.f32 %v6405_v46, %v1016_v5  ;;  %v1500_v5 = vsel %vm571_vm0, %v1266_v59, 0.0  ;;  %v1269_v31 = vmul.f32 %v4478_v0, %v4478_v0  ;;  %v1020_v46 = vmul.f32 0.010416667, %v4068_v49 }
 0x2ba   : > { %v4480_v28 = vpop.xlane.xlu0 %897  ;;  %v4486_v22 = vsub.f32 %v6401_v53, %v1014_v14  ;;  %6404 = vst [vmem:[#allocation53_spill] sm:$0xff] %v4489_v37  ;;  %6408 = vst [vmem:[#allocation57_spill] sm:$0xff] %v4500_v55  ;;  %v4503_v14 = vsub.f32 %v6409_v36, %v1018_v47  ;;  %v1019_v53 = vmul.f32 0.010416667, %v6411_v29  ;;  %v1271_v36 = vmul.f32 %v4489_v37, %v4489_v37 }
 0x2bb   : > { %6406 = vst [vmem:[#allocation55_spill] sm:$0xff] %v4492_v17  ;;  %1495 = vadd.xlane.f32.xlu1 %v1494_v35  ;;  %v1268_v35 = vmul.f32 %v4475_v57, %v4475_v57  ;;  %v1272_v47 = vmul.f32 %v4492_v17, %v4492_v17  ;;  %v1503_v59 = vsel %vm571_vm0, %v1267_v54, 0.0  ;;  %v1273_v42 = vmul.f32 %v4500_v55, %v4500_v55  ;;  %v6414_v57 = vld [vmem:[#allocation65_spill] sm:$0xff] }
 0x2bc   : > { %6402 = vst [vmem:[#allocation51_spill] sm:$0xff] %v4486_v22  ;;  %v4494_v2 = vpop.xlane.xlu1 %900  ;;  %6410 = vst [vmem:[#allocation59_spill] sm:$0xff] %v4503_v14  ;;  %v1270_v25 = vmul.f32 %v4486_v22, %v4486_v22  ;;  %v1274_v29 = vmul.f32 %v4503_v14, %v4503_v14  ;;  %v1021_v37 = vmul.f32 0.010416667, %v4077_v61  ;;  %v1509_v17 = vsel %vm571_vm0, %v1269_v31, 0.0 }
 0x2bd   : > { %1498 = vadd.xlane.f32.xlu0 %v1497_v51  ;;  %v1506_v49 = vsel %vm571_vm0, %v1268_v35, 0.0  ;;  %v1022_v54 = vmul.f32 0.010416667, %v4086_v32  ;;  %v1515_v55 = vsel %vm571_vm0, %v1271_v36, 0.0  ;;  %v1518_v14 = vsel %vm571_vm0, %v1272_v47, 0.0  ;;  %v6416_v47 = vld [vmem:[#allocation68_spill] sm:$0xff] }
 0x2be   : > { %v4506_v60 = vpop.xlane.xlu0 %903  ;;  %v1023_v61 = vmul.f32 0.010416667, %v4095_v50  ;;  %v1025_v35 = vmul.f32 0.010416667, %v4113_v44  ;;  %v1026_v32 = vmul.f32 0.010416667, %v4122_v3 }
 0x2bf   : > { %1501 = vadd.xlane.f32.xlu1 %v1500_v5  ;;  %v6412_v5 = vld [vmem:[#allocation63_spill] sm:$0xff]  ;;  %v1027_v31 = vmul.f32 0.010416667, %v4131_v11  ;;  %v1524_v36 = vsel %vm571_vm0, %v1274_v29, 0.0  ;;  %v1028_v50 = vmul.f32 0.010416667, %v4140_v56 }
 0x2c0   : > { %v4520_v51 = vpop.xlane.xlu1 %906  ;;  %v4528_v22 = vsub.f32 %v6412_v5, %v1019_v53  ;;  %v4540_v53 = vsub.f32 %v6414_v57, %v1020_v46  ;;  %v1024_v5 = vmul.f32 0.010416667, %v4104_v62  ;;  %v4552_v57 = vsub.f32 %v6416_v47, %v1021_v37  ;;  %v6419_v3 = vld [vmem:[#allocation70_spill] sm:$0xff]  ;;  %v6421_v37 = vld [vmem:[#allocation72_spill] sm:$0xff] }
 0x2c1   : > { %1504 = vadd.xlane.f32.xlu0 %v1503_v59  ;;  %v1512_v59 = vsel %vm571_vm0, %v1270_v25, 0.0  ;;  %v1521_v25 = vsel %vm571_vm0, %v1273_v42, 0.0  ;;  %v1029_v62 = vmul.f32 0.010416667, %v4149_v45  ;;  %v1030_v11 = vmul.f32 0.010416667, %v4158_v12 }
 0x2c2   : > { %6413 = vst [vmem:[#allocation61_spill] sm:$0xff] %v4528_v22  ;;  %v4531_v0 = vpop.xlane.xlu0 %909  ;;  %6415 = vst [vmem:[#allocation131_spill] sm:$0xff] %v4540_v53  ;;  %v1275_v44 = vmul.f32 %v4528_v22, %v4528_v22  ;;  %v1032_v42 = vmul.f32 0.010416667, %v4176_v8  ;;  %v4567_v29 = vsub.f32 %v6421_v37, %v1023_v61  ;;  %v6423_v56 = vld [vmem:[#allocation74_spill] sm:$0xff]  ;;  %v6425_v47 = vld [vmem:[#allocation76_spill] sm:$0xff] }
 0x2c3   : > { %1507 = vadd.xlane.f32.xlu1 %v1506_v49  ;;  %6417 = vst [vmem:[#allocation63_spill] sm:$0xff] %v4552_v57  ;;  %v4561_v49 = vsub.f32 %v6419_v3, %v1022_v54  ;;  %v4570_v45 = vsub.f32 %v6423_v56, %v1024_v5  ;;  %v1276_v54 = vmul.f32 %v4540_v53, %v4540_v53  ;;  %v6427_v12 = vld [vmem:[#allocation78_spill] sm:$0xff]  ;;  %v1034_v61 = vmul.f32 0.010416667, %v4194_v27  ;;  %v6439_v27 = vld [vmem:[#allocation91_spill] sm:$0xff] }
 0x2c4   : > { %v4545_v21 = vpop.xlane.xlu1 %912  ;;  %6422 = vst [vmem:[#allocation70_spill] sm:$0xff] %v4567_v29  ;;  %v4580_v3 = vsub.f32 %v6427_v12, %v1026_v32  ;;  %v6431_v5 = vld [vmem:[#allocation82_spill] sm:$0xff]  ;;  %v1527_v53 = vsel %vm571_vm0, %v1275_v44, 0.0  ;;  %v1277_v32 = vmul.f32 %v4552_v57, %v4552_v57 }
 0x2c5   : > { %1510 = vadd.xlane.f32.xlu0 %v1509_v17  ;;  %6420 = vst [vmem:[#allocation68_spill] sm:$0xff] %v4561_v49  ;;  %v1031_v17 = vmul.f32 0.010416667, %v4167_v26  ;;  %6424 = vst [vmem:[#allocation72_spill] sm:$0xff] %v4570_v45  ;;  %v6429_v26 = vld [vmem:[#allocation80_spill] sm:$0xff]  ;;  %v4588_v37 = vsub.f32 %v6431_v5, %v1028_v50  ;;  %v1278_v50 = vmul.f32 %v4561_v49, %v4561_v49  ;;  %v1530_v44 = vsel %vm571_vm0, %v1276_v54, 0.0 }
 0x2c6   : > { %v4556_v46 = vpop.xlane.xlu0 %915  ;;  %6428 = vst [vmem:[#allocation76_spill] sm:$0xff] %v4580_v3  ;;  %v4583_v8 = vsub.f32 %v6429_v26, %v1027_v31  ;;  %v6435_v31 = vld [vmem:[#allocation86_spill] sm:$0xff]  ;;  %v1279_v5 = vmul.f32 %v4567_v29, %v4567_v29  ;;  %v6457_v49 = vld [vmem:[#allocation75_spill] sm:$0xff] }
 0x2c7   : > { %6418 = vst [vmem:[#allocation65_spill] sm:$0xff] %v4556_v46  ;;  %1513 = vadd.xlane.f32.xlu1 %v1512_v59  ;;  %v4573_v46 = vsub.f32 %v6425_v47, %v1025_v35  ;;  %v1033_v59 = vmul.f32 0.010416667, %v4185_v43  ;;  %6432 = vst [vmem:[#allocation80_spill] sm:$0xff] %v4588_v37  ;;  %v6433_v35 = vld [vmem:[#allocation84_spill] sm:$0xff]  ;;  %v4599_v12 = vsub.f32 %v6435_v31, %v1030_v11 }
 0x2c8   : > { %v4575_v22 = vpop.xlane.xlu1 %918  ;;  %6430 = vst [vmem:[#allocation78_spill] sm:$0xff] %v4583_v8  ;;  %v4591_v56 = vsub.f32 %v6433_v35, %v1029_v62  ;;  %v6437_v43 = vld [vmem:[#allocation88_spill] sm:$0xff]  ;;  %v1280_v11 = vmul.f32 %v4570_v45, %v4570_v45  ;;  %v6441_v35 = vld [vmem:[#allocation93_spill] sm:$0xff]  ;;  %v1283_v54 = vmul.f32 %v4583_v8, %v4583_v8  ;;  %v1533_v45 = vsel %vm571_vm0, %v1277_v32, 0.0 }
 0x2c9   : > { %6426 = vst [vmem:[#allocation74_spill] sm:$0xff] %v4573_v46  ;;  %1516 = vadd.xlane.f32.xlu0 %v1515_v55  ;;  %6436 = vst [vmem:[#allocation84_spill] sm:$0xff] %v4599_v12  ;;  %v4602_v26 = vsub.f32 %v6437_v43, %v1031_v17  ;;  %v4605_v55 = vsub.f32 %v6439_v27, %v1032_v42  ;;  %v1281_v17 = vmul.f32 %v4573_v46, %v4573_v46 }
 0x2ca   : > { %6434 = vst [vmem:[#allocation82_spill] sm:$0xff] %v4591_v56  ;;  %v4593_v47 = vpop.xlane.xlu0 %921  ;;  %v4619_v42 = vsub.f32 %v6441_v35, %v1033_v59  ;;  %v1282_v43 = vmul.f32 %v4580_v3, %v4580_v3  ;;  %v1035_v27 = vmul.f32 0.010416667, %v4203_v33  ;;  %v1284_v59 = vmul.f32 %v4588_v37, %v4588_v37 }
 0x2cb   : > { %6438 = vst [vmem:[#allocation86_spill] sm:$0xff] %v4602_v26  ;;  %6440 = vst [vmem:[#allocation88_spill] sm:$0xff] %v4605_v55  ;;  %1519 = vadd.xlane.f32.xlu1 %v1518_v14  ;;  %v6443_v14 = vld [vmem:[#allocation95_spill] sm:$0xff]  ;;  %v1286_v35 = vmul.f32 %v4599_v12, %v4599_v12  ;;  %v1288_v33 = vmul.f32 %v4605_v55, %v4605_v55  ;;  %v1036_v32 = vmul.f32 0.010416667, %v4212_v19  ;;  %v1539_v37 = vsel %vm571_vm0, %v1279_v5, 0.0 }
 0x2cc   : > { %v4609_v62 = vpop.xlane.xlu1 %924  ;;  %6442 = vst [vmem:[#allocation91_spill] sm:$0xff] %v4619_v42  ;;  %v4622_v31 = vsub.f32 %v6443_v14, %v1034_v61  ;;  %v1285_v61 = vmul.f32 %v4591_v56, %v4591_v56  ;;  %v1287_v14 = vmul.f32 %v4602_v26, %v4602_v26  ;;  %v1542_v56 = vsel %vm571_vm0, %v1280_v11, 0.0  ;;  %v6445_v12 = vld [vmem:[#allocation97_spill] sm:$0xff] }
 0x2cd   : > { %1522 = vadd.xlane.f32.xlu0 %v1521_v25  ;;  %v1536_v25 = vsel %vm571_vm0, %v1278_v50, 0.0  ;;  %v4652_v50 = vsel %vm571_vm0, %v1282_v43, 0.0  ;;  %v4655_v26 = vsel %vm571_vm0, %v1283_v54, 0.0  ;;  %v1289_v55 = vmul.f32 %v4619_v42, %v4619_v42 }
 0x2ce   : > { %6444 = vst [vmem:[#allocation93_spill] sm:$0xff] %v4622_v31  ;;  %v4629_v29 = vpop.xlane.xlu0 %927  ;;  %v1290_v19 = vmul.f32 %v4622_v31, %v4622_v31  ;;  %v4662_v5 = vsub.f32 %v6445_v12, %v1035_v27  ;;  %v1037_v11 = vmul.f32 0.010416667, %v4221_v1  ;;  %v4671_v43 = vsel %vm571_vm0, %v1285_v61, 0.0  ;;  %v6447_v1 = vld [vmem:[#allocation99_spill] sm:$0xff] }
 0x2cf   : > { %1525 = vadd.xlane.f32.xlu1 %v1524_v36  ;;  %v4649_v36 = vsel %vm571_vm0, %v1281_v17, 0.0  ;;  %v1038_v54 = vmul.f32 0.010416667, %v4230_v34  ;;  %v4675_v42 = vsel %vm571_vm0, %v1286_v35, 0.0  ;;  %v4678_v31 = vsel %vm571_vm0, %v1287_v14, 0.0 }
 0x2d0   : > { %v4644_v8 = vpop.xlane.xlu1 %930  ;;  %6446 = vst [vmem:[#allocation95_spill] sm:$0xff] %v4662_v5  ;;  %v4681_v12 = vsel %vm571_vm0, %v1288_v33, 0.0  ;;  %v4684_v27 = vsub.f32 %v6447_v1, %v1036_v32  ;;  %v1040_v61 = vmul.f32 0.010416667, %v4248_v13  ;;  %v1041_v3 = vmul.f32 0.010416667, %v4257_v18 }
 0x2d1   : > { %1528 = vadd.xlane.f32.xlu0 %v1527_v53  ;;  %v4668_v53 = vsel %vm571_vm0, %v1284_v59, 0.0  ;;  %v1039_v59 = vmul.f32 0.010416667, %v4239_v20  ;;  %v1043_v35 = vmul.f32 0.010416667, %v4275_v6  ;;  %v4694_v14 = vsel %vm571_vm0, %v1289_v55, 0.0 }
 0x2d2   : > { %v4665_v17 = vpop.xlane.xlu0 %933  ;;  %6448 = vst [vmem:[#allocation97_spill] sm:$0xff] %v4684_v27  ;;  %v4697_v33 = vsel %vm571_vm0, %v1290_v19, 0.0  ;;  %v6449_v32 = vld [vmem:[#allocation67_spill] sm:$0xff]  ;;  %v1044_v20 = vmul.f32 0.010416667, %v4284_v58  ;;  %v6451_v6 = vld [vmem:[#allocation69_spill] sm:$0xff]  ;;  %v4721_v57 = vsub.f32 %v6457_v49, %v1041_v3 }
 0x2d3   : > { %1531 = vadd.xlane.f32.xlu1 %v1530_v44  ;;  %v1042_v44 = vmul.f32 0.010416667, %v4266_v52  ;;  %v4700_v1 = vsub.f32 %v6449_v32, %v1037_v11  ;;  %v1045_v13 = vmul.f32 0.010416667, %v4293_v39  ;;  %v1291_v52 = vmul.f32 %v4662_v5, %v4662_v5  ;;  %v6453_v11 = vld [vmem:[#allocation71_spill] sm:$0xff]  ;;  %v6455_v58 = vld [vmem:[#allocation73_spill] sm:$0xff] }
 0x2d4   : > { %v4689_v34 = vpop.xlane.xlu1 %936  ;;  %v1046_v55 = vmul.f32 0.010416667, %v4302_v4  ;;  %v1047_v19 = vmul.f32 0.010416667, %v4311_v40  ;;  %v1048_v46 = vmul.f32 0.010416667, %v4320_v16  ;;  %v4715_v32 = vsub.f32 %v6453_v11, %v1039_v59 }
 0x2d5   : > { %1534 = vadd.xlane.f32.xlu0 %v1533_v45  ;;  %6450 = vst [vmem:[#allocation99_spill] sm:$0xff] %v4700_v1  ;;  %v4709_v45 = vsub.f32 %v6451_v6, %v1038_v54  ;;  %v4718_v39 = vsub.f32 %v6455_v58, %v1040_v61  ;;  %6458 = vst [vmem:[#allocation73_spill] sm:$0xff] %v4721_v57  ;;  %v1292_v54 = vmul.f32 %v4684_v27, %v4684_v27  ;;  %v6459_v4 = vld [vmem:[#allocation77_spill] sm:$0xff]  ;;  %v6461_v40 = vld [vmem:[#allocation79_spill] sm:$0xff] }
 0x2d6   : > { %v4704_v18 = vpop.xlane.xlu0 %939  ;;  %6454 = vst [vmem:[#allocation69_spill] sm:$0xff] %v4715_v32  ;;  %v4728_v6 = vsub.f32 %v6459_v4, %v1042_v44  ;;  %v4731_v16 = vsub.f32 %v6461_v40, %v1043_v35  ;;  %v1050_v59 = vmul.f32 0.010416667, %v4338_v63  ;;  %v6463_v61 = vld [vmem:[#allocation81_spill] sm:$0xff]  ;;  %v6465_v49 = vld [vmem:[#allocation83_spill] sm:$0xff]  ;;  %v4744_v27 = vsel %vm571_vm0, %v1291_v52, 0.0 }
 0x2d7   : > { %6452 = vst [vmem:[#allocation67_spill] sm:$0xff] %v4709_v45  ;;  %1537 = vadd.xlane.f32.xlu1 %v1536_v25  ;;  %6456 = vst [vmem:[#allocation71_spill] sm:$0xff] %v4718_v39  ;;  %v1049_v25 = vmul.f32 0.010416667, %v4329_v48  ;;  %v4736_v11 = vsub.f32 %v6463_v61, %v1044_v20  ;;  %v4739_v3 = vsub.f32 %v6465_v49, %v1045_v13  ;;  %v6467_v35 = vld [vmem:[#allocation85_spill] sm:$0xff]  ;;  %v6469_v48 = vld [vmem:[#allocation87_spill] sm:$0xff] }
 0x2d8   : > { %v4723_v5 = vpop.xlane.xlu1 %942  ;;  %6460 = vst [vmem:[#allocation75_spill] sm:$0xff] %v4728_v6  ;;  %6462 = vst [vmem:[#allocation77_spill] sm:$0xff] %v4731_v16  ;;  %v1293_v44 = vmul.f32 %v4700_v1, %v4700_v1  ;;  %v4749_v4 = vsub.f32 %v6467_v35, %v1046_v55  ;;  %v4752_v63 = vsub.f32 %v6469_v48, %v1047_v19  ;;  %v4762_v52 = vsel %vm571_vm0, %v1292_v54, 0.0 }
 0x2d9   : > { %1540 = vadd.xlane.f32.xlu0 %v1539_v37  ;;  %6464 = vst [vmem:[#allocation79_spill] sm:$0xff] %v4736_v11  ;;  %6466 = vst [vmem:[#allocation81_spill] sm:$0xff] %v4739_v3  ;;  %v6471_v37 = vld [vmem:[#allocation89_spill] sm:$0xff]  ;;  %v1294_v13 = vmul.f32 %v4709_v45, %v4709_v45  ;;  %v1295_v61 = vmul.f32 %v4715_v32, %v4715_v32  ;;  %v1296_v55 = vmul.f32 %v4718_v39, %v4718_v39 }
 0x2da   : > { %v4741_v58 = vpop.xlane.xlu0 %945  ;;  %6468 = vst [vmem:[#allocation83_spill] sm:$0xff] %v4749_v4  ;;  %6470 = vst [vmem:[#allocation85_spill] sm:$0xff] %v4752_v63  ;;  %v4755_v20 = vsub.f32 %v6471_v37, %v1048_v46  ;;  %v1297_v19 = vmul.f32 %v4721_v57, %v4721_v57  ;;  %v6473_v46 = vld [vmem:[#allocation90_spill] sm:$0xff]  ;;  %v1298_v54 = vmul.f32 %v4728_v6, %v4728_v6  ;;  %v1051_v37 = vmul.f32 0.010416667, %v4347_v24  ;;  %v6483_v6 = vld [vmem:[#allocation60_spill] sm:$0xff] }
 0x2db   : > { %1543 = vadd.xlane.f32.xlu1 %v1542_v56  ;;  %v4771_v49 = vsub.f32 %v6473_v46, %v1049_v25  ;;  %v6475_v56 = vld [vmem:[#allocation92_spill] sm:$0xff]  ;;  %v1299_v48 = vmul.f32 %v4731_v16, %v4731_v16  ;;  %v4785_v57 = vsel %vm571_vm0, %v1293_v44, 0.0  ;;  %v1300_v25 = vmul.f32 %v4736_v11, %v4736_v11 }
 0x2dc   : > { %6472 = vst [vmem:[#allocation87_spill] sm:$0xff] %v4755_v20  ;;  %v4759_v40 = vpop.xlane.xlu1 %948  ;;  %v4774_v35 = vsub.f32 %v6475_v56, %v1050_v59  ;;  %v1301_v59 = vmul.f32 %v4739_v3, %v4739_v3  ;;  %v1302_v46 = vmul.f32 %v4749_v4, %v4749_v4  ;;  %v1303_v24 = vmul.f32 %v4752_v63, %v4752_v63  ;;  %v6479_v4 = vld [vmem:[#allocation94_spill] sm:$0xff] }
 0x2dd   : > { %6474 = vst [vmem:[#allocation89_spill] sm:$0xff] %v4771_v49  ;;  %1546 = vadd.xlane.f32.xlu0 %v4649_v36  ;;  %v4793_v36 = vsel %vm571_vm0, %v1294_v13, 0.0  ;;  %v1304_v44 = vmul.f32 %v4755_v20, %v4755_v20  ;;  %v1052_v56 = vmul.f32 0.010416667, %v4356_v23  ;;  %v4805_v3 = vsel %vm571_vm0, %v1295_v61, 0.0 }
 0x2de   : > { %6476 = vst [vmem:[#allocation90_spill] sm:$0xff] %v4774_v35  ;;  %v4782_v39 = vpop.xlane.xlu0 %951  ;;  %v4811_v13 = vsel %vm571_vm0, %v1297_v19, 0.0  ;;  %v4815_v63 = vsel %vm571_vm0, %v1298_v54, 0.0  ;;  %v4818_v20 = vsel %vm571_vm0, %v1299_v48, 0.0  ;;  %v1305_v23 = vmul.f32 %v4771_v49, %v4771_v49 }
 0x2df   : > { %6477 = vst [vmem:[#allocation92_spill] sm:$0xff] %v4782_v39  ;;  %1549 = vadd.xlane.f32.xlu1 %v4652_v50  ;;  %v4808_v50 = vsel %vm571_vm0, %v1296_v55, 0.0  ;;  %v1306_v61 = vmul.f32 %v4774_v35, %v4774_v35  ;;  %v4825_v55 = vsub.f32 %v6479_v4, %v1051_v37  ;;  %v1053_v19 = vmul.f32 0.010416667, %v4365_v15  ;;  %v6481_v15 = vld [vmem:[#allocation96_spill] sm:$0xff] }
 0x2e0   : > { %v4802_v11 = vpop.xlane.xlu1 %954  ;;  %v4832_v54 = vsel %vm571_vm0, %v1301_v59, 0.0  ;;  %v4836_v49 = vsel %vm571_vm0, %v1302_v46, 0.0  ;;  %v4839_v35 = vsel %vm571_vm0, %v1303_v24, 0.0  ;;  %v4842_v4 = vsel %vm571_vm0, %v1304_v44, 0.0  ;;  %v6484_v44 = vld [vmem:[#allocation101_spill] sm:$0xff] }
 0x2e1   : > { %6478 = vst [vmem:[#allocation140_spill] sm:$0xff] %v4802_v11  ;;  %1552 = vadd.xlane.f32.xlu0 %v4655_v26  ;;  %6480 = vst [vmem:[#allocation94_spill] sm:$0xff] %v4825_v55  ;;  %v4829_v26 = vsel %vm571_vm0, %v1300_v25, 0.0  ;;  %v4845_v37 = vsub.f32 %v6481_v15, %v1052_v56  ;;  %v1054_v25 = vmul.f32 0.010416667, %v4374_v10  ;;  %v4852_v46 = vsel %vm571_vm0, %v1305_v23, 0.0 }
 0x2e2   : > { %v1343_v16 = vpop.xlane.xlu0 %1342  ;;  %v1055_v59 = vmul.f32 0.010416667, %v6483_v6  ;;  %v4855_v24 = vsel %vm571_vm0, %v1306_v61, 0.0  ;;  %v4858_v56 = vsub.f32 %v6484_v44, %v1053_v19  ;;  %v1057_v10 = vmul.f32 0.010416667, %v4401_v38  ;;  %v6486_v15 = vld [vmem:[#allocation66_spill] sm:$0xff] }
 0x2e3   : > { %v1725_v48 = vmul.f32 0.010416667, %v1343_v16  ;;  %1555 = vadd.xlane.f32.xlu1 %v4668_v53  ;;  %6482 = vst [vmem:[#allocation96_spill] sm:$0xff] %v4845_v37  ;;  %v1056_v16 = vmul.f32 0.010416667, %v4392_v30  ;;  %v1307_v30 = vmul.f32 %v4825_v55, %v4825_v55  ;;  %v6487_v61 = vld [vmem:[#allocation103_spill] sm:$0xff]  ;;  %v1308_v55 = vmul.f32 %v4845_v37, %v4845_v37 }
 0x2e4   : > { %v1346_v32 = vpop.xlane.xlu1 %1345  ;;  %6485 = vst [vmem:[#allocation60_spill] sm:$0xff] %v4858_v56  ;;  %v1058_v6 = vmul.f32 0.010416667, %v6486_v15  ;;  %v6489_v19 = vld [vmem:[#allocation105_spill] sm:$0xff]  ;;  %v6491_v38 = vld [vmem:[#allocation107_spill] sm:$0xff] }
 0x2e5   : > { %v1853_v53 = vadd.f32 1e-05, %v1725_v48  ;;  %v1726_v45 = vmul.f32 0.010416667, %v1346_v32  ;;  %1558 = vadd.xlane.f32.xlu0 %v4671_v43  ;;  %v1059_v32 = vmul.f32 0.010416667, %v4419_v9  ;;  %v4867_v48 = vsub.f32 %v6487_v61, %v1054_v25 }
 0x2e6   : > { %v1349_v1 = vpop.xlane.xlu0 %1348  ;;  %v4870_v44 = vsub.f32 %v6489_v19, %v1055_v59  ;;  %v4873_v15 = vsub.f32 %v6491_v38, %v1056_v16  ;;  %v1060_v9 = vmul.f32 0.010416667, %v4428_v41  ;;  %v4887_v61 = vsel %vm571_vm0, %v1307_v30, 0.0  ;;  %v6497_v41 = vld [vmem:[#allocation113_spill] sm:$0xff]  ;;  %v6499_v38 = vld [vmem:[#allocation115_spill] sm:$0xff] }
 0x2e7   : > { %2804 = vrsqrt.f32 %v1853_v53  ;;  %v1854_v43 = vadd.f32 1e-05, %v1726_v45  ;;  %v1727_v23 = vmul.f32 0.010416667, %v1349_v1  ;;  %1561 = vadd.xlane.f32.xlu1 %v4675_v42  ;;  %6488 = vst [vmem:[#allocation101_spill] sm:$0xff] %v4867_v48  ;;  %v6493_v42 = vld [vmem:[#allocation109_spill] sm:$0xff]  ;;  %v1309_v19 = vmul.f32 %v4858_v56, %v4858_v56 }
 0x2e8   : > { %6490 = vst [vmem:[#allocation66_spill] sm:$0xff] %v4870_v44  ;;  %6492 = vst [vmem:[#allocation103_spill] sm:$0xff] %v4873_v15  ;;  %v1352_v11 = vpop.xlane.xlu1 %1351  ;;  %v4880_v25 = vsub.f32 %v6493_v42, %v1057_v10  ;;  %v6495_v53 = vld [vmem:[#allocation111_spill] sm:$0xff]  ;;  %v1310_v30 = vmul.f32 %v4867_v48, %v4867_v48  ;;  %v4905_v42 = vsub.f32 %v6499_v38, %v1060_v9 }
 0x2e9   : > { %2806 = vrsqrt.f32 %v1854_v43  ;;  %v1855_v45 = vadd.f32 1e-05, %v1727_v23  ;;  %v1728_v1 = vmul.f32 0.010416667, %v1352_v11  ;;  %1564 = vadd.xlane.f32.xlu0 %v4678_v31  ;;  %v4883_v59 = vsub.f32 %v6495_v53, %v1058_v6  ;;  %v6507_v48 = vld [vmem:[#allocation7_spill] sm:$0xff] }
 0x2ea   : > { %6494 = vst [vmem:[#allocation105_spill] sm:$0xff] %v4880_v25  ;;  %v1355_v16 = vpop.xlane.xlu0 %1354  ;;  %v4892_v43 = vsub.f32 %v6497_v41, %v1059_v32  ;;  %v4896_v6 = vsel %vm571_vm0, %v1308_v55, 0.0  ;;  %v1311_v23 = vmul.f32 %v4870_v44, %v4870_v44  ;;  %v1312_v32 = vmul.f32 %v4873_v15, %v4873_v15  ;;  %6500 = vst [vmem:[#allocation111_spill] sm:$0xff] %v4905_v42 }
 0x2eb   : > { %6496 = vst [vmem:[#allocation107_spill] sm:$0xff] %v4883_v59  ;;  %2808 = vrsqrt.f32 %v1855_v45  ;;  %v1856_v31 = vadd.f32 1e-05, %v1728_v1  ;;  %v1729_v11 = vmul.f32 0.010416667, %v1355_v16  ;;  %1567 = vadd.xlane.f32.xlu1 %v4681_v12  ;;  %v4915_v53 = vsel %vm571_vm0, %v1309_v19, 0.0 }
 0x2ec   : > { %6498 = vst [vmem:[#allocation109_spill] sm:$0xff] %v4892_v43  ;;  %v1358_v10 = vpop.xlane.xlu1 %1357  ;;  %v1061_v12 = vmul.f32 0.010416667, %v4439_v7  ;;  %v1313_v16 = vmul.f32 %v4880_v25, %v4880_v25  ;;  %v1314_v9 = vmul.f32 %v4883_v59, %v4883_v59  ;;  %v1315_v7 = vmul.f32 %v4892_v43, %v4892_v43  ;;  %v6504_v43 = vld [vmem:[#allocation136_spill] sm:$0xff] }
 0x2ed   : > { %2810 = vrsqrt.f32 %v1856_v31  ;;  %v1857_v45 = vadd.f32 1e-05, %v1729_v11  ;;  %v1730_v1 = vmul.f32 0.010416667, %v1358_v10  ;;  %1570 = vadd.xlane.f32.xlu0 %v4694_v14  ;;  %v6501_v14 = vld [vmem:[#allocation41_spill] sm:$0xff]  ;;  %v4926_v19 = vsel %vm571_vm0, %v1310_v30, 0.0 }
 0x2ee   : > { %v1361_v55 = vpop.xlane.xlu0 %1360  ;;  %v1062_v11 = vmul.f32 0.010416667, %v6501_v14  ;;  %v4929_v38 = vsel %vm571_vm0, %v1311_v23, 0.0  ;;  %v4932_v59 = vsel %vm571_vm0, %v1312_v32, 0.0  ;;  %v1316_v30 = vmul.f32 %v4905_v42, %v4905_v42  ;;  %v6502_v14 = vld [vmem:[#allocation117_spill] sm:$0xff]  ;;  %v6505_v42 = vld [vmem:[#allocation119_spill] sm:$0xff] }
 0x2ef   : > { %2812 = vrsqrt.f32 %v1857_v45  ;;  %v1858_v41 = vadd.f32 1e-05, %v1730_v1  ;;  %v1731_v31 = vmul.f32 0.010416667, %v1361_v55  ;;  %1573 = vadd.xlane.f32.xlu1 %v4697_v33  ;;  %v4937_v33 = vld [vmem:[%s5886_s1] ss:$0 sm:$0xff]  ;;  %v4943_v23 = vsub.f32 %v6502_v14, %v1061_v12 }
 0x2f0   : > { %v1364_v10 = vpop.xlane.xlu1 %1363  ;;  %v4949_v32 = vld [vmem:[%s5887_s2] ss:$0 sm:$0xff]  ;;  %v4960_v14 = vsel %vm571_vm0, %v1315_v7, 0.0  ;;  %v4963_v44 = vsub.f32 %v6505_v42, %v1062_v11  ;;  %v4975_v42 = vsel %vm571_vm0, %v1316_v30, 0.0 }
 0x2f1   : > { %v2805_v45 = vpop.eup %2804  ;;  %2814 = vrsqrt.f32 %v1858_v41  ;;  %v1859_v1 = vadd.f32 1e-05, %v1731_v31  ;;  %v1732_v55 = vmul.f32 0.010416667, %v1364_v10  ;;  %1576 = vadd.xlane.f32.xlu0 %v4744_v27  ;;  %6503 = vst [vmem:[#allocation113_spill] sm:$0xff] %v4943_v23  ;;  %v4953_v41 = vsel %vm571_vm0, %v1313_v16, 0.0 }
 0x2f2   : > { %v2109_v25 = vmul.f32 %v2805_v45, %v6504_v43  ;;  %v1367_v15 = vpop.xlane.xlu0 %1366  ;;  %v4956_v27 = vsel %vm571_vm0, %v1314_v9, 0.0  ;;  %v6506_v43 = vld [vmem:[#allocation45_spill] sm:$0xff] }
 0x2f3   : > { %v2807_v31 = vpop.eup %2806  ;;  %2816 = vrsqrt.f32 %v1859_v1  ;;  %v1860_v10 = vadd.f32 1e-05, %v1732_v55  ;;  %v1733_v12 = vmul.f32 0.010416667, %v1367_v15  ;;  %1579 = vadd.xlane.f32.xlu1 %v4762_v52  ;;  %v1063_v45 = vmul.f32 0.010416667, %v6506_v43 }
 0x2f4   : > { %v2244_v16 = vmul.f32 %v4937_v33, %v2109_v25  ;;  %v2110_v56 = vmul.f32 %v2807_v31, %v6507_v48  ;;  %v1370_v9 = vpop.xlane.xlu1 %1369  ;;  %v6508_v7 = vld [vmem:[#allocation9_spill] sm:$0xff]  ;;  %v1317_v55 = vmul.f32 %v4943_v23, %v4943_v23 }
 0x2f5   : > { %v2809_v37 = vpop.eup %2808  ;;  %2818 = vrsqrt.f32 %v1860_v10  ;;  %v1861_v52 = vadd.f32 1e-05, %v1733_v12  ;;  %v1734_v15 = vmul.f32 0.010416667, %v1370_v9  ;;  %1582 = vadd.xlane.f32.xlu0 %v4785_v57  ;;  %v6509_v10 = vld [vmem:[#allocation139_spill] sm:$0xff]  ;;  %v6510_v30 = vld [vmem:[#allocation121_spill] sm:$0xff] }
 0x2f6   : > { %v2379_v25 = vadd.f32 %v4949_v32, %v2244_v16  ;;  %v2245_v48 = vmul.f32 %v4937_v33, %v2110_v56  ;;  %v2111_v11 = vmul.f32 %v2809_v37, %v6508_v7  ;;  %v1373_v1 = vpop.xlane.xlu0 %1372  ;;  %v1064_v12 = vmul.f32 0.010416667, %v6509_v10  ;;  %v6511_v16 = vld [vmem:[#allocation11_spill] sm:$0xff] }
 0x2f7   : > { %v2811_v31 = vpop.eup %2810  ;;  %2820 = vrsqrt.f32 %v1861_v52  ;;  %v1862_v43 = vadd.f32 1e-05, %v1734_v15  ;;  %v1735_v57 = vmul.f32 0.010416667, %v1373_v1  ;;  %1585 = vadd.xlane.f32.xlu1 %v4793_v36  ;;  %v4985_v9 = vsub.f32 %v6510_v30, %v1063_v45 }
 0x2f8   : > { %2507 = vst.msk [vmem:[%s4971_s9] sm:$0xff] %vm571_vm0, %v2379_v25  ;;  %v2380_v37 = vadd.f32 %v4949_v32, %v2245_v48  ;;  %v2246_v56 = vmul.f32 %v4937_v33, %v2111_v11  ;;  %v2112_v7 = vmul.f32 %v2811_v31, %v6511_v16  ;;  %v1376_v23 = vpop.xlane.xlu1 %1375  ;;  %v1318_v36 = vmul.f32 %v4963_v44, %v4963_v44  ;;  %v6512_v25 = vld [vmem:[#allocation13_spill] sm:$0xff] }
 0x2f9   : > { %v2813_v39 = vpop.eup %2812  ;;  %2822 = vrsqrt.f32 %v1862_v43  ;;  %v1863_v52 = vadd.f32 1e-05, %v1735_v57  ;;  %v1736_v10 = vmul.f32 0.010416667, %v1376_v23  ;;  %1588 = vadd.xlane.f32.xlu0 %v4805_v3  ;;  %v5001_v1 = vsel %vm571_vm0, %v1317_v55, 0.0  ;;  %v6513_v23 = vld [vmem:[#allocation123_spill] sm:$0xff] }
 0x2fa   : > { %2508 = vst.msk [vmem:[%s4971_s9 + $0x8] sm:$0xff] %vm571_vm0, %v2380_v37  ;;  %v2381_v45 = vadd.f32 %v4949_v32, %v2246_v56  ;;  %v2247_v15 = vmul.f32 %v4937_v33, %v2112_v7  ;;  %v2113_v48 = vmul.f32 %v2813_v39, %v6512_v25  ;;  %v1379_v11 = vpop.xlane.xlu0 %1378  ;;  %v5004_v43 = vsub.f32 %v6513_v23, %v1064_v12  ;;  %v6514_v55 = vld [vmem:[#allocation15_spill] sm:$0xff]  ;;  %v6516_v23 = vld [vmem:[#allocation125_spill] sm:$0xff] }
 0x2fb   : > { %v2815_v31 = vpop.eup %2814  ;;  %2824 = vrsqrt.f32 %v1863_v52  ;;  %v1864_v3 = vadd.f32 1e-05, %v1736_v10  ;;  %v1737_v57 = vmul.f32 0.010416667, %v1379_v11  ;;  %1591 = vadd.xlane.f32.xlu1 %v4808_v50  ;;  %v1065_v30 = vmul.f32 0.010416667, %v4480_v28 }
 0x2fc   : > { %2509 = vst.msk [vmem:[%s4971_s9 + $0x10] sm:$0xff] %vm571_vm0, %v2381_v45  ;;  %v2382_v39 = vadd.f32 %v4949_v32, %v2247_v15  ;;  %v2248_v37 = vmul.f32 %v4937_v33, %v2113_v48  ;;  %v2114_v56 = vmul.f32 %v2815_v31, %v6514_v55  ;;  %v1382_v16 = vpop.xlane.xlu1 %1381  ;;  %v5015_v50 = vsel %vm571_vm0, %v1318_v36, 0.0  ;;  %v6515_v45 = vld [vmem:[#allocation17_spill] sm:$0xff] }
 0x2fd   : > { %v2817_v7 = vpop.eup %2816  ;;  %2826 = vrsqrt.f32 %v1864_v3  ;;  %v1865_v12 = vadd.f32 1e-05, %v1737_v57  ;;  %v1738_v52 = vmul.f32 0.010416667, %v1382_v16  ;;  %1594 = vadd.xlane.f32.xlu0 %v4811_v13  ;;  %v1319_v48 = vmul.f32 %v4985_v9, %v4985_v9 }
 0x2fe   : > { %2510 = vst.msk [vmem:[%s4971_s9 + $0x18] sm:$0xff] %vm571_vm0, %v2382_v39  ;;  %v2383_v28 = vadd.f32 %v4949_v32, %v2248_v37  ;;  %v2249_v10 = vmul.f32 %v4937_v33, %v2114_v56  ;;  %v2115_v15 = vmul.f32 %v2817_v7, %v6515_v45  ;;  %v1385_v25 = vpop.xlane.xlu0 %1384  ;;  %v1066_v31 = vmul.f32 0.010416667, %v4494_v2  ;;  %v6517_v37 = vld [vmem:[#allocation137_spill] sm:$0xff] }
 0x2ff   : > { %v2819_v11 = vpop.eup %2818  ;;  %2828 = vrsqrt.f32 %v1865_v12  ;;  %v1866_v13 = vadd.f32 1e-05, %v1738_v52  ;;  %v1739_v36 = vmul.f32 0.010416667, %v1385_v25  ;;  %1597 = vadd.xlane.f32.xlu1 %v4815_v63  ;;  %v5027_v3 = vsub.f32 %v6516_v23, %v1065_v30  ;;  %v6518_v52 = vld [vmem:[#allocation20_spill] sm:$0xff]  ;;  %v6519_v25 = vld [vmem:[#allocation127_spill] sm:$0xff] }
 0x300   : > { %2511 = vst.msk [vmem:[%s4971_s9 + $0x20] sm:$0xff] %vm571_vm0, %v2383_v28  ;;  %v2384_v57 = vadd.f32 %v4949_v32, %v2249_v10  ;;  %v2250_v39 = vmul.f32 %v4937_v33, %v2115_v15  ;;  %v2116_v55 = vmul.f32 %v2819_v11, %v6517_v37  ;;  %v1388_v56 = vpop.xlane.xlu1 %1387  ;;  %v1320_v63 = vmul.f32 %v5004_v43, %v5004_v43 }
 0x301   : > { %v2821_v16 = vpop.eup %2820  ;;  %2830 = vrsqrt.f32 %v1866_v13  ;;  %v1867_v2 = vadd.f32 1e-05, %v1739_v36  ;;  %v1740_v7 = vmul.f32 0.010416667, %v1388_v56  ;;  %1600 = vadd.xlane.f32.xlu0 %v4818_v20  ;;  %v5043_v45 = vsel %vm571_vm0, %v1319_v48, 0.0  ;;  %v6520_v48 = vld [vmem:[#allocation22_spill] sm:$0xff] }
 0x302   : > { %2512 = vst.msk [vmem:[%s4971_s9 + $0x28] sm:$0xff] %vm571_vm0, %v2384_v57  ;;  %v2385_v30 = vadd.f32 %v4949_v32, %v2250_v39  ;;  %v2251_v12 = vmul.f32 %v4937_v33, %v2116_v55  ;;  %v2117_v28 = vmul.f32 %v2821_v16, %v6518_v52  ;;  %v1391_v10 = vpop.xlane.xlu0 %1390  ;;  %v5046_v11 = vsub.f32 %v6519_v25, %v1066_v31 }
 0x303   : > { %v2823_v15 = vpop.eup %2822  ;;  %2832 = vrsqrt.f32 %v1867_v2  ;;  %v1868_v20 = vadd.f32 1e-05, %v1740_v7  ;;  %v1741_v13 = vmul.f32 0.010416667, %v1391_v10  ;;  %1603 = vadd.xlane.f32.xlu1 %v4829_v26  ;;  %v1067_v36 = vmul.f32 0.010416667, %v4506_v60 }
 0x304   : > { %2513 = vst.msk [vmem:[%s4971_s9 + $0x30] sm:$0xff] %vm571_vm0, %v2385_v30  ;;  %v2386_v23 = vadd.f32 %v4949_v32, %v2251_v12  ;;  %v2252_v57 = vmul.f32 %v4937_v33, %v2117_v28  ;;  %v2118_v39 = vmul.f32 %v2823_v15, %v6520_v48  ;;  %v1394_v37 = vpop.xlane.xlu1 %1393  ;;  %v5057_v26 = vsel %vm571_vm0, %v1320_v63, 0.0  ;;  %v6521_v2 = vld [vmem:[#allocation24_spill] sm:$0xff]  ;;  %v6522_v10 = vld [vmem:[#allocation129_spill] sm:$0xff] }
 0x305   : > { %v2825_v55 = vpop.eup %2824  ;;  %2834 = vrsqrt.f32 %v1868_v20  ;;  %v1869_v31 = vadd.f32 1e-05, %v1741_v13  ;;  %v1742_v56 = vmul.f32 0.010416667, %v1394_v37  ;;  %1606 = vadd.xlane.f32.xlu0 %v4832_v54  ;;  %v1321_v12 = vmul.f32 %v5027_v3, %v5027_v3  ;;  %v6523_v13 = vld [vmem:[#allocation132_spill] sm:$0xff] }
 0x306   : > { %2514 = vst.msk [vmem:[%s4971_s9 + $0x38] sm:$0xff] %vm571_vm0, %v2386_v23  ;;  %v2387_v60 = vadd.f32 %v4949_v32, %v2252_v57  ;;  %v2253_v16 = vmul.f32 %v4937_v33, %v2118_v39  ;;  %v2119_v7 = vmul.f32 %v2825_v55, %v6521_v2  ;;  %v1397_v30 = vpop.xlane.xlu0 %1396  ;;  %v1068_v28 = vmul.f32 0.010416667, %v4520_v51  ;;  %v6524_v55 = vld [vmem:[#allocation26_spill] sm:$0xff] }
 0x307   : > { %v2827_v52 = vpop.eup %2826  ;;  %2836 = vrsqrt.f32 %v1869_v31  ;;  %v1870_v54 = vadd.f32 1e-05, %v1742_v56  ;;  %v1743_v63 = vmul.f32 0.010416667, %v1397_v30  ;;  %1609 = vadd.xlane.f32.xlu1 %v4836_v49  ;;  %v5069_v15 = vsub.f32 %v6522_v10, %v1067_v36  ;;  %v6525_v2 = vld [vmem:[#allocation130_spill] sm:$0xff] }
 0x308   : > { %2515 = vst.msk [vmem:[%s4971_s9 + $0x40] sm:$0xff] %vm571_vm0, %v2387_v60  ;;  %v2388_v25 = vadd.f32 %v4949_v32, %v2253_v16  ;;  %v2254_v20 = vmul.f32 %v4937_v33, %v2119_v7  ;;  %v2120_v23 = vmul.f32 %v2827_v52, %v6523_v13  ;;  %v1400_v57 = vpop.xlane.xlu1 %1399  ;;  %v1322_v49 = vmul.f32 %v5046_v11, %v5046_v11 }
 0x309   : > { %v2829_v48 = vpop.eup %2828  ;;  %2838 = vrsqrt.f32 %v1870_v54  ;;  %v1871_v51 = vadd.f32 1e-05, %v1743_v63  ;;  %v1744_v39 = vmul.f32 0.010416667, %v1400_v57  ;;  %1612 = vadd.xlane.f32.xlu0 %v4839_v35  ;;  %v5085_v60 = vsel %vm571_vm0, %v1321_v12, 0.0  ;;  %v6526_v12 = vld [vmem:[#allocation133_spill] sm:$0xff] }
 0x30a   : > { %2516 = vst.msk [vmem:[%s4971_s9 + $0x48] sm:$0xff] %vm571_vm0, %v2388_v25  ;;  %v2389_v36 = vadd.f32 %v4949_v32, %v2254_v20  ;;  %v2255_v37 = vmul.f32 %v4937_v33, %v2120_v23  ;;  %v2121_v31 = vmul.f32 %v2829_v48, %v6524_v55  ;;  %v1403_v56 = vpop.xlane.xlu0 %1402  ;;  %v5088_v7 = vsub.f32 %v6525_v2, %v1068_v28  ;;  %v6527_v57 = vld [vmem:[#allocation28_spill] sm:$0xff]  ;;  %v6528_v55 = vld [vmem:[#allocation98_spill] sm:$0xff] }
 0x30b   : > { %v2831_v16 = vpop.eup %2830  ;;  %2840 = vrsqrt.f32 %v1871_v51  ;;  %v1872_v35 = vadd.f32 1e-05, %v1744_v39  ;;  %v1745_v30 = vmul.f32 0.010416667, %v1403_v56  ;;  %1615 = vadd.xlane.f32.xlu1 %v4842_v4  ;;  %v1069_v52 = vmul.f32 0.010416667, %v4531_v0 }
 0x30c   : > { %2517 = vst.msk [vmem:[%s4971_s9 + $0x50] sm:$0xff] %vm571_vm0, %v2389_v36  ;;  %v2390_v54 = vadd.f32 %v4949_v32, %v2255_v37  ;;  %v2256_v63 = vmul.f32 %v4937_v33, %v2121_v31  ;;  %v2122_v10 = vmul.f32 %v2831_v16, %v6526_v12  ;;  %v1406_v25 = vpop.xlane.xlu1 %1405  ;;  %v5099_v4 = vsel %vm571_vm0, %v1322_v49, 0.0  ;;  %v6529_v2 = vld [vmem:[#allocation30_spill] sm:$0xff] }
 0x30d   : > { %v2833_v20 = vpop.eup %2832  ;;  %2842 = vrsqrt.f32 %v1872_v35  ;;  %v1873_v28 = vadd.f32 1e-05, %v1745_v30  ;;  %v1746_v13 = vmul.f32 0.010416667, %v1406_v25  ;;  %1618 = vadd.xlane.f32.xlu0 %v4852_v46  ;;  %v1323_v39 = vmul.f32 %v5069_v15, %v5069_v15 }
 0x30e   : > { %2518 = vst.msk [vmem:[%s4971_s9 + $0x58] sm:$0xff] %vm571_vm0, %v2390_v54  ;;  %v2391_v0 = vadd.f32 %v4949_v32, %v2256_v63  ;;  %v2257_v23 = vmul.f32 %v4937_v33, %v2122_v10  ;;  %v2123_v48 = vmul.f32 %v2833_v20, %v6527_v57  ;;  %v1409_v51 = vpop.xlane.xlu0 %1408  ;;  %v1070_v37 = vmul.f32 0.010416667, %v4545_v21  ;;  %v6530_v10 = vld [vmem:[#allocation32_spill] sm:$0xff] }
 0x30f   : > { %v2835_v36 = vpop.eup %2834  ;;  %2844 = vrsqrt.f32 %v1873_v28  ;;  %v1874_v46 = vadd.f32 1e-05, %v1746_v13  ;;  %v1747_v49 = vmul.f32 0.010416667, %v1409_v51  ;;  %1621 = vadd.xlane.f32.xlu1 %v4855_v24  ;;  %v5111_v31 = vsub.f32 %v6528_v55, %v1069_v52 }
 0x310   : > { %2519 = vst.msk [vmem:[%s4971_s9 + $0x60] sm:$0xff] %vm571_vm0, %v2391_v0  ;;  %v2392_v56 = vadd.f32 %v4949_v32, %v2257_v23  ;;  %v2258_v16 = vmul.f32 %v4937_v33, %v2123_v48  ;;  %v2124_v35 = vmul.f32 %v2835_v36, %v6529_v2  ;;  %v1412_v30 = vpop.xlane.xlu1 %1411  ;;  %v1324_v24 = vmul.f32 %v5088_v7, %v5088_v7  ;;  %v6531_v0 = vld [vmem:[#allocation100_spill] sm:$0xff]  ;;  %v6532_v48 = vld [vmem:[#allocation65_spill] sm:$0xff] }
 0x311   : > { %v2837_v54 = vpop.eup %2836  ;;  %2846 = vrsqrt.f32 %v1874_v46  ;;  %v1875_v21 = vadd.f32 1e-05, %v1747_v49  ;;  %v1748_v63 = vmul.f32 0.010416667, %v1412_v30  ;;  %1624 = vadd.xlane.f32.xlu0 %v4887_v61  ;;  %v5127_v28 = vsel %vm571_vm0, %v1323_v39, 0.0  ;;  %v6533_v39 = vld [vmem:[#allocation34_spill] sm:$0xff] }
 0x312   : > { %2520 = vst.msk [vmem:[%s4971_s9 + $0x68] sm:$0xff] %vm571_vm0, %v2392_v56  ;;  %v2393_v52 = vadd.f32 %v4949_v32, %v2258_v16  ;;  %v2259_v12 = vmul.f32 %v4937_v33, %v2124_v35  ;;  %v2125_v25 = vmul.f32 %v2837_v54, %v6530_v10  ;;  %v1415_v20 = vpop.xlane.xlu0 %1414  ;;  %v5130_v23 = vsub.f32 %v6531_v0, %v1070_v37  ;;  %v6534_v30 = vld [vmem:[#allocation5_spill] sm:$0xff]  ;;  %v6535_v10 = vld [vmem:[#allocation102_spill] sm:$0xff] }
 0x313   : > { %v2839_v13 = vpop.eup %2838  ;;  %2848 = vrsqrt.f32 %v1875_v21  ;;  %v1876_v61 = vadd.f32 1e-05, %v1748_v63  ;;  %v1749_v57 = vmul.f32 0.010416667, %v1415_v20  ;;  %1627 = vadd.xlane.f32.xlu1 %v4896_v6  ;;  %v1071_v51 = vmul.f32 0.010416667, %v6532_v48 }
 0x314   : > { %2521 = vst.msk [vmem:[%s4971_s9 + $0x70] sm:$0xff] %vm571_vm0, %v2393_v52  ;;  %v2394_v36 = vadd.f32 %v4949_v32, %v2259_v12  ;;  %v2260_v46 = vmul.f32 %v4937_v33, %v2125_v25  ;;  %v2126_v49 = vmul.f32 %v2839_v13, %v6533_v39  ;;  %v1418_v55 = vpop.xlane.xlu1 %1417  ;;  %v5141_v6 = vsel %vm571_vm0, %v1324_v24, 0.0  ;;  %v6536_v0 = vld [vmem:[#allocation6_spill] sm:$0xff]  ;;  %v6537_v39 = vld [vmem:[#allocation8_spill] sm:$0xff] }
 0x315   : > { %v2841_v56 = vpop.eup %2840  ;;  %2850 = vrsqrt.f32 %v1876_v61  ;;  %v1877_v37 = vadd.f32 1e-05, %v1749_v57  ;;  %v1750_v16 = vmul.f32 0.010416667, %v1418_v55  ;;  %1630 = vadd.xlane.f32.xlu0 %v4915_v53  ;;  %v1325_v63 = vmul.f32 %v5111_v31, %v5111_v31 }
 0x316   : > { %2522 = vst.msk [vmem:[%s4971_s9 + $0x78] sm:$0xff] %vm571_vm0, %v2394_v36  ;;  %v2395_v2 = vadd.f32 %v4949_v32, %v2260_v46  ;;  %v2261_v35 = vmul.f32 %v4937_v33, %v2126_v49  ;;  %v2127_v54 = vmul.f32 %v2841_v56, %v6534_v30  ;;  %v1421_v21 = vpop.xlane.xlu0 %1420  ;;  %v1072_v12 = vmul.f32 0.010416667, %v4575_v22 }
 0x317   : > { %v2843_v52 = vpop.eup %2842  ;;  %2852 = vrsqrt.f32 %v1877_v37  ;;  %v1878_v53 = vadd.f32 1e-05, %v1750_v16  ;;  %v1751_v24 = vmul.f32 0.010416667, %v1421_v21  ;;  %1633 = vadd.xlane.f32.xlu1 %v4926_v19  ;;  %v5153_v25 = vsub.f32 %v6535_v10, %v1071_v51  ;;  %v6538_v16 = vld [vmem:[#allocation104_spill] sm:$0xff] }
 0x318   : > { %2523 = vst.msk [vmem:[%s4971_s9 + $0x80] sm:$0xff] %vm571_vm0, %v2395_v2  ;;  %v2396_v20 = vadd.f32 %v4949_v32, %v2261_v35  ;;  %v2262_v13 = vmul.f32 %v4937_v33, %v2127_v54  ;;  %v2128_v61 = vmul.f32 %v2843_v52, %v6536_v0  ;;  %v1424_v57 = vpop.xlane.xlu1 %1423  ;;  %v1326_v19 = vmul.f32 %v5130_v23, %v5130_v23 }
 0x319   : > { %v2845_v48 = vpop.eup %2844  ;;  %2854 = vrsqrt.f32 %v1878_v53  ;;  %v1879_v22 = vadd.f32 1e-05, %v1751_v24  ;;  %v1752_v36 = vmul.f32 0.010416667, %v1424_v57  ;;  %1636 = vadd.xlane.f32.xlu0 %v4929_v38  ;;  %v5169_v56 = vsel %vm571_vm0, %v1325_v63, 0.0  ;;  %v6539_v63 = vld [vmem:[#allocation10_spill] sm:$0xff] }
 0x31a   : > { %2524 = vst.msk [vmem:[%s4971_s9 + $0x88] sm:$0xff] %vm571_vm0, %v2396_v20  ;;  %v2397_v51 = vadd.f32 %v4949_v32, %v2262_v13  ;;  %v2263_v46 = vmul.f32 %v4937_v33, %v2128_v61  ;;  %v2129_v49 = vmul.f32 %v2845_v48, %v6537_v39  ;;  %v1427_v55 = vpop.xlane.xlu0 %1426  ;;  %v5172_v2 = vsub.f32 %v6538_v16, %v1072_v12  ;;  %v6540_v13 = vld [vmem:[#allocation12_spill] sm:$0xff] }
 0x31b   : > { %v2847_v37 = vpop.eup %2846  ;;  %2856 = vrsqrt.f32 %v1879_v22  ;;  %v1880_v38 = vadd.f32 1e-05, %v1752_v36  ;;  %v1753_v35 = vmul.f32 0.010416667, %v1427_v55  ;;  %1639 = vadd.xlane.f32.xlu1 %v4932_v59  ;;  %v1073_v30 = vmul.f32 0.010416667, %v4593_v47 }
 0x31c   : > { %2525 = vst.msk [vmem:[%s4971_s9 + $0x90] sm:$0xff] %vm571_vm0, %v2397_v51  ;;  %v2398_v54 = vadd.f32 %v4949_v32, %v2263_v46  ;;  %v2264_v21 = vmul.f32 %v4937_v33, %v2129_v49  ;;  %v2130_v52 = vmul.f32 %v2847_v37, %v6539_v63  ;;  %v1430_v53 = vpop.xlane.xlu1 %1429  ;;  %v5183_v59 = vsel %vm571_vm0, %v1326_v19, 0.0  ;;  %v6541_v19 = vld [vmem:[#allocation106_spill] sm:$0xff] }
 0x31d   : > { %v2849_v24 = vpop.eup %2848  ;;  %2858 = vrsqrt.f32 %v1880_v38  ;;  %v1881_v12 = vadd.f32 1e-05, %v1753_v35  ;;  %v1754_v10 = vmul.f32 0.010416667, %v1430_v53  ;;  %1642 = vadd.xlane.f32.xlu0 %v4953_v41  ;;  %v1327_v57 = vmul.f32 %v5153_v25, %v5153_v25  ;;  %v6542_v49 = vld [vmem:[#allocation14_spill] sm:$0xff] }
 0x31e   : > { %2526 = vst.msk [vmem:[%s4971_s9 + $0x98] sm:$0xff] %vm571_vm0, %v2398_v54  ;;  %v2399_v47 = vadd.f32 %v4949_v32, %v2264_v21  ;;  %v2265_v20 = vmul.f32 %v4937_v33, %v2130_v52  ;;  %v2131_v0 = vmul.f32 %v2849_v24, %v6540_v13  ;;  %v1433_v61 = vpop.xlane.xlu0 %1432  ;;  %v1074_v22 = vmul.f32 0.010416667, %v4609_v62  ;;  %v6543_v54 = vld [vmem:[#allocation16_spill] sm:$0xff] }
 0x31f   : > { %v2851_v48 = vpop.eup %2850  ;;  %2860 = vrsqrt.f32 %v1881_v12  ;;  %v1882_v41 = vadd.f32 1e-05, %v1754_v10  ;;  %v1755_v36 = vmul.f32 0.010416667, %v1433_v61  ;;  %1645 = vadd.xlane.f32.xlu1 %v4956_v27  ;;  %v5195_v51 = vsub.f32 %v6541_v19, %v1073_v30  ;;  %v6544_v24 = vld [vmem:[#allocation108_spill] sm:$0xff]  ;;  %v6546_v19 = vld [vmem:[#allocation19_spill] sm:$0xff] }
 0x320   : > { %2527 = vst.msk [vmem:[%s4971_s9 + $0xa0] sm:$0xff] %vm571_vm0, %v2399_v47  ;;  %v2400_v46 = vadd.f32 %v4949_v32, %v2265_v20  ;;  %v2266_v39 = vmul.f32 %v4937_v33, %v2131_v0  ;;  %v2132_v55 = vmul.f32 %v2851_v48, %v6542_v49  ;;  %v1436_v37 = vpop.xlane.xlu1 %1435  ;;  %v1328_v27 = vmul.f32 %v5172_v2, %v5172_v2  ;;  %v6545_v0 = vld [vmem:[#allocation18_spill] sm:$0xff] }
 0x321   : > { %v2853_v16 = vpop.eup %2852  ;;  %2862 = vrsqrt.f32 %v1882_v41  ;;  %v1883_v62 = vadd.f32 1e-05, %v1755_v36  ;;  %v1756_v38 = vmul.f32 0.010416667, %v1436_v37  ;;  %1648 = vadd.xlane.f32.xlu0 %v4960_v14  ;;  %v5211_v52 = vsel %vm571_vm0, %v1327_v57, 0.0 }
 0x322   : > { %2528 = vst.msk [vmem:[%s4971_s9 + $0xa8] sm:$0xff] %vm571_vm0, %v2400_v46  ;;  %v2401_v35 = vadd.f32 %v4949_v32, %v2266_v39  ;;  %v2267_v30 = vmul.f32 %v4937_v33, %v2132_v55  ;;  %v2133_v21 = vmul.f32 %v2853_v16, %v6543_v54  ;;  %v1439_v63 = vpop.xlane.xlu0 %1438  ;;  %v5214_v12 = vsub.f32 %v6544_v24, %v1074_v22 }
 0x323   : > { %v2855_v53 = vpop.eup %2854  ;;  %2864 = vrsqrt.f32 %v1883_v62  ;;  %v1884_v14 = vadd.f32 1e-05, %v1756_v38  ;;  %v1757_v10 = vmul.f32 0.010416667, %v1439_v63  ;;  %1651 = vadd.xlane.f32.xlu1 %v4975_v42  ;;  %v1075_v47 = vmul.f32 0.010416667, %v4629_v29 }
 0x324   : > { %2529 = vst.msk [vmem:[%s4971_s9 + $0xb0] sm:$0xff] %vm571_vm0, %v2401_v35  ;;  %v2402_v20 = vadd.f32 %v4949_v32, %v2267_v30  ;;  %v2268_v13 = vmul.f32 %v4937_v33, %v2133_v21  ;;  %v2134_v61 = vmul.f32 %v2855_v53, %v6545_v0  ;;  %v1442_v57 = vpop.xlane.xlu1 %1441  ;;  %v5225_v42 = vsel %vm571_vm0, %v1328_v27, 0.0  ;;  %v6547_v62 = vld [vmem:[#allocation110_spill] sm:$0xff]  ;;  %v6548_v30 = vld [vmem:[#allocation21_spill] sm:$0xff] }
 0x325   : > { %v2857_v48 = vpop.eup %2856  ;;  %2866 = vrsqrt.f32 %v1884_v14  ;;  %v1885_v22 = vadd.f32 1e-05, %v1757_v10  ;;  %v1758_v41 = vmul.f32 0.010416667, %v1442_v57  ;;  %1654 = vadd.xlane.f32.xlu0 %v5001_v1  ;;  %v1329_v49 = vmul.f32 %v5195_v51, %v5195_v51  ;;  %v6549_v10 = vld [vmem:[#allocation23_spill] sm:$0xff] }
 0x326   : > { %2530 = vst.msk [vmem:[%s4971_s9 + $0xb8] sm:$0xff] %vm571_vm0, %v2402_v20  ;;  %v2403_v29 = vadd.f32 %v4949_v32, %v2268_v13  ;;  %v2269_v36 = vmul.f32 %v4937_v33, %v2134_v61  ;;  %v2135_v46 = vmul.f32 %v2857_v48, %v6546_v19  ;;  %v1445_v39 = vpop.xlane.xlu0 %1444  ;;  %v1076_v37 = vmul.f32 0.010416667, %v4644_v8  ;;  %v6550_v61 = vld [vmem:[#allocation112_spill] sm:$0xff] }
 0x327   : > { %v2859_v55 = vpop.eup %2858  ;;  %2868 = vrsqrt.f32 %v1885_v22  ;;  %v1886_v1 = vadd.f32 1e-05, %v1758_v41  ;;  %v1759_v16 = vmul.f32 0.010416667, %v1445_v39  ;;  %1657 = vadd.xlane.f32.xlu1 %v5015_v50  ;;  %v5237_v38 = vsub.f32 %v6547_v62, %v1075_v47 }
 0x328   : > { %2531 = vst.msk [vmem:[%s4971_s9 + $0xc0] sm:$0xff] %vm571_vm0, %v2403_v29  ;;  %v2404_v27 = vadd.f32 %v4949_v32, %v2269_v36  ;;  %v2270_v35 = vmul.f32 %v4937_v33, %v2135_v46  ;;  %v2136_v54 = vmul.f32 %v2859_v55, %v6548_v30  ;;  %v1448_v21 = vpop.xlane.xlu1 %1447  ;;  %v1330_v50 = vmul.f32 %v5214_v12, %v5214_v12  ;;  %v6551_v36 = vld [vmem:[#allocation25_spill] sm:$0xff] }
 0x329   : > { %v2861_v63 = vpop.eup %2860  ;;  %2870 = vrsqrt.f32 %v1886_v1  ;;  %v1887_v8 = vadd.f32 1e-05, %v1759_v16  ;;  %v1760_v53 = vmul.f32 0.010416667, %v1448_v21  ;;  %1660 = vadd.xlane.f32.xlu0 %v5043_v45  ;;  %v5253_v13 = vsel %vm571_vm0, %v1329_v49, 0.0  ;;  %v6552_v1 = vld [vmem:[#allocation27_spill] sm:$0xff] }
 0x32a   : > { %2532 = vst.msk [vmem:[%s4971_s9 + $0xc8] sm:$0xff] %vm571_vm0, %v2404_v27  ;;  %v2405_v24 = vadd.f32 %v4949_v32, %v2270_v35  ;;  %v2271_v14 = vmul.f32 %v4937_v33, %v2136_v54  ;;  %v2137_v47 = vmul.f32 %v2861_v63, %v6549_v10  ;;  %v1451_v20 = vpop.xlane.xlu0 %1450  ;;  %v5256_v57 = vsub.f32 %v6550_v61, %v1076_v37  ;;  %v6553_v21 = vld [vmem:[#allocation114_spill] sm:$0xff]  ;;  %v6555_v61 = vld [vmem:[#allocation31_spill] sm:$0xff] }
 0x32b   : > { %v2863_v0 = vpop.eup %2862  ;;  %2872 = vrsqrt.f32 %v1887_v8  ;;  %v1888_v45 = vadd.f32 1e-05, %v1760_v53  ;;  %v1761_v48 = vmul.f32 0.010416667, %v1451_v20  ;;  %1663 = vadd.xlane.f32.xlu1 %v5057_v26  ;;  %v1077_v22 = vmul.f32 0.010416667, %v4665_v17 }
 0x32c   : > { %2533 = vst.msk [vmem:[%s4971_s9 + $0xd0] sm:$0xff] %vm571_vm0, %v2405_v24  ;;  %v2406_v41 = vadd.f32 %v4949_v32, %v2271_v14  ;;  %v2272_v29 = vmul.f32 %v4937_v33, %v2137_v47  ;;  %v2138_v19 = vmul.f32 %v2863_v0, %v6551_v36  ;;  %v1454_v46 = vpop.xlane.xlu1 %1453  ;;  %v5267_v26 = vsel %vm571_vm0, %v1330_v50, 0.0  ;;  %v6554_v50 = vld [vmem:[#allocation29_spill] sm:$0xff] }
 0x32d   : > { %v2865_v39 = vpop.eup %2864  ;;  %2874 = vrsqrt.f32 %v1888_v45  ;;  %v1889_v49 = vadd.f32 1e-05, %v1761_v48  ;;  %v1762_v55 = vmul.f32 0.010416667, %v1454_v46  ;;  %1666 = vadd.xlane.f32.xlu0 %v5085_v60  ;;  %v1331_v27 = vmul.f32 %v5237_v38, %v5237_v38 }
 0x32e   : > { %2534 = vst.msk [vmem:[%s4971_s9 + $0xd8] sm:$0xff] %vm571_vm0, %v2406_v41  ;;  %v2407_v17 = vadd.f32 %v4949_v32, %v2272_v29  ;;  %v2273_v37 = vmul.f32 %v4937_v33, %v2138_v19  ;;  %v2139_v16 = vmul.f32 %v2865_v39, %v6552_v1  ;;  %v1457_v62 = vpop.xlane.xlu0 %1456  ;;  %v1078_v30 = vmul.f32 0.010416667, %v4689_v34  ;;  %v6556_v29 = vld [vmem:[#allocation116_spill] sm:$0xff] }
 0x32f   : > { %v2867_v35 = vpop.eup %2866  ;;  %2876 = vrsqrt.f32 %v1889_v49  ;;  %v1890_v60 = vadd.f32 1e-05, %v1762_v55  ;;  %v1763_v54 = vmul.f32 0.010416667, %v1457_v62  ;;  %1669 = vadd.xlane.f32.xlu1 %v5099_v4  ;;  %v5279_v63 = vsub.f32 %v6553_v21, %v1077_v22  ;;  %v6557_v55 = vld [vmem:[#allocation33_spill] sm:$0xff] }
 0x330   : > { %2535 = vst.msk [vmem:[%s4971_s9 + $0xe0] sm:$0xff] %vm571_vm0, %v2407_v17  ;;  %v2408_v8 = vadd.f32 %v4949_v32, %v2273_v37  ;;  %v2274_v53 = vmul.f32 %v4937_v33, %v2139_v16  ;;  %v2140_v24 = vmul.f32 %v2867_v35, %v6554_v50  ;;  %v1460_v14 = vpop.xlane.xlu1 %1459  ;;  %v1332_v4 = vmul.f32 %v5256_v57, %v5256_v57  ;;  %v6558_v35 = vld [vmem:[#allocation36_spill] sm:$0xff]  ;;  %v6559_v50 = vld [vmem:[#allocation118_spill] sm:$0xff] }
 0x331   : > { %v2869_v10 = vpop.eup %2868  ;;  %2878 = vrsqrt.f32 %v1890_v60  ;;  %v1891_v34 = vadd.f32 1e-05, %v1763_v54  ;;  %v1764_v47 = vmul.f32 0.010416667, %v1460_v14  ;;  %1672 = vadd.xlane.f32.xlu0 %v5127_v28  ;;  %v5295_v22 = vsel %vm571_vm0, %v1331_v27, 0.0 }
 0x332   : > { %2536 = vst.msk [vmem:[%s4971_s9 + $0xe8] sm:$0xff] %vm571_vm0, %v2408_v8  ;;  %v2409_v20 = vadd.f32 %v4949_v32, %v2274_v53  ;;  %v2275_v0 = vmul.f32 %v4937_v33, %v2140_v24  ;;  %v2141_v45 = vmul.f32 %v2869_v10, %v6555_v61  ;;  %v1463_v48 = vpop.xlane.xlu0 %1462  ;;  %v5298_v36 = vsub.f32 %v6556_v29, %v1078_v30 }
 0x333   : > { %v2871_v41 = vpop.eup %2870  ;;  %2880 = vrsqrt.f32 %v1891_v34  ;;  %v1892_v28 = vadd.f32 1e-05, %v1764_v47  ;;  %v1765_v19 = vmul.f32 0.010416667, %v1463_v48  ;;  %1675 = vadd.xlane.f32.xlu1 %v5141_v6  ;;  %v1079_v46 = vmul.f32 0.010416667, %v4704_v18 }
 0x334   : > { %2537 = vst.msk [vmem:[%s4971_s9 + $0xf0] sm:$0xff] %vm571_vm0, %v2409_v20  ;;  %v2410_v39 = vadd.f32 %v4949_v32, %v2275_v0  ;;  %v2276_v49 = vmul.f32 %v4937_v33, %v2141_v45  ;;  %v2142_v17 = vmul.f32 %v2871_v41, %v6557_v55  ;;  %v1466_v37 = vpop.xlane.xlu1 %1465  ;;  %v5309_v6 = vsel %vm571_vm0, %v1332_v4, 0.0  ;;  %v6560_v34 = vld [vmem:[#allocation38_spill] sm:$0xff]  ;;  %v6561_v48 = vld [vmem:[#allocation40_spill] sm:$0xff] }
 0x335   : > { %v2873_v1 = vpop.eup %2872  ;;  %2882 = vrsqrt.f32 %v1892_v28  ;;  %v1893_v16 = vadd.f32 1e-05, %v1765_v19  ;;  %v1766_v62 = vmul.f32 0.010416667, %v1466_v37  ;;  %1678 = vadd.xlane.f32.xlu0 %v5169_v56  ;;  %v1333_v54 = vmul.f32 %v5279_v63, %v5279_v63 }
 0x336   : > { %2538 = vst.msk [vmem:[%s4971_s9 + $0xf8] sm:$0xff] %vm571_vm0, %v2410_v39  ;;  %v2411_v18 = vadd.f32 %v4949_v32, %v2276_v49  ;;  %v2277_v27 = vmul.f32 %v4937_v33, %v2142_v17  ;;  %v2143_v30 = vmul.f32 %v2873_v1, %v6558_v35  ;;  %v1469_v60 = vpop.xlane.xlu0 %1468  ;;  %v1080_v8 = vmul.f32 0.010416667, %v4723_v5  ;;  %v6563_v1 = vld [vmem:[#allocation42_spill] sm:$0xff] }
 0x337   : > { %v2875_v21 = vpop.eup %2874  ;;  %2884 = vrsqrt.f32 %v1893_v16  ;;  %v1894_v56 = vadd.f32 1e-05, %v1766_v62  ;;  %v1767_v53 = vmul.f32 0.010416667, %v1469_v60  ;;  %1681 = vadd.xlane.f32.xlu1 %v5183_v59  ;;  %v5321_v24 = vsub.f32 %v6559_v50, %v1079_v46  ;;  %v6562_v46 = vld [vmem:[#allocation120_spill] sm:$0xff] }
 0x338   : > { %2539 = vst.msk [vmem:[%s4971_s9 + $0x100] sm:$0xff] %vm571_vm0, %v2411_v18  ;;  %v2412_v14 = vadd.f32 %v4949_v32, %v2277_v27  ;;  %v2278_v10 = vmul.f32 %v4937_v33, %v2143_v30  ;;  %v2144_v47 = vmul.f32 %v2875_v21, %v6560_v34  ;;  %v1472_v4 = vpop.xlane.xlu1 %1471  ;;  %v1334_v59 = vmul.f32 %v5298_v36, %v5298_v36  ;;  %v6564_v60 = vld [vmem:[#allocation44_spill] sm:$0xff] }
 0x339   : > { %v2877_v20 = vpop.eup %2876  ;;  %2886 = vrsqrt.f32 %v1894_v56  ;;  %v1895_v5 = vadd.f32 1e-05, %v1767_v53  ;;  %v1768_v0 = vmul.f32 0.010416667, %v1472_v4  ;;  %1684 = vadd.xlane.f32.xlu0 %v5211_v52  ;;  %v5337_v28 = vsel %vm571_vm0, %v1333_v54, 0.0  ;;  %v6566_v4 = vld [vmem:[#allocation46_spill] sm:$0xff] }
 0x33a   : > { %2540 = vst.msk [vmem:[%s4971_s9 + $0x108] sm:$0xff] %vm571_vm0, %v2412_v14  ;;  %v2413_v61 = vadd.f32 %v4949_v32, %v2278_v10  ;;  %v2279_v45 = vmul.f32 %v4937_v33, %v2144_v47  ;;  %v2145_v41 = vmul.f32 %v2877_v20, %v6561_v48  ;;  %v1475_v29 = vpop.xlane.xlu0 %1474  ;;  %v5340_v39 = vsub.f32 %v6562_v46, %v1080_v8  ;;  %v6565_v14 = vld [vmem:[#allocation122_spill] sm:$0xff]  ;;  %v6567_v48 = vld [vmem:[#allocation48_spill] sm:$0xff] }
 0x33b   : > { %v2879_v19 = vpop.eup %2878  ;;  %2888 = vrsqrt.f32 %v1895_v5  ;;  %v1896_v52 = vadd.f32 1e-05, %v1768_v0  ;;  %v1769_v49 = vmul.f32 0.010416667, %v1475_v29  ;;  %1687 = vadd.xlane.f32.xlu1 %v5225_v42  ;;  %v1081_v55 = vmul.f32 0.010416667, %v4741_v58 }
 0x33c   : > { %2541 = vst.msk [vmem:[%s4971_s9 + $0x110] sm:$0xff] %vm571_vm0, %v2413_v61  ;;  %v2414_v17 = vadd.f32 %v4949_v32, %v2279_v45  ;;  %v2280_v37 = vmul.f32 %v4937_v33, %v2145_v41  ;;  %v2146_v16 = vmul.f32 %v2879_v19, %v6563_v1  ;;  %v1478_v62 = vpop.xlane.xlu1 %1477  ;;  %v1704_v42 = vsel %vm571_vm0, %v1334_v59, 0.0 }
 0x33d   : > { %v2881_v18 = vpop.eup %2880  ;;  %2890 = vrsqrt.f32 %v1896_v52  ;;  %v1897_v27 = vadd.f32 1e-05, %v1769_v49  ;;  %v1770_v35 = vmul.f32 0.010416667, %v1478_v62  ;;  %1690 = vadd.xlane.f32.xlu0 %v5253_v13  ;;  %v1335_v8 = vmul.f32 %v5321_v24, %v5321_v24  ;;  %v6568_v52 = vld [vmem:[#allocation124_spill] sm:$0xff]  ;;  %v6570_v62 = vld [vmem:[#allocation50_spill] sm:$0xff] }
 0x33e   : > { %2542 = vst.msk [vmem:[%s4971_s9 + $0x118] sm:$0xff] %vm571_vm0, %v2414_v17  ;;  %v2415_v58 = vadd.f32 %v4949_v32, %v2280_v37  ;;  %v2281_v30 = vmul.f32 %v4937_v33, %v2146_v16  ;;  %v2147_v54 = vmul.f32 %v2881_v18, %v6564_v60  ;;  %v1481_v21 = vpop.xlane.xlu0 %1480  ;;  %v1082_v53 = vmul.f32 0.010416667, %v4759_v40  ;;  %v6569_v17 = vld [vmem:[#allocation92_spill] sm:$0xff] }
 0x33f   : > { %v2883_v56 = vpop.eup %2882  ;;  %2892 = vrsqrt.f32 %v1897_v27  ;;  %v1898_v13 = vadd.f32 1e-05, %v1770_v35  ;;  %v1771_v50 = vmul.f32 0.010416667, %v1481_v21  ;;  %1693 = vadd.xlane.f32.xlu1 %v5267_v26  ;;  %v5361_v10 = vsub.f32 %v6565_v14, %v1081_v55  ;;  %v6571_v60 = vld [vmem:[#allocation140_spill] sm:$0xff] }
 0x340   : > { %2543 = vst.msk [vmem:[%s4971_s9 + $0x120] sm:$0xff] %vm571_vm0, %v2415_v58  ;;  %v2416_v34 = vadd.f32 %v4949_v32, %v2281_v30  ;;  %v2282_v47 = vmul.f32 %v4937_v33, %v2147_v54  ;;  %v2148_v20 = vmul.f32 %v2883_v56, %v6566_v4  ;;  %v1484_v5 = vpop.xlane.xlu1 %1483  ;;  %v1336_v26 = vmul.f32 %v5340_v39, %v5340_v39  ;;  %v6572_v56 = vld [vmem:[#allocation52_spill] sm:$0xff]  ;;  %v5410_v4 = vld [vmem:[%s5887_s2] ss:$0 sm:$0xff] }
 0x341   : > { %v2885_v0 = vpop.eup %2884  ;;  %2894 = vrsqrt.f32 %v1898_v13  ;;  %v1899_v40 = vadd.f32 1e-05, %v1771_v50  ;;  %v1772_v59 = vmul.f32 0.010416667, %v1484_v5  ;;  %1696 = vadd.xlane.f32.xlu0 %v5295_v22  ;;  %v1707_v19 = vsel %vm571_vm0, %v1335_v8, 0.0 }
 0x342   : > { %2544 = vst.msk [vmem:[%s4971_s9 + $0x128] sm:$0xff] %vm571_vm0, %v2416_v34  ;;  %v2417_v61 = vadd.f32 %v4949_v32, %v2282_v47  ;;  %v2283_v45 = vmul.f32 %v4937_v33, %v2148_v20  ;;  %v2149_v41 = vmul.f32 %v2885_v0, %v6567_v48  ;;  %v1487_v29 = vpop.xlane.xlu0 %1486  ;;  %v5378_v49 = vsub.f32 %v6568_v52, %v1082_v53  ;;  %v6574_v0 = vld [vmem:[#allocation54_spill] sm:$0xff]  ;;  %v6575_v48 = vld [vmem:[#allocation128_spill] sm:$0xff] }
 0x343   : > { %v2887_v46 = vpop.eup %2886  ;;  %2896 = vrsqrt.f32 %v1899_v40  ;;  %v1900_v22 = vadd.f32 1e-05, %v1772_v59  ;;  %v1773_v55 = vmul.f32 0.010416667, %v1487_v29  ;;  %1699 = vadd.xlane.f32.xlu1 %v5309_v6  ;;  %v1083_v37 = vmul.f32 0.010416667, %v6569_v17 }
 0x344   : > { %2545 = vst.msk [vmem:[%s4971_s9 + $0x130] sm:$0xff] %vm571_vm0, %v2417_v61  ;;  %v2418_v1 = vadd.f32 %v4949_v32, %v2283_v45  ;;  %v2284_v16 = vmul.f32 %v4937_v33, %v2149_v41  ;;  %v2150_v18 = vmul.f32 %v2887_v46, %v6570_v62  ;;  %v1490_v27 = vpop.xlane.xlu1 %1489  ;;  %v1710_v6 = vsel %vm571_vm0, %v1336_v26, 0.0  ;;  %v5396_v33 = vld [vmem:[%s5886_s1] ss:$0 sm:$0xff]  ;;  %v6576_v52 = vld [vmem:[#allocation56_spill] sm:$0xff] }
 0x345   : > { %v2889_v35 = vpop.eup %2888  ;;  %2898 = vrsqrt.f32 %v1900_v22  ;;  %v1901_v58 = vadd.f32 1e-05, %v1773_v55  ;;  %v1774_v30 = vmul.f32 0.010416667, %v1490_v27  ;;  %1702 = vadd.xlane.f32.xlu0 %v5337_v28  ;;  %v1084_v54 = vmul.f32 0.010416667, %v6571_v60 }
 0x346   : > { %2546 = vst.msk [vmem:[%s4971_s9 + $0x138] sm:$0xff] %vm571_vm0, %v2418_v1  ;;  %v2419_v21 = vadd.f32 %v4949_v32, %v2284_v16  ;;  %v2285_v8 = vmul.f32 %v5396_v33, %v2150_v18  ;;  %v2151_v53 = vmul.f32 %v2889_v35, %v6572_v56  ;;  %v1493_v13 = vpop.xlane.xlu0 %1492  ;;  %v1337_v34 = vmul.f32 %v5361_v10, %v5361_v10  ;;  %v6573_v32 = vld [vmem:[#allocation126_spill] sm:$0xff] }
 0x347   : > { %v2891_v28 = vpop.eup %2890  ;;  %2900 = vrsqrt.f32 %v1901_v58  ;;  %v1902_v50 = vadd.f32 1e-05, %v1774_v30  ;;  %v1775_v14 = vmul.f32 0.010416667, %v1493_v13  ;;  %1705 = vadd.xlane.f32.xlu1 %v1704_v42  ;;  %v5403_v47 = vsub.f32 %v6573_v32, %v1083_v37  ;;  %v6577_v18 = vld [vmem:[#allocation58_spill] sm:$0xff] }
 0x348   : > { %2547 = vst.msk [vmem:[%s4971_s9 + $0x140] sm:$0xff] %vm571_vm0, %v2419_v21  ;;  %v2420_v20 = vadd.f32 %v5410_v4, %v2285_v8  ;;  %v2286_v5 = vmul.f32 %v5396_v33, %v2151_v53  ;;  %v2152_v42 = vmul.f32 %v2891_v28, %v6574_v0  ;;  %v1496_v40 = vpop.xlane.xlu1 %1495  ;;  %v1338_v45 = vmul.f32 %v5378_v49, %v5378_v49  ;;  %v6578_v56 = vld [vmem:[#allocation62_spill] sm:$0xff] }
 0x349   : > { %v2893_v59 = vpop.eup %2892  ;;  %2902 = vrsqrt.f32 %v1902_v50  ;;  %v1903_v26 = vadd.f32 1e-05, %v1775_v14  ;;  %v1776_v61 = vmul.f32 0.010416667, %v1496_v40  ;;  %1708 = vadd.xlane.f32.xlu0 %v1707_v19  ;;  %v5418_v41 = vsub.f32 %v6575_v48, %v1084_v54 }
 0x34a   : > { %2548 = vst.msk [vmem:[%s4971_s9 + $0x148] sm:$0xff] %vm571_vm0, %v2420_v20  ;;  %v2421_v29 = vadd.f32 %v5410_v4, %v2286_v5  ;;  %v2287_v46 = vmul.f32 %v5396_v33, %v2152_v42  ;;  %v2153_v22 = vmul.f32 %v2893_v59, %v6576_v52  ;;  %v1499_v55 = vpop.xlane.xlu0 %1498  ;;  %v1713_v1 = vsel %vm571_vm0, %v1337_v34, 0.0  ;;  %v6579_v5 = vld [vmem:[#allocation64_spill] sm:$0xff] }
 0x34b   : > { %v2895_v17 = vpop.eup %2894  ;;  %2904 = vrsqrt.f32 %v1903_v26  ;;  %v1904_v37 = vadd.f32 1e-05, %v1776_v61  ;;  %v1777_v19 = vmul.f32 0.010416667, %v1499_v55  ;;  %1711 = vadd.xlane.f32.xlu1 %v1710_v6  ;;  %v1339_v58 = vmul.f32 %v5403_v47, %v5403_v47 }
 0x34c   : > { %2549 = vst.msk [vmem:[%s4971_s9 + $0x150] sm:$0xff] %vm571_vm0, %v2421_v29  ;;  %v2422_v16 = vadd.f32 %v5410_v4, %v2287_v46  ;;  %v2288_v62 = vmul.f32 %v5396_v33, %v2153_v22  ;;  %v2154_v27 = vmul.f32 %v2895_v17, %v6577_v18  ;;  %v1502_v35 = vpop.xlane.xlu1 %1501  ;;  %v1716_v6 = vsel %vm571_vm0, %v1338_v45, 0.0  ;;  %v6580_v29 = vld [vmem:[#allocation134_spill] sm:$0xff] }
 0x34d   : > { %v2897_v30 = vpop.eup %2896  ;;  %2906 = vrsqrt.f32 %v1904_v37  ;;  %v1905_v60 = vadd.f32 1e-05, %v1777_v19  ;;  %v1778_v54 = vmul.f32 0.010416667, %v1502_v35  ;;  %1714 = vadd.xlane.f32.xlu0 %v1713_v1  ;;  %v1340_v28 = vmul.f32 %v5418_v41, %v5418_v41 }
 0x34e   : > { %2550 = vst.msk [vmem:[%s4971_s9 + $0x158] sm:$0xff] %vm571_vm0, %v2422_v16  ;;  %v2423_v21 = vadd.f32 %v5410_v4, %v2288_v62  ;;  %v2289_v8 = vmul.f32 %v5396_v33, %v2154_v27  ;;  %v2155_v53 = vmul.f32 %v2897_v30, %v6578_v56  ;;  %v1505_v13 = vpop.xlane.xlu0 %1504  ;;  %v1719_v40 = vsel %vm571_vm0, %v1339_v58, 0.0  ;;  %v6581_v16 = vld [vmem:[#allocation35_spill] sm:$0xff] }
 0x34f   : > { %v2899_v50 = vpop.eup %2898  ;;  %2908 = vrsqrt.f32 %v1905_v60  ;;  %v1906_v14 = vadd.f32 1e-05, %v1778_v54  ;;  %v1779_v34 = vmul.f32 0.010416667, %v1505_v13  ;;  %1717 = vadd.xlane.f32.xlu1 %v1716_v6  ;;  %v1722_v22 = vsel %vm571_vm0, %v1340_v28, 0.0  ;;  %v6582_v54 = vld [vmem:[#allocation37_spill] sm:$0xff] }
 0x350   : > { %2551 = vst.msk [vmem:[%s4971_s9 + $0x160] sm:$0xff] %vm571_vm0, %v2423_v21  ;;  %v2424_v32 = vadd.f32 %v5410_v4, %v2289_v8  ;;  %v2290_v20 = vmul.f32 %v5396_v33, %v2155_v53  ;;  %v2156_v0 = vmul.f32 %v2899_v50, %v6579_v5  ;;  %v1508_v42 = vpop.xlane.xlu1 %1507  ;;  %v6583_v50 = vld [vmem:[#allocation39_spill] sm:$0xff] }
 0x351   : > { %v2901_v59 = vpop.eup %2900  ;;  %2910 = vrsqrt.f32 %v1906_v14  ;;  %v1907_v26 = vadd.f32 1e-05, %v1779_v34  ;;  %v1780_v61 = vmul.f32 0.010416667, %v1508_v42  ;;  %1720 = vadd.xlane.f32.xlu0 %v1719_v40  ;;  %v6584_v40 = vld [vmem:[#allocation135_spill] sm:$0xff] }
 0x352   : > { %2552 = vst.msk [vmem:[%s4971_s9 + $0x168] sm:$0xff] %vm571_vm0, %v2424_v32  ;;  %v2425_v45 = vadd.f32 %v5410_v4, %v2290_v20  ;;  %v2291_v48 = vmul.f32 %v5396_v33, %v2156_v0  ;;  %v2157_v46 = vmul.f32 %v2901_v59, %v6580_v29  ;;  %v1511_v52 = vpop.xlane.xlu0 %1510 }
 0x353   : > { %v2903_v55 = vpop.eup %2902  ;;  %2912 = vrsqrt.f32 %v1907_v26  ;;  %v1908_v17 = vadd.f32 1e-05, %v1780_v61  ;;  %v1781_v37 = vmul.f32 0.010416667, %v1511_v52  ;;  %1723 = vadd.xlane.f32.xlu1 %v1722_v22  ;;  %v6585_v52 = vld [vmem:[#allocation43_spill] sm:$0xff] }
 0x354   : > { %2553 = vst.msk [vmem:[%s4971_s9 + $0x170] sm:$0xff] %vm571_vm0, %v2425_v45  ;;  %v2426_v19 = vadd.f32 %v5410_v4, %v2291_v48  ;;  %v2292_v1 = vmul.f32 %v5396_v33, %v2157_v46  ;;  %v2158_v62 = vmul.f32 %v2903_v55, %v6581_v16  ;;  %v1514_v18 = vpop.xlane.xlu1 %1513 }
 0x355   : > { %v2905_v27 = vpop.eup %2904  ;;  %2914 = vrsqrt.f32 %v1908_v17  ;;  %v1909_v35 = vadd.f32 1e-05, %v1781_v37  ;;  %v1782_v58 = vmul.f32 0.010416667, %v1514_v18 }
 0x356   : > { %2554 = vst.msk [vmem:[%s4971_s9 + $0x178] sm:$0xff] %vm571_vm0, %v2426_v19  ;;  %v2427_v30 = vadd.f32 %v5410_v4, %v2292_v1  ;;  %v2293_v60 = vmul.f32 %v5396_v33, %v2158_v62  ;;  %v2159_v6 = vmul.f32 %v2905_v27, %v6582_v54  ;;  %v1517_v21 = vpop.xlane.xlu0 %1516  ;;  %v6586_v62 = vld [vmem:[#allocation47_spill] sm:$0xff] }
 0x357   : > { %v2907_v8 = vpop.eup %2906  ;;  %2916 = vrsqrt.f32 %v1909_v35  ;;  %v1910_v56 = vadd.f32 1e-05, %v1782_v58  ;;  %v1783_v53 = vmul.f32 0.010416667, %v1517_v21 }
 0x358   : > { %2555 = vst.msk [vmem:[%s4971_s9 + $0x180] sm:$0xff] %vm571_vm0, %v2427_v30  ;;  %v2428_v13 = vadd.f32 %v5410_v4, %v2293_v60  ;;  %v2294_v28 = vmul.f32 %v5396_v33, %v2159_v6  ;;  %v2160_v14 = vmul.f32 %v2907_v8, %v6583_v50  ;;  %v1520_v34 = vpop.xlane.xlu1 %1519  ;;  %v6587_v6 = vld [vmem:[#allocation138_spill] sm:$0xff] }
 0x359   : > { %v2909_v32 = vpop.eup %2908  ;;  %2918 = vrsqrt.f32 %v1910_v56  ;;  %v1911_v20 = vadd.f32 1e-05, %v1783_v53  ;;  %v1784_v5 = vmul.f32 0.010416667, %v1520_v34 }
 0x35a   : > { %2556 = vst.msk [vmem:[%s4971_s9 + $0x188] sm:$0xff] %vm571_vm0, %v2428_v13  ;;  %v2429_v0 = vadd.f32 %v5410_v4, %v2294_v28  ;;  %v2295_v42 = vmul.f32 %v5396_v33, %v2160_v14  ;;  %v2161_v59 = vmul.f32 %v2909_v32, %v6584_v40  ;;  %v1523_v26 = vpop.xlane.xlu0 %1522  ;;  %v6588_v14 = vld [vmem:[#allocation49_spill] sm:$0xff] }
 0x35b   : > { %v2911_v61 = vpop.eup %2910  ;;  %2920 = vrsqrt.f32 %v1911_v20  ;;  %v1912_v45 = vadd.f32 1e-05, %v1784_v5  ;;  %v1785_v48 = vmul.f32 0.010416667, %v1523_v26 }
 0x35c   : > { %2557 = vst.msk [vmem:[%s4971_s9 + $0x190] sm:$0xff] %vm571_vm0, %v2429_v0  ;;  %v2430_v29 = vadd.f32 %v5410_v4, %v2295_v42  ;;  %v2296_v46 = vmul.f32 %v5396_v33, %v2161_v59  ;;  %v2162_v22 = vmul.f32 %v2911_v61, %v6585_v52  ;;  %v1526_v55 = vpop.xlane.xlu1 %1525  ;;  %v6589_v59 = vld [vmem:[#allocation51_spill] sm:$0xff] }
 0x35d   : > { %v2913_v17 = vpop.eup %2912  ;;  %2922 = vrsqrt.f32 %v1912_v45  ;;  %v1913_v37 = vadd.f32 1e-05, %v1785_v48  ;;  %v1786_v19 = vmul.f32 0.010416667, %v1526_v55 }
 0x35e   : > { %2558 = vst.msk [vmem:[%s4971_s9 + $0x198] sm:$0xff] %vm571_vm0, %v2430_v29  ;;  %v2431_v1 = vadd.f32 %v5410_v4, %v2296_v46  ;;  %v2297_v16 = vmul.f32 %v5396_v33, %v2162_v22  ;;  %v2163_v18 = vmul.f32 %v2913_v17, %v6586_v62  ;;  %v1529_v27 = vpop.xlane.xlu0 %1528  ;;  %v6590_v22 = vld [vmem:[#allocation53_spill] sm:$0xff] }
 0x35f   : > { %v2915_v35 = vpop.eup %2914  ;;  %2924 = vrsqrt.f32 %v1913_v37  ;;  %v1914_v58 = vadd.f32 1e-05, %v1786_v19  ;;  %v1787_v30 = vmul.f32 0.010416667, %v1529_v27 }
 0x360   : > { %2559 = vst.msk [vmem:[%s4971_s9 + $0x1a0] sm:$0xff] %vm571_vm0, %v2431_v1  ;;  %v2432_v60 = vadd.f32 %v5410_v4, %v2297_v16  ;;  %v2298_v54 = vmul.f32 %v5396_v33, %v2163_v18  ;;  %v2164_v21 = vmul.f32 %v2915_v35, %v6587_v6  ;;  %v1532_v8 = vpop.xlane.xlu1 %1531  ;;  %v6591_v18 = vld [vmem:[#allocation55_spill] sm:$0xff] }
 0x361   : > { %v2917_v56 = vpop.eup %2916  ;;  %2926 = vrsqrt.f32 %v1914_v58  ;;  %v1915_v53 = vadd.f32 1e-05, %v1787_v30  ;;  %v1788_v13 = vmul.f32 0.010416667, %v1532_v8 }
 0x362   : > { %2560 = vst.msk [vmem:[%s4971_s9 + $0x1a8] sm:$0xff] %vm571_vm0, %v2432_v60  ;;  %v2433_v28 = vadd.f32 %v5410_v4, %v2298_v54  ;;  %v2299_v50 = vmul.f32 %v5396_v33, %v2164_v21  ;;  %v2165_v34 = vmul.f32 %v2917_v56, %v6588_v14  ;;  %v1535_v32 = vpop.xlane.xlu0 %1534  ;;  %v6592_v21 = vld [vmem:[#allocation57_spill] sm:$0xff] }
 0x363   : > { %v2919_v20 = vpop.eup %2918  ;;  %2928 = vrsqrt.f32 %v1915_v53  ;;  %v1916_v5 = vadd.f32 1e-05, %v1788_v13  ;;  %v1789_v0 = vmul.f32 0.010416667, %v1535_v32 }
 0x364   : > { %2561 = vst.msk [vmem:[%s4971_s9 + $0x1b0] sm:$0xff] %vm571_vm0, %v2433_v28  ;;  %v2434_v42 = vadd.f32 %v5410_v4, %v2299_v50  ;;  %v2300_v40 = vmul.f32 %v5396_v33, %v2165_v34  ;;  %v2166_v26 = vmul.f32 %v2919_v20, %v6589_v59  ;;  %v1538_v61 = vpop.xlane.xlu1 %1537  ;;  %v6593_v34 = vld [vmem:[#allocation59_spill] sm:$0xff] }
 0x365   : > { %v2921_v45 = vpop.eup %2920  ;;  %2930 = vrsqrt.f32 %v1916_v5  ;;  %v1917_v48 = vadd.f32 1e-05, %v1789_v0  ;;  %v1790_v29 = vmul.f32 0.010416667, %v1538_v61 }
 0x366   : > { %2562 = vst.msk [vmem:[%s4971_s9 + $0x1b8] sm:$0xff] %vm571_vm0, %v2434_v42  ;;  %v2435_v46 = vadd.f32 %v5410_v4, %v2300_v40  ;;  %v2301_v52 = vmul.f32 %v5396_v33, %v2166_v26  ;;  %v2167_v55 = vmul.f32 %v2921_v45, %v6590_v22  ;;  %v1541_v17 = vpop.xlane.xlu0 %1540  ;;  %v6594_v26 = vld [vmem:[#allocation61_spill] sm:$0xff] }
 0x367   : > { %v2923_v37 = vpop.eup %2922  ;;  %2932 = vrsqrt.f32 %v1917_v48  ;;  %v1918_v19 = vadd.f32 1e-05, %v1790_v29  ;;  %v1791_v1 = vmul.f32 0.010416667, %v1541_v17 }
 0x368   : > { %2563 = vst.msk [vmem:[%s4971_s9 + $0x1c0] sm:$0xff] %vm571_vm0, %v2435_v46  ;;  %v2436_v16 = vadd.f32 %v5410_v4, %v2301_v52  ;;  %v2302_v62 = vmul.f32 %v5396_v33, %v2167_v55  ;;  %v2168_v27 = vmul.f32 %v2923_v37, %v6591_v18  ;;  %v1544_v35 = vpop.xlane.xlu1 %1543  ;;  %v6595_v55 = vld [vmem:[#allocation131_spill] sm:$0xff] }
 0x369   : > { %v2925_v58 = vpop.eup %2924  ;;  %2934 = vrsqrt.f32 %v1918_v19  ;;  %v1919_v30 = vadd.f32 1e-05, %v1791_v1  ;;  %v1792_v60 = vmul.f32 0.010416667, %v1544_v35 }
 0x36a   : > { %2564 = vst.msk [vmem:[%s4971_s9 + $0x1c8] sm:$0xff] %vm571_vm0, %v2436_v16  ;;  %v2437_v54 = vadd.f32 %v5410_v4, %v2302_v62  ;;  %v2303_v6 = vmul.f32 %v5396_v33, %v2168_v27  ;;  %v2169_v8 = vmul.f32 %v2925_v58, %v6592_v21  ;;  %v1547_v56 = vpop.xlane.xlu0 %1546  ;;  %v6596_v27 = vld [vmem:[#allocation63_spill] sm:$0xff] }
 0x36b   : > { %v2927_v53 = vpop.eup %2926  ;;  %2936 = vrsqrt.f32 %v1919_v30  ;;  %v1920_v13 = vadd.f32 1e-05, %v1792_v60  ;;  %v1793_v28 = vmul.f32 0.010416667, %v1547_v56 }
 0x36c   : > { %2565 = vst.msk [vmem:[%s4971_s9 + $0x1d0] sm:$0xff] %vm571_vm0, %v2437_v54  ;;  %v2438_v50 = vadd.f32 %v5410_v4, %v2303_v6  ;;  %v2304_v14 = vmul.f32 %v5396_v33, %v2169_v8  ;;  %v2170_v32 = vmul.f32 %v2927_v53, %v6593_v34  ;;  %v1550_v20 = vpop.xlane.xlu1 %1549  ;;  %v6597_v8 = vld [vmem:[#allocation68_spill] sm:$0xff] }
 0x36d   : > { %v2929_v5 = vpop.eup %2928  ;;  %2938 = vrsqrt.f32 %v1920_v13  ;;  %v1921_v0 = vadd.f32 1e-05, %v1793_v28  ;;  %v1794_v42 = vmul.f32 0.010416667, %v1550_v20 }
 0x36e   : > { %2566 = vst.msk [vmem:[%s4971_s9 + $0x1d8] sm:$0xff] %vm571_vm0, %v2438_v50  ;;  %v2439_v40 = vadd.f32 %v5410_v4, %v2304_v14  ;;  %v2305_v59 = vmul.f32 %v5396_v33, %v2170_v32  ;;  %v2171_v61 = vmul.f32 %v2929_v5, %v6594_v26  ;;  %v1553_v45 = vpop.xlane.xlu0 %1552  ;;  %v6598_v32 = vld [vmem:[#allocation70_spill] sm:$0xff] }
 0x36f   : > { %v2931_v48 = vpop.eup %2930  ;;  %2940 = vrsqrt.f32 %v1921_v0  ;;  %v1922_v29 = vadd.f32 1e-05, %v1794_v42  ;;  %v1795_v46 = vmul.f32 0.010416667, %v1553_v45 }
 0x370   : > { %2567 = vst.msk [vmem:[%s4971_s9 + $0x1e0] sm:$0xff] %vm571_vm0, %v2439_v40  ;;  %v2440_v52 = vadd.f32 %v5410_v4, %v2305_v59  ;;  %v2306_v22 = vmul.f32 %v5396_v33, %v2171_v61  ;;  %v2172_v17 = vmul.f32 %v2931_v48, %v6595_v55  ;;  %v1556_v37 = vpop.xlane.xlu1 %1555  ;;  %v6599_v61 = vld [vmem:[#allocation72_spill] sm:$0xff] }
 0x371   : > { %v2933_v19 = vpop.eup %2932  ;;  %2942 = vrsqrt.f32 %v1922_v29  ;;  %v1923_v1 = vadd.f32 1e-05, %v1795_v46  ;;  %v1796_v16 = vmul.f32 0.010416667, %v1556_v37 }
 0x372   : > { %2568 = vst.msk [vmem:[%s4971_s9 + $0x1e8] sm:$0xff] %vm571_vm0, %v2440_v52  ;;  %v2441_v62 = vadd.f32 %v5410_v4, %v2306_v22  ;;  %v2307_v18 = vmul.f32 %v5396_v33, %v2172_v17  ;;  %v2173_v35 = vmul.f32 %v2933_v19, %v6596_v27  ;;  %v1559_v58 = vpop.xlane.xlu0 %1558  ;;  %v6600_v17 = vld [vmem:[#allocation74_spill] sm:$0xff] }
 0x373   : > { %v2935_v30 = vpop.eup %2934  ;;  %2944 = vrsqrt.f32 %v1923_v1  ;;  %v1924_v60 = vadd.f32 1e-05, %v1796_v16  ;;  %v1797_v54 = vmul.f32 0.010416667, %v1559_v58 }
 0x374   : > { %2569 = vst.msk [vmem:[%s4971_s9 + $0x1f0] sm:$0xff] %vm571_vm0, %v2441_v62  ;;  %v2442_v6 = vadd.f32 %v5410_v4, %v2307_v18  ;;  %v2308_v21 = vmul.f32 %v5396_v33, %v2173_v35  ;;  %v2174_v56 = vmul.f32 %v2935_v30, %v6597_v8  ;;  %v1562_v53 = vpop.xlane.xlu1 %1561  ;;  %v6601_v35 = vld [vmem:[#allocation76_spill] sm:$0xff] }
 0x375   : > { %v2937_v13 = vpop.eup %2936  ;;  %2946 = vrsqrt.f32 %v1924_v60  ;;  %v1925_v28 = vadd.f32 1e-05, %v1797_v54  ;;  %v1798_v50 = vmul.f32 0.010416667, %v1562_v53 }
 0x376   : > { %2570 = vst.msk [vmem:[%s4971_s9 + $0x1f8] sm:$0xff] %vm571_vm0, %v2442_v6  ;;  %v2443_v14 = vadd.f32 %v5410_v4, %v2308_v21  ;;  %v2309_v34 = vmul.f32 %v5396_v33, %v2174_v56  ;;  %v2175_v20 = vmul.f32 %v2937_v13, %v6598_v32  ;;  %v1565_v5 = vpop.xlane.xlu0 %1564  ;;  %v6602_v56 = vld [vmem:[#allocation78_spill] sm:$0xff] }
 0x377   : > { %v2939_v0 = vpop.eup %2938  ;;  %2948 = vrsqrt.f32 %v1925_v28  ;;  %v1926_v42 = vadd.f32 1e-05, %v1798_v50  ;;  %v1799_v40 = vmul.f32 0.010416667, %v1565_v5 }
 0x378   : > { %2571 = vst.msk [vmem:[%s4971_s9 + $0x200] sm:$0xff] %vm571_vm0, %v2443_v14  ;;  %v2444_v59 = vadd.f32 %v5410_v4, %v2309_v34  ;;  %v2310_v26 = vmul.f32 %v5396_v33, %v2175_v20  ;;  %v2176_v45 = vmul.f32 %v2939_v0, %v6599_v61  ;;  %v1568_v48 = vpop.xlane.xlu1 %1567  ;;  %v6603_v20 = vld [vmem:[#allocation80_spill] sm:$0xff] }
 0x379   : > { %v2941_v29 = vpop.eup %2940  ;;  %2950 = vrsqrt.f32 %v1926_v42  ;;  %v1927_v46 = vadd.f32 1e-05, %v1799_v40  ;;  %v1800_v52 = vmul.f32 0.010416667, %v1568_v48 }
 0x37a   : > { %2572 = vst.msk [vmem:[%s4971_s9 + $0x208] sm:$0xff] %vm571_vm0, %v2444_v59  ;;  %v2445_v22 = vadd.f32 %v5410_v4, %v2310_v26  ;;  %v2311_v55 = vmul.f32 %v5396_v33, %v2176_v45  ;;  %v2177_v37 = vmul.f32 %v2941_v29, %v6600_v17  ;;  %v1571_v19 = vpop.xlane.xlu0 %1570  ;;  %v6604_v45 = vld [vmem:[#allocation82_spill] sm:$0xff] }
 0x37b   : > { %v2943_v1 = vpop.eup %2942  ;;  %2952 = vrsqrt.f32 %v1927_v46  ;;  %v1928_v16 = vadd.f32 1e-05, %v1800_v52  ;;  %v1801_v62 = vmul.f32 0.010416667, %v1571_v19 }
 0x37c   : > { %2573 = vst.msk [vmem:[%s4971_s9 + $0x210] sm:$0xff] %vm571_vm0, %v2445_v22  ;;  %v2446_v18 = vadd.f32 %v5410_v4, %v2311_v55  ;;  %v2312_v27 = vmul.f32 %v5396_v33, %v2177_v37  ;;  %v2178_v58 = vmul.f32 %v2943_v1, %v6601_v35  ;;  %v1574_v30 = vpop.xlane.xlu1 %1573  ;;  %v6605_v37 = vld [vmem:[#allocation84_spill] sm:$0xff] }
 0x37d   : > { %v2945_v60 = vpop.eup %2944  ;;  %2954 = vrsqrt.f32 %v1928_v16  ;;  %v1929_v54 = vadd.f32 1e-05, %v1801_v62  ;;  %v1802_v6 = vmul.f32 0.010416667, %v1574_v30 }
 0x37e   : > { %2574 = vst.msk [vmem:[%s4971_s9 + $0x218] sm:$0xff] %vm571_vm0, %v2446_v18  ;;  %v2447_v21 = vadd.f32 %v5410_v4, %v2312_v27  ;;  %v2313_v8 = vmul.f32 %v5396_v33, %v2178_v58  ;;  %v2179_v53 = vmul.f32 %v2945_v60, %v6602_v56  ;;  %v1577_v13 = vpop.xlane.xlu0 %1576  ;;  %v6606_v58 = vld [vmem:[#allocation86_spill] sm:$0xff] }
 0x37f   : > { %v2947_v28 = vpop.eup %2946  ;;  %2956 = vrsqrt.f32 %v1929_v54  ;;  %v1930_v50 = vadd.f32 1e-05, %v1802_v6  ;;  %v1803_v14 = vmul.f32 0.010416667, %v1577_v13 }
 0x380   : > { %2575 = vst.msk [vmem:[%s4971_s9 + $0x220] sm:$0xff] %vm571_vm0, %v2447_v21  ;;  %v2448_v34 = vadd.f32 %v5410_v4, %v2313_v8  ;;  %v2314_v32 = vmul.f32 %v5396_v33, %v2179_v53  ;;  %v2180_v5 = vmul.f32 %v2947_v28, %v6603_v20  ;;  %v1580_v0 = vpop.xlane.xlu1 %1579  ;;  %v6607_v53 = vld [vmem:[#allocation88_spill] sm:$0xff] }
 0x381   : > { %v2949_v42 = vpop.eup %2948  ;;  %2958 = vrsqrt.f32 %v1930_v50  ;;  %v1931_v40 = vadd.f32 1e-05, %v1803_v14  ;;  %v1804_v59 = vmul.f32 0.010416667, %v1580_v0 }
 0x382   : > { %2576 = vst.msk [vmem:[%s4971_s9 + $0x228] sm:$0xff] %vm571_vm0, %v2448_v34  ;;  %v2449_v26 = vadd.f32 %v5410_v4, %v2314_v32  ;;  %v2315_v61 = vmul.f32 %v5396_v33, %v2180_v5  ;;  %v2181_v48 = vmul.f32 %v2949_v42, %v6604_v45  ;;  %v1583_v29 = vpop.xlane.xlu0 %1582  ;;  %v6608_v5 = vld [vmem:[#allocation91_spill] sm:$0xff] }
 0x383   : > { %v2951_v46 = vpop.eup %2950  ;;  %2960 = vrsqrt.f32 %v1931_v40  ;;  %v1932_v52 = vadd.f32 1e-05, %v1804_v59  ;;  %v1805_v22 = vmul.f32 0.010416667, %v1583_v29 }
 0x384   : > { %2577 = vst.msk [vmem:[%s4971_s9 + $0x230] sm:$0xff] %vm571_vm0, %v2449_v26  ;;  %v2450_v55 = vadd.f32 %v5410_v4, %v2315_v61  ;;  %v2316_v17 = vmul.f32 %v5396_v33, %v2181_v48  ;;  %v2182_v19 = vmul.f32 %v2951_v46, %v6605_v37  ;;  %v1586_v1 = vpop.xlane.xlu1 %1585  ;;  %v6609_v48 = vld [vmem:[#allocation93_spill] sm:$0xff] }
 0x385   : > { %v2953_v16 = vpop.eup %2952  ;;  %2962 = vrsqrt.f32 %v1932_v52  ;;  %v1933_v62 = vadd.f32 1e-05, %v1805_v22  ;;  %v1806_v18 = vmul.f32 0.010416667, %v1586_v1 }
 0x386   : > { %2578 = vst.msk [vmem:[%s4971_s9 + $0x238] sm:$0xff] %vm571_vm0, %v2450_v55  ;;  %v2451_v27 = vadd.f32 %v5410_v4, %v2316_v17  ;;  %v2317_v35 = vmul.f32 %v5396_v33, %v2182_v19  ;;  %v2183_v30 = vmul.f32 %v2953_v16, %v6606_v58  ;;  %v1589_v60 = vpop.xlane.xlu0 %1588  ;;  %v6610_v19 = vld [vmem:[#allocation95_spill] sm:$0xff] }
 0x387   : > { %v2955_v54 = vpop.eup %2954  ;;  %2964 = vrsqrt.f32 %v1933_v62  ;;  %v1934_v6 = vadd.f32 1e-05, %v1806_v18  ;;  %v1807_v21 = vmul.f32 0.010416667, %v1589_v60 }
 0x388   : > { %2579 = vst.msk [vmem:[%s4971_s9 + $0x240] sm:$0xff] %vm571_vm0, %v2451_v27  ;;  %v2452_v8 = vadd.f32 %v5410_v4, %v2317_v35  ;;  %v2318_v56 = vmul.f32 %v5396_v33, %v2183_v30  ;;  %v2184_v13 = vmul.f32 %v2955_v54, %v6607_v53  ;;  %v1592_v28 = vpop.xlane.xlu1 %1591  ;;  %v6611_v30 = vld [vmem:[#allocation97_spill] sm:$0xff] }
 0x389   : > { %v2957_v50 = vpop.eup %2956  ;;  %2966 = vrsqrt.f32 %v1934_v6  ;;  %v1935_v14 = vadd.f32 1e-05, %v1807_v21  ;;  %v1808_v34 = vmul.f32 0.010416667, %v1592_v28 }
 0x38a   : > { %2580 = vst.msk [vmem:[%s4971_s9 + $0x248] sm:$0xff] %vm571_vm0, %v2452_v8  ;;  %v2453_v32 = vadd.f32 %v5410_v4, %v2318_v56  ;;  %v2319_v20 = vmul.f32 %v5396_v33, %v2184_v13  ;;  %v2185_v0 = vmul.f32 %v2957_v50, %v6608_v5  ;;  %v1595_v42 = vpop.xlane.xlu0 %1594  ;;  %v6612_v13 = vld [vmem:[#allocation99_spill] sm:$0xff] }
 0x38b   : > { %v2959_v40 = vpop.eup %2958  ;;  %2968 = vrsqrt.f32 %v1935_v14  ;;  %v1936_v59 = vadd.f32 1e-05, %v1808_v34  ;;  %v1809_v26 = vmul.f32 0.010416667, %v1595_v42 }
 0x38c   : > { %2581 = vst.msk [vmem:[%s4971_s9 + $0x250] sm:$0xff] %vm571_vm0, %v2453_v32  ;;  %v2454_v61 = vadd.f32 %v5410_v4, %v2319_v20  ;;  %v2320_v45 = vmul.f32 %v5396_v33, %v2185_v0  ;;  %v2186_v29 = vmul.f32 %v2959_v40, %v6609_v48  ;;  %v1598_v46 = vpop.xlane.xlu1 %1597  ;;  %v6613_v0 = vld [vmem:[#allocation67_spill] sm:$0xff] }
 0x38d   : > { %v2961_v52 = vpop.eup %2960  ;;  %2970 = vrsqrt.f32 %v1936_v59  ;;  %v1937_v22 = vadd.f32 1e-05, %v1809_v26  ;;  %v1810_v55 = vmul.f32 0.010416667, %v1598_v46 }
 0x38e   : > { %2582 = vst.msk [vmem:[%s4971_s9 + $0x258] sm:$0xff] %vm571_vm0, %v2454_v61  ;;  %v2455_v17 = vadd.f32 %v5410_v4, %v2320_v45  ;;  %v2321_v37 = vmul.f32 %v5396_v33, %v2186_v29  ;;  %v2187_v1 = vmul.f32 %v2961_v52, %v6610_v19  ;;  %v1601_v16 = vpop.xlane.xlu0 %1600  ;;  %v6614_v29 = vld [vmem:[#allocation69_spill] sm:$0xff] }
 0x38f   : > { %v2963_v62 = vpop.eup %2962  ;;  %2972 = vrsqrt.f32 %v1937_v22  ;;  %v1938_v18 = vadd.f32 1e-05, %v1810_v55  ;;  %v1811_v27 = vmul.f32 0.010416667, %v1601_v16 }
 0x390   : > { %2583 = vst.msk [vmem:[%s4971_s9 + $0x260] sm:$0xff] %vm571_vm0, %v2455_v17  ;;  %v2456_v35 = vadd.f32 %v5410_v4, %v2321_v37  ;;  %v2322_v58 = vmul.f32 %v5396_v33, %v2187_v1  ;;  %v2188_v60 = vmul.f32 %v2963_v62, %v6611_v30  ;;  %v1604_v54 = vpop.xlane.xlu1 %1603  ;;  %v6615_v1 = vld [vmem:[#allocation71_spill] sm:$0xff] }
 0x391   : > { %v2965_v6 = vpop.eup %2964  ;;  %2974 = vrsqrt.f32 %v1938_v18  ;;  %v1939_v21 = vadd.f32 1e-05, %v1811_v27  ;;  %v1812_v8 = vmul.f32 0.010416667, %v1604_v54 }
 0x392   : > { %2584 = vst.msk [vmem:[%s4971_s9 + $0x268] sm:$0xff] %vm571_vm0, %v2456_v35  ;;  %v2457_v56 = vadd.f32 %v5410_v4, %v2322_v58  ;;  %v2323_v53 = vmul.f32 %v5396_v33, %v2188_v60  ;;  %v2189_v28 = vmul.f32 %v2965_v6, %v6612_v13  ;;  %v1607_v50 = vpop.xlane.xlu0 %1606  ;;  %v6616_v60 = vld [vmem:[#allocation73_spill] sm:$0xff] }
 0x393   : > { %v2967_v14 = vpop.eup %2966  ;;  %2976 = vrsqrt.f32 %v1939_v21  ;;  %v1940_v34 = vadd.f32 1e-05, %v1812_v8  ;;  %v1813_v32 = vmul.f32 0.010416667, %v1607_v50 }
 0x394   : > { %2585 = vst.msk [vmem:[%s4971_s9 + $0x270] sm:$0xff] %vm571_vm0, %v2457_v56  ;;  %v2458_v20 = vadd.f32 %v5410_v4, %v2323_v53  ;;  %v2324_v5 = vmul.f32 %v5396_v33, %v2189_v28  ;;  %v2190_v42 = vmul.f32 %v2967_v14, %v6613_v0  ;;  %v1610_v40 = vpop.xlane.xlu1 %1609  ;;  %v6617_v28 = vld [vmem:[#allocation75_spill] sm:$0xff] }
 0x395   : > { %v2969_v59 = vpop.eup %2968  ;;  %2978 = vrsqrt.f32 %v1940_v34  ;;  %v1941_v26 = vadd.f32 1e-05, %v1813_v32  ;;  %v1814_v61 = vmul.f32 0.010416667, %v1610_v40 }
 0x396   : > { %2586 = vst.msk [vmem:[%s4971_s9 + $0x278] sm:$0xff] %vm571_vm0, %v2458_v20  ;;  %v2459_v45 = vadd.f32 %v5410_v4, %v2324_v5  ;;  %v2325_v48 = vmul.f32 %v5396_v33, %v2190_v42  ;;  %v2191_v46 = vmul.f32 %v2969_v59, %v6614_v29  ;;  %v1613_v52 = vpop.xlane.xlu0 %1612  ;;  %v6618_v42 = vld [vmem:[#allocation77_spill] sm:$0xff] }
 0x397   : > { %v2971_v22 = vpop.eup %2970  ;;  %2980 = vrsqrt.f32 %v1941_v26  ;;  %v1942_v55 = vadd.f32 1e-05, %v1814_v61  ;;  %v1815_v17 = vmul.f32 0.010416667, %v1613_v52 }
 0x398   : > { %2587 = vst.msk [vmem:[%s4971_s9 + $0x280] sm:$0xff] %vm571_vm0, %v2459_v45  ;;  %v2460_v37 = vadd.f32 %v5410_v4, %v2325_v48  ;;  %v2326_v19 = vmul.f32 %v5396_v33, %v2191_v46  ;;  %v2192_v16 = vmul.f32 %v2971_v22, %v6615_v1  ;;  %v1616_v62 = vpop.xlane.xlu1 %1615  ;;  %v6619_v46 = vld [vmem:[#allocation79_spill] sm:$0xff] }
 0x399   : > { %v2973_v18 = vpop.eup %2972  ;;  %2982 = vrsqrt.f32 %v1942_v55  ;;  %v1943_v27 = vadd.f32 1e-05, %v1815_v17  ;;  %v1816_v35 = vmul.f32 0.010416667, %v1616_v62 }
 0x39a   : > { %2588 = vst.msk [vmem:[%s4971_s9 + $0x288] sm:$0xff] %vm571_vm0, %v2460_v37  ;;  %v2461_v58 = vadd.f32 %v5410_v4, %v2326_v19  ;;  %v2327_v30 = vmul.f32 %v5396_v33, %v2192_v16  ;;  %v2193_v54 = vmul.f32 %v2973_v18, %v6616_v60  ;;  %v1619_v6 = vpop.xlane.xlu0 %1618  ;;  %v6620_v16 = vld [vmem:[#allocation81_spill] sm:$0xff] }
 0x39b   : > { %v2975_v21 = vpop.eup %2974  ;;  %2984 = vrsqrt.f32 %v1943_v27  ;;  %v1944_v8 = vadd.f32 1e-05, %v1816_v35  ;;  %v1817_v56 = vmul.f32 0.010416667, %v1619_v6 }
 0x39c   : > { %2589 = vst.msk [vmem:[%s4971_s9 + $0x290] sm:$0xff] %vm571_vm0, %v2461_v58  ;;  %v2462_v53 = vadd.f32 %v5410_v4, %v2327_v30  ;;  %v2328_v13 = vmul.f32 %v5396_v33, %v2193_v54  ;;  %v2194_v50 = vmul.f32 %v2975_v21, %v6617_v28  ;;  %v1622_v14 = vpop.xlane.xlu1 %1621  ;;  %v6621_v54 = vld [vmem:[#allocation83_spill] sm:$0xff] }
 0x39d   : > { %v2977_v34 = vpop.eup %2976  ;;  %2986 = vrsqrt.f32 %v1944_v8  ;;  %v1945_v32 = vadd.f32 1e-05, %v1817_v56  ;;  %v1818_v20 = vmul.f32 0.010416667, %v1622_v14 }
 0x39e   : > { %2590 = vst.msk [vmem:[%s4971_s9 + $0x298] sm:$0xff] %vm571_vm0, %v2462_v53  ;;  %v2463_v5 = vadd.f32 %v5410_v4, %v2328_v13  ;;  %v2329_v0 = vmul.f32 %v5396_v33, %v2194_v50  ;;  %v2195_v40 = vmul.f32 %v2977_v34, %v6618_v42  ;;  %v1625_v59 = vpop.xlane.xlu0 %1624  ;;  %v6622_v50 = vld [vmem:[#allocation85_spill] sm:$0xff] }
 0x39f   : > { %v2979_v26 = vpop.eup %2978  ;;  %2988 = vrsqrt.f32 %v1945_v32  ;;  %v1946_v61 = vadd.f32 1e-05, %v1818_v20  ;;  %v1819_v45 = vmul.f32 0.010416667, %v1625_v59 }
 0x3a0   : > { %2591 = vst.msk [vmem:[%s4971_s9 + $0x2a0] sm:$0xff] %vm571_vm0, %v2463_v5  ;;  %v2464_v48 = vadd.f32 %v5410_v4, %v2329_v0  ;;  %v2330_v29 = vmul.f32 %v5396_v33, %v2195_v40  ;;  %v2196_v52 = vmul.f32 %v2979_v26, %v6619_v46  ;;  %v1628_v22 = vpop.xlane.xlu1 %1627  ;;  %v6623_v40 = vld [vmem:[#allocation87_spill] sm:$0xff] }
 0x3a1   : > { %v2981_v55 = vpop.eup %2980  ;;  %2990 = vrsqrt.f32 %v1946_v61  ;;  %v1947_v17 = vadd.f32 1e-05, %v1819_v45  ;;  %v1820_v37 = vmul.f32 0.010416667, %v1628_v22 }
 0x3a2   : > { %2592 = vst.msk [vmem:[%s4971_s9 + $0x2a8] sm:$0xff] %vm571_vm0, %v2464_v48  ;;  %v2465_v19 = vadd.f32 %v5410_v4, %v2330_v29  ;;  %v2331_v1 = vmul.f32 %v5396_v33, %v2196_v52  ;;  %v2197_v62 = vmul.f32 %v2981_v55, %v6620_v16  ;;  %v1631_v18 = vpop.xlane.xlu0 %1630  ;;  %v6624_v52 = vld [vmem:[#allocation89_spill] sm:$0xff] }
 0x3a3   : > { %v2983_v27 = vpop.eup %2982  ;;  %2992 = vrsqrt.f32 %v1947_v17  ;;  %v1948_v35 = vadd.f32 1e-05, %v1820_v37  ;;  %v1821_v58 = vmul.f32 0.010416667, %v1631_v18 }
 0x3a4   : > { %2593 = vst.msk [vmem:[%s4971_s9 + $0x2b0] sm:$0xff] %vm571_vm0, %v2465_v19  ;;  %v2466_v30 = vadd.f32 %v5410_v4, %v2331_v1  ;;  %v2332_v60 = vmul.f32 %v5396_v33, %v2197_v62  ;;  %v2198_v6 = vmul.f32 %v2983_v27, %v6621_v54  ;;  %v1634_v21 = vpop.xlane.xlu1 %1633  ;;  %v6625_v62 = vld [vmem:[#allocation90_spill] sm:$0xff] }
 0x3a5   : > { %v2985_v8 = vpop.eup %2984  ;;  %2994 = vrsqrt.f32 %v1948_v35  ;;  %v1949_v56 = vadd.f32 1e-05, %v1821_v58  ;;  %v1822_v53 = vmul.f32 0.010416667, %v1634_v21 }
 0x3a6   : > { %2594 = vst.msk [vmem:[%s4971_s9 + $0x2b8] sm:$0xff] %vm571_vm0, %v2466_v30  ;;  %v2467_v13 = vadd.f32 %v5410_v4, %v2332_v60  ;;  %v2333_v28 = vmul.f32 %v5396_v33, %v2198_v6  ;;  %v2199_v14 = vmul.f32 %v2985_v8, %v6622_v50  ;;  %v1637_v34 = vpop.xlane.xlu0 %1636  ;;  %v6626_v6 = vld [vmem:[#allocation94_spill] sm:$0xff] }
 0x3a7   : > { %v2987_v32 = vpop.eup %2986  ;;  %2996 = vrsqrt.f32 %v1949_v56  ;;  %v1950_v20 = vadd.f32 1e-05, %v1822_v53  ;;  %v1823_v5 = vmul.f32 0.010416667, %v1637_v34 }
 0x3a8   : > { %2595 = vst.msk [vmem:[%s4971_s9 + $0x2c0] sm:$0xff] %vm571_vm0, %v2467_v13  ;;  %v2468_v0 = vadd.f32 %v5410_v4, %v2333_v28  ;;  %v2334_v42 = vmul.f32 %v5396_v33, %v2199_v14  ;;  %v2200_v59 = vmul.f32 %v2987_v32, %v6623_v40  ;;  %v1640_v26 = vpop.xlane.xlu1 %1639  ;;  %v6627_v14 = vld [vmem:[#allocation96_spill] sm:$0xff] }
 0x3a9   : > { %v2989_v61 = vpop.eup %2988  ;;  %2998 = vrsqrt.f32 %v1950_v20  ;;  %v1951_v45 = vadd.f32 1e-05, %v1823_v5  ;;  %v1824_v48 = vmul.f32 0.010416667, %v1640_v26 }
 0x3aa   : > { %2596 = vst.msk [vmem:[%s4971_s9 + $0x2c8] sm:$0xff] %vm571_vm0, %v2468_v0  ;;  %v2469_v29 = vadd.f32 %v5410_v4, %v2334_v42  ;;  %v2335_v46 = vmul.f32 %v5396_v33, %v2200_v59  ;;  %v2201_v22 = vmul.f32 %v2989_v61, %v6624_v52  ;;  %v1643_v55 = vpop.xlane.xlu0 %1642  ;;  %v6628_v59 = vld [vmem:[#allocation60_spill] sm:$0xff]  ;;  %v5699_v52 = vld [vmem:[%s5886_s1] ss:$0 sm:$0xff] }
 0x3ab   : > { %v2991_v17 = vpop.eup %2990  ;;  %3000 = vrsqrt.f32 %v1951_v45  ;;  %v1952_v37 = vadd.f32 1e-05, %v1824_v48  ;;  %v1825_v19 = vmul.f32 0.010416667, %v1643_v55 }
 0x3ac   : > { %2597 = vst.msk [vmem:[%s4971_s9 + $0x2d0] sm:$0xff] %vm571_vm0, %v2469_v29  ;;  %v2470_v1 = vadd.f32 %v5410_v4, %v2335_v46  ;;  %v2336_v16 = vmul.f32 %v5396_v33, %v2201_v22  ;;  %v2202_v18 = vmul.f32 %v2991_v17, %v6625_v62  ;;  %v1646_v27 = vpop.xlane.xlu1 %1645 }
 0x3ad   : > { %v2993_v35 = vpop.eup %2992  ;;  %3002 = vrsqrt.f32 %v1952_v37  ;;  %v1953_v58 = vadd.f32 1e-05, %v1825_v19  ;;  %v1826_v30 = vmul.f32 0.010416667, %v1646_v27 }
 0x3ae   : > { %2598 = vst.msk [vmem:[%s4971_s9 + $0x2d8] sm:$0xff] %vm571_vm0, %v2470_v1  ;;  %v2471_v60 = vadd.f32 %v5410_v4, %v2336_v16  ;;  %v2337_v54 = vmul.f32 %v5396_v33, %v2202_v18  ;;  %v2203_v21 = vmul.f32 %v2993_v35, %v6626_v6  ;;  %v1649_v8 = vpop.xlane.xlu0 %1648  ;;  %v6630_v18 = vld [vmem:[#allocation66_spill] sm:$0xff] }
 0x3af   : > { %v2995_v56 = vpop.eup %2994  ;;  %3004 = vrsqrt.f32 %v1953_v58  ;;  %v1954_v53 = vadd.f32 1e-05, %v1826_v30  ;;  %v1827_v13 = vmul.f32 0.010416667, %v1649_v8 }
 0x3b0   : > { %2599 = vst.msk [vmem:[%s4971_s9 + $0x2e0] sm:$0xff] %vm571_vm0, %v2471_v60  ;;  %v2472_v28 = vadd.f32 %v5410_v4, %v2337_v54  ;;  %v2338_v50 = vmul.f32 %v5396_v33, %v2203_v21  ;;  %v2204_v34 = vmul.f32 %v2995_v56, %v6627_v14  ;;  %v1652_v32 = vpop.xlane.xlu1 %1651  ;;  %v5713_v54 = vld [vmem:[%s5887_s2] ss:$0 sm:$0xff]  ;;  %v6631_v21 = vld [vmem:[#allocation103_spill] sm:$0xff] }
 0x3b1   : > { %v2997_v20 = vpop.eup %2996  ;;  %3006 = vrsqrt.f32 %v1954_v53  ;;  %v1955_v5 = vadd.f32 1e-05, %v1827_v13  ;;  %v1828_v0 = vmul.f32 0.010416667, %v1652_v32 }
 0x3b2   : > { %2600 = vst.msk [vmem:[%s4971_s9 + $0x2e8] sm:$0xff] %vm571_vm0, %v2472_v28  ;;  %v2473_v42 = vadd.f32 %v5410_v4, %v2338_v50  ;;  %v2339_v40 = vmul.f32 %v5396_v33, %v2204_v34  ;;  %v2205_v26 = vmul.f32 %v2997_v20, %v6628_v59  ;;  %v1655_v61 = vpop.xlane.xlu0 %1654  ;;  %v6629_v33 = vld [vmem:[#allocation101_spill] sm:$0xff] }
 0x3b3   : > { %v2999_v45 = vpop.eup %2998  ;;  %3008 = vrsqrt.f32 %v1955_v5  ;;  %v1956_v48 = vadd.f32 1e-05, %v1828_v0  ;;  %v1829_v29 = vmul.f32 0.010416667, %v1655_v61  ;;  %v6632_v34 = vld [vmem:[#allocation105_spill] sm:$0xff] }
 0x3b4   : > { %2601 = vst.msk [vmem:[%s4971_s9 + $0x2f0] sm:$0xff] %vm571_vm0, %v2473_v42  ;;  %v2474_v46 = vadd.f32 %v5410_v4, %v2339_v40  ;;  %v2340_v22 = vmul.f32 %v5699_v52, %v2205_v26  ;;  %v2206_v55 = vmul.f32 %v2999_v45, %v6629_v33  ;;  %v1658_v17 = vpop.xlane.xlu1 %1657  ;;  %v6633_v26 = vld [vmem:[#allocation107_spill] sm:$0xff] }
 0x3b5   : > { %v3001_v37 = vpop.eup %3000  ;;  %3010 = vrsqrt.f32 %v1956_v48  ;;  %v1957_v19 = vadd.f32 1e-05, %v1829_v29  ;;  %v1830_v1 = vmul.f32 0.010416667, %v1658_v17 }
 0x3b6   : > { %2602 = vst.msk [vmem:[%s4971_s9 + $0x2f8] sm:$0xff] %vm571_vm0, %v2474_v46  ;;  %v2475_v16 = vadd.f32 %v5410_v4, %v2340_v22  ;;  %v2341_v62 = vmul.f32 %v5699_v52, %v2206_v55  ;;  %v2207_v27 = vmul.f32 %v3001_v37, %v6630_v18  ;;  %v1661_v35 = vpop.xlane.xlu0 %1660  ;;  %v6634_v55 = vld [vmem:[#allocation109_spill] sm:$0xff] }
 0x3b7   : > { %v3003_v58 = vpop.eup %3002  ;;  %3012 = vrsqrt.f32 %v1957_v19  ;;  %v1958_v30 = vadd.f32 1e-05, %v1830_v1  ;;  %v1831_v60 = vmul.f32 0.010416667, %v1661_v35 }
 0x3b8   : > { %2603 = vst.msk [vmem:[%s4971_s9 + $0x300] sm:$0xff] %vm571_vm0, %v2475_v16  ;;  %v2476_v6 = vadd.f32 %v5713_v54, %v2341_v62  ;;  %v2342_v4 = vmul.f32 %v5699_v52, %v2207_v27  ;;  %v2208_v8 = vmul.f32 %v3003_v58, %v6631_v21  ;;  %v1664_v56 = vpop.xlane.xlu1 %1663  ;;  %v6635_v27 = vld [vmem:[#allocation111_spill] sm:$0xff] }
 0x3b9   : > { %v3005_v53 = vpop.eup %3004  ;;  %3014 = vrsqrt.f32 %v1958_v30  ;;  %v1959_v13 = vadd.f32 1e-05, %v1831_v60  ;;  %v1832_v28 = vmul.f32 0.010416667, %v1664_v56 }
 0x3ba   : > { %2604 = vst.msk [vmem:[%s4971_s9 + $0x308] sm:$0xff] %vm571_vm0, %v2476_v6  ;;  %v2477_v50 = vadd.f32 %v5713_v54, %v2342_v4  ;;  %v2343_v14 = vmul.f32 %v5699_v52, %v2208_v8  ;;  %v2209_v32 = vmul.f32 %v3005_v53, %v6632_v34  ;;  %v1667_v20 = vpop.xlane.xlu0 %1666  ;;  %v6636_v8 = vld [vmem:[#allocation113_spill] sm:$0xff] }
 0x3bb   : > { %v3007_v5 = vpop.eup %3006  ;;  %3016 = vrsqrt.f32 %v1959_v13  ;;  %v1960_v0 = vadd.f32 1e-05, %v1832_v28  ;;  %v1833_v42 = vmul.f32 0.010416667, %v1667_v20 }
 0x3bc   : > { %2605 = vst.msk [vmem:[%s4971_s9 + $0x310] sm:$0xff] %vm571_vm0, %v2477_v50  ;;  %v2478_v40 = vadd.f32 %v5713_v54, %v2343_v14  ;;  %v2344_v59 = vmul.f32 %v5699_v52, %v2209_v32  ;;  %v2210_v61 = vmul.f32 %v3007_v5, %v6633_v26  ;;  %v1670_v45 = vpop.xlane.xlu1 %1669 }
 0x3bd   : > { %v3009_v48 = vpop.eup %3008  ;;  %3018 = vrsqrt.f32 %v1960_v0  ;;  %v1961_v29 = vadd.f32 1e-05, %v1833_v42  ;;  %v1834_v46 = vmul.f32 0.010416667, %v1670_v45 }
 0x3be   : > { %2606 = vst.msk [vmem:[%s4971_s9 + $0x318] sm:$0xff] %vm571_vm0, %v2478_v40  ;;  %v2479_v22 = vadd.f32 %v5713_v54, %v2344_v59  ;;  %v2345_v33 = vmul.f32 %v5699_v52, %v2210_v61  ;;  %v2211_v17 = vmul.f32 %v3009_v48, %v6634_v55  ;;  %v1673_v37 = vpop.xlane.xlu0 %1672 }
 0x3bf   : > { %v3011_v19 = vpop.eup %3010  ;;  %3020 = vrsqrt.f32 %v1961_v29  ;;  %v1962_v1 = vadd.f32 1e-05, %v1834_v46  ;;  %v1835_v16 = vmul.f32 0.010416667, %v1673_v37 }
 0x3c0   : > { %2607 = vst.msk [vmem:[%s4971_s9 + $0x320] sm:$0xff] %vm571_vm0, %v2479_v22  ;;  %v2480_v62 = vadd.f32 %v5713_v54, %v2345_v33  ;;  %v2346_v18 = vmul.f32 %v5699_v52, %v2211_v17  ;;  %v2212_v35 = vmul.f32 %v3011_v19, %v6635_v27  ;;  %v1676_v58 = vpop.xlane.xlu1 %1675 }
 0x3c1   : > { %v3013_v30 = vpop.eup %3012  ;;  %3022 = vrsqrt.f32 %v1962_v1  ;;  %v1963_v60 = vadd.f32 1e-05, %v1835_v16  ;;  %v1836_v6 = vmul.f32 0.010416667, %v1676_v58 }
 0x3c2   : > { %2608 = vst.msk [vmem:[%s4971_s9 + $0x328] sm:$0xff] %vm571_vm0, %v2480_v62  ;;  %v2481_v4 = vadd.f32 %v5713_v54, %v2346_v18  ;;  %v2347_v21 = vmul.f32 %v5699_v52, %v2212_v35  ;;  %v2213_v56 = vmul.f32 %v3013_v30, %v6636_v8  ;;  %v1679_v53 = vpop.xlane.xlu0 %1678 }
 0x3c3   : > { %v3015_v13 = vpop.eup %3014  ;;  %3024 = vrsqrt.f32 %v1963_v60  ;;  %v1964_v28 = vadd.f32 1e-05, %v1836_v6  ;;  %v1837_v50 = vmul.f32 0.010416667, %v1679_v53 }
 0x3c4   : > { %2609 = vst.msk [vmem:[%s4971_s9 + $0x330] sm:$0xff] %vm571_vm0, %v2481_v4  ;;  %v2482_v14 = vadd.f32 %v5713_v54, %v2347_v21  ;;  %v2348_v34 = vmul.f32 %v5699_v52, %v2213_v56  ;;  %v2214_v32 = vmul.f32 %v3015_v13, %v4963_v44  ;;  %v1682_v20 = vpop.xlane.xlu1 %1681 }
 0x3c5   : > { %v3017_v5 = vpop.eup %3016  ;;  %3026 = vrsqrt.f32 %v1964_v28  ;;  %v1965_v0 = vadd.f32 1e-05, %v1837_v50  ;;  %v1838_v42 = vmul.f32 0.010416667, %v1682_v20 }
 0x3c6   : > { %2610 = vst.msk [vmem:[%s4971_s9 + $0x338] sm:$0xff] %vm571_vm0, %v2482_v14  ;;  %v2483_v40 = vadd.f32 %v5713_v54, %v2348_v34  ;;  %v2349_v59 = vmul.f32 %v5699_v52, %v2214_v32  ;;  %v2215_v26 = vmul.f32 %v3017_v5, %v4985_v9  ;;  %v1685_v61 = vpop.xlane.xlu0 %1684 }
 0x3c7   : > { %v3019_v45 = vpop.eup %3018  ;;  %3028 = vrsqrt.f32 %v1965_v0  ;;  %v1966_v48 = vadd.f32 1e-05, %v1838_v42  ;;  %v1839_v29 = vmul.f32 0.010416667, %v1685_v61 }
 0x3c8   : > { %2611 = vst.msk [vmem:[%s4971_s9 + $0x340] sm:$0xff] %vm571_vm0, %v2483_v40  ;;  %v2484_v44 = vadd.f32 %v5713_v54, %v2349_v59  ;;  %v2350_v46 = vmul.f32 %v5699_v52, %v2215_v26  ;;  %v2216_v22 = vmul.f32 %v3019_v45, %v5004_v43  ;;  %v1688_v33 = vpop.xlane.xlu1 %1687 }
 0x3c9   : > { %v3021_v55 = vpop.eup %3020  ;;  %3030 = vrsqrt.f32 %v1966_v48  ;;  %v1967_v17 = vadd.f32 1e-05, %v1839_v29  ;;  %v1840_v37 = vmul.f32 0.010416667, %v1688_v33 }
 0x3ca   : > { %2612 = vst.msk [vmem:[%s4971_s9 + $0x348] sm:$0xff] %vm571_vm0, %v2484_v44  ;;  %v2485_v9 = vadd.f32 %v5713_v54, %v2350_v46  ;;  %v2351_v19 = vmul.f32 %v5699_v52, %v2216_v22  ;;  %v2217_v1 = vmul.f32 %v3021_v55, %v5027_v3  ;;  %v1691_v16 = vpop.xlane.xlu0 %1690 }
 0x3cb   : > { %v3023_v62 = vpop.eup %3022  ;;  %3032 = vrsqrt.f32 %v1967_v17  ;;  %v1968_v18 = vadd.f32 1e-05, %v1840_v37  ;;  %v1841_v27 = vmul.f32 0.010416667, %v1691_v16 }
 0x3cc   : > { %2613 = vst.msk [vmem:[%s4971_s9 + $0x350] sm:$0xff] %vm571_vm0, %v2485_v9  ;;  %v2486_v43 = vadd.f32 %v5713_v54, %v2351_v19  ;;  %v2352_v35 = vmul.f32 %v5699_v52, %v2217_v1  ;;  %v2218_v58 = vmul.f32 %v3023_v62, %v5046_v11  ;;  %v1694_v30 = vpop.xlane.xlu1 %1693 }
 0x3cd   : > { %v3025_v60 = vpop.eup %3024  ;;  %3034 = vrsqrt.f32 %v1968_v18  ;;  %v1969_v6 = vadd.f32 1e-05, %v1841_v27  ;;  %v1842_v4 = vmul.f32 0.010416667, %v1694_v30 }
 0x3ce   : > { %2614 = vst.msk [vmem:[%s4971_s9 + $0x358] sm:$0xff] %vm571_vm0, %v2486_v43  ;;  %v2487_v3 = vadd.f32 %v5713_v54, %v2352_v35  ;;  %v2353_v21 = vmul.f32 %v5699_v52, %v2218_v58  ;;  %v2219_v8 = vmul.f32 %v3025_v60, %v5069_v15  ;;  %v1697_v56 = vpop.xlane.xlu0 %1696 }
 0x3cf   : > { %v3027_v53 = vpop.eup %3026  ;;  %3036 = vrsqrt.f32 %v1969_v6  ;;  %v1970_v13 = vadd.f32 1e-05, %v1842_v4  ;;  %v1843_v28 = vmul.f32 0.010416667, %v1697_v56 }
 0x3d0   : > { %2615 = vst.msk [vmem:[%s4971_s9 + $0x360] sm:$0xff] %vm571_vm0, %v2487_v3  ;;  %v2488_v11 = vadd.f32 %v5713_v54, %v2353_v21  ;;  %v2354_v50 = vmul.f32 %v5699_v52, %v2219_v8  ;;  %v2220_v14 = vmul.f32 %v3027_v53, %v5088_v7  ;;  %v1700_v34 = vpop.xlane.xlu1 %1699 }
 0x3d1   : > { %v3029_v32 = vpop.eup %3028  ;;  %3038 = vrsqrt.f32 %v1970_v13  ;;  %v1971_v20 = vadd.f32 1e-05, %v1843_v28  ;;  %v1844_v5 = vmul.f32 0.010416667, %v1700_v34 }
 0x3d2   : > { %2616 = vst.msk [vmem:[%s4971_s9 + $0x368] sm:$0xff] %vm571_vm0, %v2488_v11  ;;  %v2489_v15 = vadd.f32 %v5713_v54, %v2354_v50  ;;  %v2355_v0 = vmul.f32 %v5699_v52, %v2220_v14  ;;  %v2221_v42 = vmul.f32 %v3029_v32, %v5111_v31  ;;  %v1703_v40 = vpop.xlane.xlu0 %1702 }
 0x3d3   : > { %v3031_v59 = vpop.eup %3030  ;;  %3040 = vrsqrt.f32 %v1971_v20  ;;  %v1972_v26 = vadd.f32 1e-05, %v1844_v5  ;;  %v1845_v61 = vmul.f32 0.010416667, %v1703_v40 }
 0x3d4   : > { %2617 = vst.msk [vmem:[%s4971_s9 + $0x370] sm:$0xff] %vm571_vm0, %v2489_v15  ;;  %v2490_v7 = vadd.f32 %v5713_v54, %v2355_v0  ;;  %v2356_v45 = vmul.f32 %v5699_v52, %v2221_v42  ;;  %v2222_v48 = vmul.f32 %v3031_v59, %v5130_v23  ;;  %v1706_v29 = vpop.xlane.xlu1 %1705 }
 0x3d5   : > { %v3033_v44 = vpop.eup %3032  ;;  %3042 = vrsqrt.f32 %v1972_v26  ;;  %v1973_v46 = vadd.f32 1e-05, %v1845_v61  ;;  %v1846_v22 = vmul.f32 0.010416667, %v1706_v29 }
 0x3d6   : > { %2618 = vst.msk [vmem:[%s4971_s9 + $0x378] sm:$0xff] %vm571_vm0, %v2490_v7  ;;  %v2491_v31 = vadd.f32 %v5713_v54, %v2356_v45  ;;  %v2357_v33 = vmul.f32 %v5699_v52, %v2222_v48  ;;  %v2223_v55 = vmul.f32 %v3033_v44, %v5153_v25  ;;  %v1709_v17 = vpop.xlane.xlu0 %1708 }
 0x3d7   : > { %v3035_v37 = vpop.eup %3034  ;;  %3044 = vrsqrt.f32 %v1973_v46  ;;  %v1974_v9 = vadd.f32 1e-05, %v1846_v22  ;;  %v1847_v19 = vmul.f32 0.010416667, %v1709_v17 }
 0x3d8   : > { %2619 = vst.msk [vmem:[%s4971_s9 + $0x380] sm:$0xff] %vm571_vm0, %v2491_v31  ;;  %v2492_v23 = vadd.f32 %v5713_v54, %v2357_v33  ;;  %v2358_v1 = vmul.f32 %v5699_v52, %v2223_v55  ;;  %v2224_v16 = vmul.f32 %v3035_v37, %v5172_v2  ;;  %v1712_v62 = vpop.xlane.xlu1 %1711 }
 0x3d9   : > { %v3037_v18 = vpop.eup %3036  ;;  %3046 = vrsqrt.f32 %v1974_v9  ;;  %v1975_v27 = vadd.f32 1e-05, %v1847_v19  ;;  %v1848_v43 = vmul.f32 0.010416667, %v1712_v62 }
 0x3da   : > { %2620 = vst.msk [vmem:[%s4971_s9 + $0x388] sm:$0xff] %vm571_vm0, %v2492_v23  ;;  %v2493_v25 = vadd.f32 %v5713_v54, %v2358_v1  ;;  %v2359_v35 = vmul.f32 %v5699_v52, %v2224_v16  ;;  %v2225_v58 = vmul.f32 %v3037_v18, %v5195_v51  ;;  %v1715_v30 = vpop.xlane.xlu0 %1714 }
 0x3db   : > { %v3039_v60 = vpop.eup %3038  ;;  %3048 = vrsqrt.f32 %v1975_v27  ;;  %v1976_v6 = vadd.f32 1e-05, %v1848_v43  ;;  %v1849_v4 = vmul.f32 0.010416667, %v1715_v30 }
 0x3dc   : > { %2621 = vst.msk [vmem:[%s4971_s9 + $0x390] sm:$0xff] %vm571_vm0, %v2493_v25  ;;  %v2494_v2 = vadd.f32 %v5713_v54, %v2359_v35  ;;  %v2360_v3 = vmul.f32 %v5699_v52, %v2225_v58  ;;  %v2226_v21 = vmul.f32 %v3039_v60, %v5214_v12  ;;  %v1718_v8 = vpop.xlane.xlu1 %1717 }
 0x3dd   : > { %v3041_v56 = vpop.eup %3040  ;;  %3050 = vrsqrt.f32 %v1976_v6  ;;  %v1977_v53 = vadd.f32 1e-05, %v1849_v4  ;;  %v1850_v13 = vmul.f32 0.010416667, %v1718_v8 }
 0x3de   : > { %2622 = vst.msk [vmem:[%s4971_s9 + $0x398] sm:$0xff] %vm571_vm0, %v2494_v2  ;;  %v2495_v51 = vadd.f32 %v5713_v54, %v2360_v3  ;;  %v2361_v28 = vmul.f32 %v5699_v52, %v2226_v21  ;;  %v2227_v11 = vmul.f32 %v3041_v56, %v5237_v38  ;;  %v1721_v50 = vpop.xlane.xlu0 %1720 }
 0x3df   : > { %v3043_v14 = vpop.eup %3042  ;;  %3052 = vrsqrt.f32 %v1977_v53  ;;  %v1978_v34 = vadd.f32 1e-05, %v1850_v13  ;;  %v1851_v32 = vmul.f32 0.010416667, %v1721_v50 }
 0x3e0   : > { %2623 = vst.msk [vmem:[%s4971_s9 + $0x3a0] sm:$0xff] %vm571_vm0, %v2495_v51  ;;  %v2496_v12 = vadd.f32 %v5713_v54, %v2361_v28  ;;  %v2362_v20 = vmul.f32 %v5699_v52, %v2227_v11  ;;  %v2228_v5 = vmul.f32 %v3043_v14, %v5256_v57  ;;  %v1724_v15 = vpop.xlane.xlu1 %1723 }
 0x3e1   : > { %v3045_v0 = vpop.eup %3044  ;;  %3054 = vrsqrt.f32 %v1978_v34  ;;  %v1979_v42 = vadd.f32 1e-05, %v1851_v32  ;;  %v1852_v38 = vmul.f32 0.010416667, %v1724_v15 }
 0x3e2   : > { %2624 = vst.msk [vmem:[%s4971_s9 + $0x3a8] sm:$0xff] %vm571_vm0, %v2496_v12  ;;  %v2497_v40 = vadd.f32 %v5713_v54, %v2362_v20  ;;  %v2363_v59 = vmul.f32 %v5699_v52, %v2228_v5  ;;  %v2229_v26 = vmul.f32 %v3045_v0, %v5279_v63 }
 0x3e3   : > { %v3047_v61 = vpop.eup %3046  ;;  %3056 = vrsqrt.f32 %v1979_v42  ;;  %v1980_v7 = vadd.f32 1e-05, %v1852_v38 }
 0x3e4   : > { %2625 = vst.msk [vmem:[%s4971_s9 + $0x3b0] sm:$0xff] %vm571_vm0, %v2497_v40  ;;  %v2498_v57 = vadd.f32 %v5713_v54, %v2363_v59  ;;  %v2364_v45 = vmul.f32 %v5699_v52, %v2229_v26  ;;  %v2230_v48 = vmul.f32 %v3047_v61, %v5298_v36 }
 0x3e5   : > { %v3049_v29 = vpop.eup %3048  ;;  %3058 = vrsqrt.f32 %v1980_v7 }
 0x3e6   : > { %2626 = vst.msk [vmem:[%s4971_s9 + $0x3b8] sm:$0xff] %vm571_vm0, %v2498_v57  ;;  %v2499_v44 = vadd.f32 %v5713_v54, %v2364_v45  ;;  %v2365_v63 = vmul.f32 %v5699_v52, %v2230_v48  ;;  %v2231_v46 = vmul.f32 %v3049_v29, %v5321_v24 }
 0x3e7   : > { %v3051_v22 = vpop.eup %3050 }
 0x3e8   : > { %2627 = vst.msk [vmem:[%s4971_s9 + $0x3c0] sm:$0xff] %vm571_vm0, %v2499_v44  ;;  %v2500_v31 = vadd.f32 %v5713_v54, %v2365_v63  ;;  %v2366_v33 = vmul.f32 %v5699_v52, %v2231_v46  ;;  %v2232_v36 = vmul.f32 %v3051_v22, %v5340_v39 }
 0x3e9   : > { %v3053_v55 = vpop.eup %3052 }
 0x3ea   : > { %2628 = vst.msk [vmem:[%s4971_s9 + $0x3c8] sm:$0xff] %vm571_vm0, %v2500_v31  ;;  %v2501_v17 = vadd.f32 %v5713_v54, %v2366_v33  ;;  %v2367_v37 = vmul.f32 %v5699_v52, %v2232_v36  ;;  %v2233_v24 = vmul.f32 %v3053_v55, %v5361_v10 }
 0x3eb   : > { %v3055_v9 = vpop.eup %3054 }
 0x3ec   : > { %2629 = vst.msk [vmem:[%s4971_s9 + $0x3d0] sm:$0xff] %vm571_vm0, %v2501_v17  ;;  %v2502_v19 = vadd.f32 %v5713_v54, %v2367_v37  ;;  %v2368_v23 = vmul.f32 %v5699_v52, %v2233_v24  ;;  %v2234_v39 = vmul.f32 %v3055_v9, %v5378_v49 }
 0x3ed   : > { %v3057_v1 = vpop.eup %3056 }
 0x3ee   : > { %2630 = vst.msk [vmem:[%s4971_s9 + $0x3d8] sm:$0xff] %vm571_vm0, %v2502_v19  ;;  %v2503_v16 = vadd.f32 %v5713_v54, %v2368_v23  ;;  %v2369_v62 = vmul.f32 %v5699_v52, %v2234_v39  ;;  %v2235_v10 = vmul.f32 %v3057_v1, %v5403_v47 }
 0x3ef   : > { %v3059_v18 = vpop.eup %3058 }
 0x3f0   : > { %2631 = vst.msk [vmem:[%s4971_s9 + $0x3e0] sm:$0xff] %vm571_vm0, %v2503_v16  ;;  %v2504_v27 = vadd.f32 %v5713_v54, %v2369_v62  ;;  %v2370_v43 = vmul.f32 %v5699_v52, %v2235_v10  ;;  %v2236_v25 = vmul.f32 %v3059_v18, %v5418_v41 }
 0x3f2   : > { %2632 = vst.msk [vmem:[%s4971_s9 + $0x3e8] sm:$0xff] %vm571_vm0, %v2504_v27  ;;  %v2505_v49 = vadd.f32 %v5713_v54, %v2370_v43  ;;  %v2371_v35 = vmul.f32 %v5699_v52, %v2236_v25 }
 0x3f4   : > { %2633 = vst.msk [vmem:[%s4971_s9 + $0x3f0] sm:$0xff] %vm571_vm0, %v2505_v49  ;;  %v2506_v58 = vadd.f32 %v5713_v54, %v2371_v35 }
 0x3f6   : > { %2634 = vst.msk [vmem:[%s4971_s9 + $0x3f8] sm:$0xff] %vm571_vm0, %v2506_v58 }
 0x3f7 PF: > { %s16_s17 = sadd.s32 1, %s3144_s17   ;;  %s6637_s12 = smov %s3128_s13 }
 0x3f8   : > { %p13_p9 = scmp.ge.s32.totalorder %s16_s17, 4   ;;  %s6638_s13 = smov %s3132_s14 }
 0x3f9   : > { %s6639_s14 = smov %s3214_s23  ;;  %s6640_s15 = smov %s3140_s16 }
 0x3fa   : > { %s6641_s16 = smov %s6643_s19  ;;  %15 = sbr.rel (!%p13_p9) target bundleno = 4 (0x4), region = 72 }
 0x401   :  { %2665 = vsyncpa [#allocation3], 1 }
 0x402   :  { %2667 = vsyncpa [#allocation3 + $0x1], 1 }

</bundles_post_ra>
